<compile_context>
chip_gen: v7x
topology: tpu7x:2x2x1
jax: 0.10.0
libtpu: 0.0.40
codegen_flags: <defaults>
</compile_context>

<pallas_src>
import jax
import jax.numpy as jnp
from jax.experimental import pallas as pl
from jax.experimental.pallas import tpu as pltpu


def _round_up(x, m):
    return (x + m - 1) // m * m


# ----------------------------------------------------------------------------
# Pallas kernel: GRU recurrence, C timesteps per grid step.
# grid = (T_pad // C,); hidden state stays resident in VMEM scratch.
# ----------------------------------------------------------------------------
def gru_chunk_kernel(xp_ref,    # VMEM (C, 3Hp)  pre-projected inputs for this chunk
                     h0_ref,    # VMEM (1, Hp)   initial hidden state (f32)
                     whh_ref,   # VMEM (Hp, 3Hp) fused recurrent weight [r|z|n]
                     bh_ref,    # VMEM (1, 3Hp)  recurrent-side bias (only b_hn block, f32)
                     out_ref,   # VMEM (C, Hp)   hidden state after every step (f32)
                     h_scr):    # VMEM (1, Hp)   carried hidden state (f32)
    hp = h_scr.shape[-1]
    c = out_ref.shape[0]

    @pl.when(pl.program_id(0) == 0)
    def _():
        h_scr[...] = h0_ref[...]

    h = h_scr[...]                                          # (1, Hp) f32, lives in vregs
    for j in range(c):                                      # static, fully unrolled chunk loop
        # Pre-projected input row: x @ W_ih + (b_ih, and b_hh for r/z) already folded.
        x = xp_ref[pl.ds(j, 1), :].astype(jnp.float32)      # (1, 3Hp)
        # Recurrent projection: bf16 MXU matmul with f32 accumulation.
        gh = jnp.dot(h.astype(whh_ref.dtype), whh_ref[...],
                     preferred_element_type=jnp.float32) + bh_ref[...]   # (1, 3Hp)
        rz = jax.nn.sigmoid(x[:, :2 * hp] + gh[:, :2 * hp])  # [r | z], lane-aligned blocks
        r = rz[:, :hp]
        z = rz[:, hp:]
        n = jnp.tanh(x[:, 2 * hp:] + r * gh[:, 2 * hp:])     # i_n + r * (h_n + b_hn)
        h = n + z * (h - n)                                  # == (1 - z) * n + z * h
        out_ref[pl.ds(j, 1), :] = h                          # (C, Hp) block -> dense HBM writeback
    h_scr[...] = h


def gru_sequence(x_proj, h0, whh, bh, chunk):
    """x_proj: (T_pad, 3Hp) pre-projected inputs; h0: (1, Hp) f32.
    Returns (T_pad, Hp) f32 hidden state after every step."""
    t_pad = int(x_proj.shape[0])
    hp = int(h0.shape[-1])
    n_chunks = t_pad // chunk

    flops = 2 * hp * (3 * hp) * t_pad
    bytes_accessed = int(x_proj.size * x_proj.dtype.itemsize
                         + whh.size * whh.dtype.itemsize
                         + bh.size * bh.dtype.itemsize
                         + h0.size * 4
                         + t_pad * hp * 4)
    cost = pl.CostEstimate(flops=flops, transcendentals=3 * hp * t_pad,
                           bytes_accessed=bytes_accessed)

    def build(single_buffer_invariants):
        # Loop-invariant operands are DMA'd once; single-buffer them so they do
        # not pay the default double-buffered VMEM footprint (matters for large
        # H on v7x's 64 MiB VMEM).
        inv = {"pipeline_mode": pl.Buffered(1)} if single_buffer_invariants else {}
        grid_spec = pltpu.PrefetchScalarGridSpec(
            num_scalar_prefetch=0,
            grid=(n_chunks,),
            in_specs=[
                pl.BlockSpec((chunk, 3 * hp), lambda i: (i, 0)),       # per-chunk inputs (pipelined)
                pl.BlockSpec((1, hp), lambda i: (0, 0), **inv),        # h0 (resident)
                pl.BlockSpec((hp, 3 * hp), lambda i: (0, 0), **inv),   # W_hh (resident)
                pl.BlockSpec((1, 3 * hp), lambda i: (0, 0), **inv),    # bias (resident)
            ],
            out_specs=pl.BlockSpec((chunk, hp), lambda i: (i, 0)),
            scratch_shapes=[pltpu.VMEM((1, hp), jnp.float32)],
        )
        return pl.pallas_call(
            gru_chunk_kernel,
            out_shape=jax.ShapeDtypeStruct((t_pad, hp), jnp.float32),
            grid_spec=grid_spec,
            compiler_params=pltpu.CompilerParams(
                # Time axis is a recurrence carried through VMEM scratch.
                # vmem_limit_bytes deliberately left at the default: never request
                # the full 64 MiB on v7x; for realistic H derive a budget from
                # pltpu.get_tpu_info().vmem_capacity_bytes instead.
                dimension_semantics=("arbitrary",),
            ),
            cost_estimate=cost,
        )

    try:
        return build(True)(x_proj, h0, whh, bh)
    except Exception:
        # pl.Buffered(1) unsupported on this jax/libtpu combo -> default buffering.
        return build(False)(x_proj, h0, whh, bh)


# ----------------------------------------------------------------------------
# Parameters (PyTorch layout) and host-side packing into the fused layout.
# ----------------------------------------------------------------------------
def init_params(key, input_size, hidden_size):
    """PyTorch-layout parameters (nn.Embedding + nn.GRU, num_layers=1)."""
    k_emb, k_wih, k_whh, k_bih, k_bhh = jax.random.split(key, 5)
    bound = 1.0 / float(hidden_size) ** 0.5
    return {
        "embedding": jax.random.normal(k_emb, (input_size, hidden_size), jnp.float32),
        "weight_ih": jax.random.uniform(k_wih, (3 * hidden_size, hidden_size),
                                        jnp.float32, -bound, bound),
        "weight_hh": jax.random.uniform(k_whh, (3 * hidden_size, hidden_size),
                                        jnp.float32, -bound, bound),
        "bias_ih": jax.random.uniform(k_bih, (3 * hidden_size,),
                                      jnp.float32, -bound, bound),
        "bias_hh": jax.random.uniform(k_bhh, (3 * hidden_size,),
                                      jnp.float32, -bound, bound),
    }


def pack_params(params, weight_dtype=jnp.bfloat16):
    """Pad H to 128 lanes, hoist the input projection out of the recurrence.

    emb_proj row (1, 3Hp) = [ e@Wi_r^T + b_ir + b_hr | e@Wi_z^T + b_iz + b_hz | e@Wi_n^T + b_in ]
    whh (Hp, 3Hp)         = [ Wh_r^T | Wh_z^T | Wh_n^T ]
    bh  (1, 3Hp)          = [   0    |   0    |  b_hn  ]   (b_hn stays inside r*(...))
    All padded rows / columns / biases are zero and padded hidden lanes start
    at zero, so they stay exactly zero through the recurrence.
    """
    emb = params["embedding"]
    v, h = emb.shape
    hp = _round_up(h, 128)

    w_ih, w_hh = params["weight_ih"], params["weight_hh"]   # (3H, H), rows [r|z|n]
    b_ih, b_hh = params["bias_ih"], params["bias_hh"]       # (3H,)
    wi_r, wi_z, wi_n = w_ih[:h], w_ih[h:2 * h], w_ih[2 * h:]
    wh_r, wh_z, wh_n = w_hh[:h], w_hh[h:2 * h], w_hh[2 * h:]

    proj_r = emb @ wi_r.T + b_ih[:h] + b_hh[:h]              # one-time host matmuls
    proj_z = emb @ wi_z.T + b_ih[h:2 * h] + b_hh[h:2 * h]
    proj_n = emb @ wi_n.T + b_ih[2 * h:]

    emb_proj = jnp.zeros((v, 3 * hp), jnp.float32)
    emb_proj = emb_proj.at[:, 0 * hp:0 * hp + h].set(proj_r)
    emb_proj = emb_proj.at[:, 1 * hp:1 * hp + h].set(proj_z)
    emb_proj = emb_proj.at[:, 2 * hp:2 * hp + h].set(proj_n)

    whh = jnp.zeros((hp, 3 * hp), jnp.float32)
    whh = whh.at[:h, 0 * hp:0 * hp + h].set(wh_r.T)
    whh = whh.at[:h, 1 * hp:1 * hp + h].set(wh_z.T)
    whh = whh.at[:h, 2 * hp:2 * hp + h].set(wh_n.T)

    bh = jnp.zeros((1, 3 * hp), jnp.float32)
    bh = bh.at[0, 2 * hp:2 * hp + h].set(b_hh[2 * h:])       # b_hn only

    return {
        "emb_proj": emb_proj.astype(weight_dtype),   # bf16 by default: halves DMA/VMEM
        "whh": whh.astype(weight_dtype),
        "bh": bh,                                    # bias kept f32 (gate math is f32)
        "H": h, "Hp": hp,
    }


# ----------------------------------------------------------------------------
# Encoder forward (matches the PyTorch module; also accepts a token sequence)
# ----------------------------------------------------------------------------
def encoder_forward(sentences, hidden, packed, chunk=8):
    """`sentences`: token index (scalar, as implied by .view(1,1,-1)) or a 1-D
    array of token ids processed as a sequence inside one pallas_call.
    `hidden`: (1, 1, hidden_size).  Returns (output (T,1,H), hidden (1,1,H))."""
    h_dim, hp = packed["H"], packed["Hp"]
    ids = jnp.atleast_1d(jnp.asarray(sentences, dtype=jnp.int32)).reshape(-1)
    t = int(ids.shape[0])
    t_pad = _round_up(t, chunk)

    # Batched gather of the pre-projected rows (the x-side projection was folded
    # into the table on the host); jnp.take clamps out-of-range token ids.
    x_proj = jnp.take(packed["emb_proj"], ids, axis=0)       # (T, 3Hp)
    if t_pad != t:
        x_proj = jnp.pad(x_proj, ((0, t_pad - t), (0, 0)))   # padded steps are discarded

    h0 = jnp.zeros((1, hp), jnp.float32).at[:, :h_dim].set(
        hidden.reshape(1, h_dim).astype(jnp.float32))

    # TODO(synk): batching multiple independent sequences into the matmul M
    # dimension / across the second v7x TensorCore is not exercised since the
    # PyTorch module is batch-1, seq-1.
    out = gru_sequence(x_proj, h0, packed["whh"], packed["bh"], chunk)   # (T_pad, Hp)
    output = out[:t, :h_dim].reshape(t, 1, h_dim)
    hidden_out = out[t - 1, :h_dim].reshape(1, 1, h_dim)
    return output, hidden_out


# ----------------------------------------------------------------------------
# Pure-JAX references (for checking)
# ----------------------------------------------------------------------------
def reference_forward(token_ids, hidden, params):
    """PyTorch nn.GRU semantics, f32 parameters."""
    h_dim = params["embedding"].shape[1]
    w_ih, w_hh = params["weight_ih"], params["weight_hh"]
    b_ih, b_hh = params["bias_ih"], params["bias_hh"]
    h = hidden.reshape(1, h_dim)
    outs = []
    for tok in list(token_ids):
        x = params["embedding"][tok].reshape(1, h_dim)
        gi = x @ w_ih.T + b_ih
        gh = h @ w_hh.T + b_hh
        r = jax.nn.sigmoid(gi[:, :h_dim] + gh[:, :h_dim])
        z = jax.nn.sigmoid(gi[:, h_dim:2 * h_dim] + gh[:, h_dim:2 * h_dim])
        n = jnp.tanh(gi[:, 2 * h_dim:] + r * gh[:, 2 * h_dim:])
        h = (1.0 - z) * n + z * h
        outs.append(h)
    return jnp.stack(outs, axis=0), h.reshape(1, 1, h_dim)


def reference_forward_packed(token_ids, hidden, packed):
    """Mirrors the kernel math on the *packed* (possibly bf16-rounded) params."""
    h_dim, hp = packed["H"], packed["Hp"]
    w_dtype = packed["whh"].dtype
    emb_proj = packed["emb_proj"].astype(jnp.float32)
    whh = packed["whh"].astype(jnp.float32)
    bh = packed["bh"]
    h = jnp.zeros((1, hp), jnp.float32).at[:, :h_dim].set(hidden.reshape(1, h_dim))
    outs = []
    for tok in list(token_ids):
        x = emb_proj[tok].reshape(1, 3 * hp)
        gh = h.astype(w_dtype).astype(jnp.float32) @ whh + bh
        rz = jax.nn.sigmoid(x[:, :2 * hp] + gh[:, :2 * hp])
        r, z = rz[:, :hp], rz[:, hp:]
        n = jnp.tanh(x[:, 2 * hp:] + r * gh[:, 2 * hp:])
        h = n + z * (h - n)
        outs.append(h[:, :h_dim])
    return jnp.stack(outs, axis=0), outs[-1].reshape(1, 1, h_dim)


if __name__ == "__main__":
    input_size = 16      # vocabulary size
    hidden_size = 32
    max_words = 8        # kept for parity with the PyTorch ctor; unused in forward
    seq_len = 8

    key = jax.random.PRNGKey(0)
    k_params, k_hidden, k_ids = jax.random.split(key, 3)
    params = init_params(k_params, input_size, hidden_size)

    hidden0 = jax.random.normal(k_hidden, (1, 1, hidden_size), jnp.float32)
    ids = jax.random.randint(k_ids, (seq_len,), 0, input_size, dtype=jnp.int32)

    # --- f32-packed path: tight check against PyTorch GRU semantics ----------
    packed_f32 = pack_params(params, weight_dtype=jnp.float32)

    sentence = jnp.int32(3)                       # the module's forward: one token id
    out1, hid1 = encoder_forward(sentence, hidden0, packed_f32)
    jax.block_until_ready((out1, hid1))
    ref1, refh1 = reference_forward(jnp.array([3], jnp.int32), hidden0, params)
    assert out1.shape == (1, 1, hidden_size)
    assert hid1.shape == (1, 1, hidden_size)
    assert jnp.allclose(out1, ref1, atol=1e-3, rtol=1e-3)
    assert jnp.allclose(hid1, refh1, atol=1e-3, rtol=1e-3)

    out_seq, hid_seq = encoder_forward(ids, hidden0, packed_f32)
    jax.block_until_ready((out_seq, hid_seq))
    ref_seq, ref_hseq = reference_forward(ids, hidden0, params)
    assert out_seq.shape == (seq_len, 1, hidden_size)
    assert hid_seq.shape == (1, 1, hidden_size)
    assert jnp.allclose(out_seq, ref_seq, atol=1e-3, rtol=1e-3)
    assert jnp.allclose(hid_seq, ref_hseq, atol=1e-3, rtol=1e-3)

    # --- bf16-packed path (default): halves weight DMA / VMEM ---------------
    packed_bf16 = pack_params(params)             # weight_dtype = bf16
    out_b, hid_b = encoder_forward(ids, hidden0, packed_bf16)
    jax.block_until_ready((out_b, hid_b))
    refp_seq, refp_h = reference_forward_packed(ids, hidden0, packed_bf16)
    assert jnp.allclose(out_b, refp_seq, atol=2e-3, rtol=2e-3)   # matches bf16-consistent ref
    assert jnp.allclose(hid_b, refp_h, atol=2e-3, rtol=2e-3)
    assert jnp.allclose(out_b, ref_seq, atol=5e-2, rtol=5e-2)    # still close to f32 semantics

    print("KERNEL_OK")
</pallas_src>

<mosaic_0001>
module attributes {stable_mosaic.version = 11 : i64} {
  func.func @gru_chunk_kernel(%arg0: i32, %arg1: memref<8x384xf32, #tpu.memory_space<vmem>>, %arg2: memref<1x128xf32, #tpu.memory_space<vmem>>, %arg3: memref<128x384xf32, #tpu.memory_space<vmem>>, %arg4: memref<1x384xf32, #tpu.memory_space<vmem>>, %arg5: memref<8x128xf32, #tpu.memory_space<vmem>>, %arg6: memref<1x128xf32, #tpu.memory_space<vmem>>) attributes {dimension_semantics = [#tpu.dimension_semantics<arbitrary>], iteration_bounds = array<i64: 1>, scalar_prefetch = 0 : i64, scratch_operands = 1 : i64, tpu.core_type = #tpu.core_type<tc>, window_params = [{transform_indices = @transform_0, window_bounds = array<i64: 8, 384>}, {pipeline_mode = #tpu.pipeline_mode<synchronous>, transform_indices = @transform_1, window_bounds = array<i64: 1, 128>}, {pipeline_mode = #tpu.pipeline_mode<synchronous>, transform_indices = @transform_2, window_bounds = array<i64: 128, 384>}, {pipeline_mode = #tpu.pipeline_mode<synchronous>, transform_indices = @transform_3, window_bounds = array<i64: 1, 384>}, {transform_indices = @transform_4, window_bounds = array<i64: 8, 128>}]} {
    %c0_i32 = arith.constant 0 : i32
    %0 = arith.cmpi eq, %arg0, %c0_i32 : i32
    %1 = arith.extui %0 : i1 to i32
    %c0_i32_0 = arith.constant 0 : i32
    %2 = arith.cmpi ne, %1, %c0_i32_0 : i32
    scf.if %2 {
      %c0_76 = arith.constant 0 : index
      %c0_77 = arith.constant 0 : index
      %197 = vector.load %arg2[%c0_76, %c0_77] : memref<1x128xf32, #tpu.memory_space<vmem>>, vector<1x128xf32>
      %c0_78 = arith.constant 0 : index
      %c0_79 = arith.constant 0 : index
      %198 = vector.load %arg6[%c0_78, %c0_79] : memref<1x128xf32, #tpu.memory_space<vmem>>, vector<1x128xf32>
      tpu.vector_store %arg6[%c0_78, %c0_79], %197 {strides = array<i32>} : memref<1x128xf32, #tpu.memory_space<vmem>>, vector<1x128xf32>,
    } else {
    }
    %c0 = arith.constant 0 : index
    %c0_1 = arith.constant 0 : index
    %3 = vector.load %arg6[%c0, %c0_1] : memref<1x128xf32, #tpu.memory_space<vmem>>, vector<1x128xf32>
    %c0_2 = arith.constant 0 : index
    %c0_3 = arith.constant 0 : index
    %4 = vector.load %arg1[%c0_2, %c0_3] : memref<8x384xf32, #tpu.memory_space<vmem>>, vector<1x384xf32>
    %c0_4 = arith.constant 0 : index
    %c0_5 = arith.constant 0 : index
    %5 = vector.load %arg3[%c0_4, %c0_5] : memref<128x384xf32, #tpu.memory_space<vmem>>, vector<128x384xf32>
    %cst = arith.constant dense<0.000000e+00> : vector<1x384xf32>
    %6 = tpu.matmul %3, %5, %cst {dimension_numbers = #tpu.dot_dimension_numbers<[1], [0], [0], [1], [0, 0, 1, 1], [], []>} : vector<1x128xf32>, vector<128x384xf32>, vector<1x384xf32> -> vector<1x384xf32>
    %c0_6 = arith.constant 0 : index
    %c0_7 = arith.constant 0 : index
    %7 = vector.load %arg4[%c0_6, %c0_7] : memref<1x384xf32, #tpu.memory_space<vmem>>, vector<1x384xf32>
    %8 = arith.addf %6, %7 : vector<1x384xf32>
    %9 = vector.extract_strided_slice %4 {offsets = [0, 0], sizes = [1, 256], strides = [1, 1]} : vector<1x384xf32> to vector<1x256xf32>
    %10 = vector.extract_strided_slice %8 {offsets = [0, 0], sizes = [1, 256], strides = [1, 1]} : vector<1x384xf32> to vector<1x256xf32>
    %11 = arith.addf %9, %10 : vector<1x256xf32>
    %12 = arith.negf %11 : vector<1x256xf32>
    %13 = math.exp %12 : vector<1x256xf32>
    %cst_8 = arith.constant 1.000000e+00 : f32
    %14 = vector.broadcast %cst_8 : f32 to vector<1x256xf32>
    %15 = arith.addf %14, %13 : vector<1x256xf32>
    %16 = arith.divf %14, %15 : vector<1x256xf32>
    %17 = vector.extract_strided_slice %16 {offsets = [0, 0], sizes = [1, 128], strides = [1, 1]} : vector<1x256xf32> to vector<1x128xf32>
    %18 = vector.extract_strided_slice %16 {offsets = [0, 128], sizes = [1, 128], strides = [1, 1]} : vector<1x256xf32> to vector<1x128xf32>
    %19 = vector.extract_strided_slice %4 {offsets = [0, 256], sizes = [1, 128], strides = [1, 1]} : vector<1x384xf32> to vector<1x128xf32>
    %20 = vector.extract_strided_slice %8 {offsets = [0, 256], sizes = [1, 128], strides = [1, 1]} : vector<1x384xf32> to vector<1x128xf32>
    %21 = arith.mulf %17, %20 : vector<1x128xf32>
    %22 = arith.addf %19, %21 : vector<1x128xf32>
    %23 = math.tanh %22 : vector<1x128xf32>
    %24 = arith.subf %3, %23 : vector<1x128xf32>
    %25 = arith.mulf %18, %24 : vector<1x128xf32>
    %26 = arith.addf %23, %25 : vector<1x128xf32>
    %c0_9 = arith.constant 0 : index
    %c0_10 = arith.constant 0 : index
    %27 = vector.load %arg5[%c0_9, %c0_10] : memref<8x128xf32, #tpu.memory_space<vmem>>, vector<1x128xf32>
    tpu.vector_store %arg5[%c0_9, %c0_10], %26 {strides = array<i32>} : memref<8x128xf32, #tpu.memory_space<vmem>>, vector<1x128xf32>,
    %c1 = arith.constant 1 : index
    %c0_11 = arith.constant 0 : index
    %28 = vector.load %arg1[%c1, %c0_11] : memref<8x384xf32, #tpu.memory_space<vmem>>, vector<1x384xf32>
    %c0_12 = arith.constant 0 : index
    %c0_13 = arith.constant 0 : index
    %29 = vector.load %arg3[%c0_12, %c0_13] : memref<128x384xf32, #tpu.memory_space<vmem>>, vector<128x384xf32>
    %cst_14 = arith.constant dense<0.000000e+00> : vector<1x384xf32>
    %30 = tpu.matmul %26, %29, %cst_14 {dimension_numbers = #tpu.dot_dimension_numbers<[1], [0], [0], [1], [0, 0, 1, 1], [], []>} : vector<1x128xf32>, vector<128x384xf32>, vector<1x384xf32> -> vector<1x384xf32>
    %c0_15 = arith.constant 0 : index
    %c0_16 = arith.constant 0 : index
    %31 = vector.load %arg4[%c0_15, %c0_16] : memref<1x384xf32, #tpu.memory_space<vmem>>, vector<1x384xf32>
    %32 = arith.addf %30, %31 : vector<1x384xf32>
    %33 = vector.extract_strided_slice %28 {offsets = [0, 0], sizes = [1, 256], strides = [1, 1]} : vector<1x384xf32> to vector<1x256xf32>
    %34 = vector.extract_strided_slice %32 {offsets = [0, 0], sizes = [1, 256], strides = [1, 1]} : vector<1x384xf32> to vector<1x256xf32>
    %35 = arith.addf %33, %34 : vector<1x256xf32>
    %36 = arith.negf %35 : vector<1x256xf32>
    %37 = math.exp %36 : vector<1x256xf32>
    %cst_17 = arith.constant 1.000000e+00 : f32
    %38 = vector.broadcast %cst_17 : f32 to vector<1x256xf32>
    %39 = arith.addf %38, %37 : vector<1x256xf32>
    %40 = arith.divf %38, %39 : vector<1x256xf32>
    %41 = vector.extract_strided_slice %40 {offsets = [0, 0], sizes = [1, 128], strides = [1, 1]} : vector<1x256xf32> to vector<1x128xf32>
    %42 = vector.extract_strided_slice %40 {offsets = [0, 128], sizes = [1, 128], strides = [1, 1]} : vector<1x256xf32> to vector<1x128xf32>
    %43 = vector.extract_strided_slice %28 {offsets = [0, 256], sizes = [1, 128], strides = [1, 1]} : vector<1x384xf32> to vector<1x128xf32>
    %44 = vector.extract_strided_slice %32 {offsets = [0, 256], sizes = [1, 128], strides = [1, 1]} : vector<1x384xf32> to vector<1x128xf32>
    %45 = arith.mulf %41, %44 : vector<1x128xf32>
    %46 = arith.addf %43, %45 : vector<1x128xf32>
    %47 = math.tanh %46 : vector<1x128xf32>
    %48 = arith.subf %26, %47 : vector<1x128xf32>
    %49 = arith.mulf %42, %48 : vector<1x128xf32>
    %50 = arith.addf %47, %49 : vector<1x128xf32>
    %c1_18 = arith.constant 1 : index
    %c0_19 = arith.constant 0 : index
    %51 = vector.load %arg5[%c1_18, %c0_19] : memref<8x128xf32, #tpu.memory_space<vmem>>, vector<1x128xf32>
    tpu.vector_store %arg5[%c1_18, %c0_19], %50 {strides = array<i32>} : memref<8x128xf32, #tpu.memory_space<vmem>>, vector<1x128xf32>,
    %c2 = arith.constant 2 : index
    %c0_20 = arith.constant 0 : index
    %52 = vector.load %arg1[%c2, %c0_20] : memref<8x384xf32, #tpu.memory_space<vmem>>, vector<1x384xf32>
    %c0_21 = arith.constant 0 : index
    %c0_22 = arith.constant 0 : index
    %53 = vector.load %arg3[%c0_21, %c0_22] : memref<128x384xf32, #tpu.memory_space<vmem>>, vector<128x384xf32>
    %cst_23 = arith.constant dense<0.000000e+00> : vector<1x384xf32>
    %54 = tpu.matmul %50, %53, %cst_23 {dimension_numbers = #tpu.dot_dimension_numbers<[1], [0], [0], [1], [0, 0, 1, 1], [], []>} : vector<1x128xf32>, vector<128x384xf32>, vector<1x384xf32> -> vector<1x384xf32>
    %c0_24 = arith.constant 0 : index
    %c0_25 = arith.constant 0 : index
    %55 = vector.load %arg4[%c0_24, %c0_25] : memref<1x384xf32, #tpu.memory_space<vmem>>, vector<1x384xf32>
    %56 = arith.addf %54, %55 : vector<1x384xf32>
    %57 = vector.extract_strided_slice %52 {offsets = [0, 0], sizes = [1, 256], strides = [1, 1]} : vector<1x384xf32> to vector<1x256xf32>
    %58 = vector.extract_strided_slice %56 {offsets = [0, 0], sizes = [1, 256], strides = [1, 1]} : vector<1x384xf32> to vector<1x256xf32>
    %59 = arith.addf %57, %58 : vector<1x256xf32>
    %60 = arith.negf %59 : vector<1x256xf32>
    %61 = math.exp %60 : vector<1x256xf32>
    %cst_26 = arith.constant 1.000000e+00 : f32
    %62 = vector.broadcast %cst_26 : f32 to vector<1x256xf32>
    %63 = arith.addf %62, %61 : vector<1x256xf32>
    %64 = arith.divf %62, %63 : vector<1x256xf32>
    %65 = vector.extract_strided_slice %64 {offsets = [0, 0], sizes = [1, 128], strides = [1, 1]} : vector<1x256xf32> to vector<1x128xf32>
    %66 = vector.extract_strided_slice %64 {offsets = [0, 128], sizes = [1, 128], strides = [1, 1]} : vector<1x256xf32> to vector<1x128xf32>
    %67 = vector.extract_strided_slice %52 {offsets = [0, 256], sizes = [1, 128], strides = [1, 1]} : vector<1x384xf32> to vector<1x128xf32>
    %68 = vector.extract_strided_slice %56 {offsets = [0, 256], sizes = [1, 128], strides = [1, 1]} : vector<1x384xf32> to vector<1x128xf32>
    %69 = arith.mulf %65, %68 : vector<1x128xf32>
    %70 = arith.addf %67, %69 : vector<1x128xf32>
    %71 = math.tanh %70 : vector<1x128xf32>
    %72 = arith.subf %50, %71 : vector<1x128xf32>
    %73 = arith.mulf %66, %72 : vector<1x128xf32>
    %74 = arith.addf %71, %73 : vector<1x128xf32>
    %c2_27 = arith.constant 2 : index
    %c0_28 = arith.constant 0 : index
    %75 = vector.load %arg5[%c2_27, %c0_28] : memref<8x128xf32, #tpu.memory_space<vmem>>, vector<1x128xf32>
    tpu.vector_store %arg5[%c2_27, %c0_28], %74 {strides = array<i32>} : memref<8x128xf32, #tpu.memory_space<vmem>>, vector<1x128xf32>,
    %c3 = arith.constant 3 : index
    %c0_29 = arith.constant 0 : index
    %76 = vector.load %arg1[%c3, %c0_29] : memref<8x384xf32, #tpu.memory_space<vmem>>, vector<1x384xf32>
    %c0_30 = arith.constant 0 : index
    %c0_31 = arith.constant 0 : index
    %77 = vector.load %arg3[%c0_30, %c0_31] : memref<128x384xf32, #tpu.memory_space<vmem>>, vector<128x384xf32>
    %cst_32 = arith.constant dense<0.000000e+00> : vector<1x384xf32>
    %78 = tpu.matmul %74, %77, %cst_32 {dimension_numbers = #tpu.dot_dimension_numbers<[1], [0], [0], [1], [0, 0, 1, 1], [], []>} : vector<1x128xf32>, vector<128x384xf32>, vector<1x384xf32> -> vector<1x384xf32>
    %c0_33 = arith.constant 0 : index
    %c0_34 = arith.constant 0 : index
    %79 = vector.load %arg4[%c0_33, %c0_34] : memref<1x384xf32, #tpu.memory_space<vmem>>, vector<1x384xf32>
    %80 = arith.addf %78, %79 : vector<1x384xf32>
    %81 = vector.extract_strided_slice %76 {offsets = [0, 0], sizes = [1, 256], strides = [1, 1]} : vector<1x384xf32> to vector<1x256xf32>
    %82 = vector.extract_strided_slice %80 {offsets = [0, 0], sizes = [1, 256], strides = [1, 1]} : vector<1x384xf32> to vector<1x256xf32>
    %83 = arith.addf %81, %82 : vector<1x256xf32>
    %84 = arith.negf %83 : vector<1x256xf32>
    %85 = math.exp %84 : vector<1x256xf32>
    %cst_35 = arith.constant 1.000000e+00 : f32
    %86 = vector.broadcast %cst_35 : f32 to vector<1x256xf32>
    %87 = arith.addf %86, %85 : vector<1x256xf32>
    %88 = arith.divf %86, %87 : vector<1x256xf32>
    %89 = vector.extract_strided_slice %88 {offsets = [0, 0], sizes = [1, 128], strides = [1, 1]} : vector<1x256xf32> to vector<1x128xf32>
    %90 = vector.extract_strided_slice %88 {offsets = [0, 128], sizes = [1, 128], strides = [1, 1]} : vector<1x256xf32> to vector<1x128xf32>
    %91 = vector.extract_strided_slice %76 {offsets = [0, 256], sizes = [1, 128], strides = [1, 1]} : vector<1x384xf32> to vector<1x128xf32>
    %92 = vector.extract_strided_slice %80 {offsets = [0, 256], sizes = [1, 128], strides = [1, 1]} : vector<1x384xf32> to vector<1x128xf32>
    %93 = arith.mulf %89, %92 : vector<1x128xf32>
    %94 = arith.addf %91, %93 : vector<1x128xf32>
    %95 = math.tanh %94 : vector<1x128xf32>
    %96 = arith.subf %74, %95 : vector<1x128xf32>
    %97 = arith.mulf %90, %96 : vector<1x128xf32>
    %98 = arith.addf %95, %97 : vector<1x128xf32>
    %c3_36 = arith.constant 3 : index
    %c0_37 = arith.constant 0 : index
    %99 = vector.load %arg5[%c3_36, %c0_37] : memref<8x128xf32, #tpu.memory_space<vmem>>, vector<1x128xf32>
    tpu.vector_store %arg5[%c3_36, %c0_37], %98 {strides = array<i32>} : memref<8x128xf32, #tpu.memory_space<vmem>>, vector<1x128xf32>,
    %c4 = arith.constant 4 : index
    %c0_38 = arith.constant 0 : index
    %100 = vector.load %arg1[%c4, %c0_38] : memref<8x384xf32, #tpu.memory_space<vmem>>, vector<1x384xf32>
    %c0_39 = arith.constant 0 : index
    %c0_40 = arith.constant 0 : index
    %101 = vector.load %arg3[%c0_39, %c0_40] : memref<128x384xf32, #tpu.memory_space<vmem>>, vector<128x384xf32>
    %cst_41 = arith.constant dense<0.000000e+00> : vector<1x384xf32>
    %102 = tpu.matmul %98, %101, %cst_41 {dimension_numbers = #tpu.dot_dimension_numbers<[1], [0], [0], [1], [0, 0, 1, 1], [], []>} : vector<1x128xf32>, vector<128x384xf32>, vector<1x384xf32> -> vector<1x384xf32>
    %c0_42 = arith.constant 0 : index
    %c0_43 = arith.constant 0 : index
    %103 = vector.load %arg4[%c0_42, %c0_43] : memref<1x384xf32, #tpu.memory_space<vmem>>, vector<1x384xf32>
    %104 = arith.addf %102, %103 : vector<1x384xf32>
    %105 = vector.extract_strided_slice %100 {offsets = [0, 0], sizes = [1, 256], strides = [1, 1]} : vector<1x384xf32> to vector<1x256xf32>
    %106 = vector.extract_strided_slice %104 {offsets = [0, 0], sizes = [1, 256], strides = [1, 1]} : vector<1x384xf32> to vector<1x256xf32>
    %107 = arith.addf %105, %106 : vector<1x256xf32>
    %108 = arith.negf %107 : vector<1x256xf32>
    %109 = math.exp %108 : vector<1x256xf32>
    %cst_44 = arith.constant 1.000000e+00 : f32
    %110 = vector.broadcast %cst_44 : f32 to vector<1x256xf32>
    %111 = arith.addf %110, %109 : vector<1x256xf32>
    %112 = arith.divf %110, %111 : vector<1x256xf32>
    %113 = vector.extract_strided_slice %112 {offsets = [0, 0], sizes = [1, 128], strides = [1, 1]} : vector<1x256xf32> to vector<1x128xf32>
    %114 = vector.extract_strided_slice %112 {offsets = [0, 128], sizes = [1, 128], strides = [1, 1]} : vector<1x256xf32> to vector<1x128xf32>
    %115 = vector.extract_strided_slice %100 {offsets = [0, 256], sizes = [1, 128], strides = [1, 1]} : vector<1x384xf32> to vector<1x128xf32>
    %116 = vector.extract_strided_slice %104 {offsets = [0, 256], sizes = [1, 128], strides = [1, 1]} : vector<1x384xf32> to vector<1x128xf32>
    %117 = arith.mulf %113, %116 : vector<1x128xf32>
    %118 = arith.addf %115, %117 : vector<1x128xf32>
    %119 = math.tanh %118 : vector<1x128xf32>
    %120 = arith.subf %98, %119 : vector<1x128xf32>
    %121 = arith.mulf %114, %120 : vector<1x128xf32>
    %122 = arith.addf %119, %121 : vector<1x128xf32>
    %c4_45 = arith.constant 4 : index
    %c0_46 = arith.constant 0 : index
    %123 = vector.load %arg5[%c4_45, %c0_46] : memref<8x128xf32, #tpu.memory_space<vmem>>, vector<1x128xf32>
    tpu.vector_store %arg5[%c4_45, %c0_46], %122 {strides = array<i32>} : memref<8x128xf32, #tpu.memory_space<vmem>>, vector<1x128xf32>,
    %c5 = arith.constant 5 : index
    %c0_47 = arith.constant 0 : index
    %124 = vector.load %arg1[%c5, %c0_47] : memref<8x384xf32, #tpu.memory_space<vmem>>, vector<1x384xf32>
    %c0_48 = arith.constant 0 : index
    %c0_49 = arith.constant 0 : index
    %125 = vector.load %arg3[%c0_48, %c0_49] : memref<128x384xf32, #tpu.memory_space<vmem>>, vector<128x384xf32>
    %cst_50 = arith.constant dense<0.000000e+00> : vector<1x384xf32>
    %126 = tpu.matmul %122, %125, %cst_50 {dimension_numbers = #tpu.dot_dimension_numbers<[1], [0], [0], [1], [0, 0, 1, 1], [], []>} : vector<1x128xf32>, vector<128x384xf32>, vector<1x384xf32> -> vector<1x384xf32>
    %c0_51 = arith.constant 0 : index
    %c0_52 = arith.constant 0 : index
    %127 = vector.load %arg4[%c0_51, %c0_52] : memref<1x384xf32, #tpu.memory_space<vmem>>, vector<1x384xf32>
    %128 = arith.addf %126, %127 : vector<1x384xf32>
    %129 = vector.extract_strided_slice %124 {offsets = [0, 0], sizes = [1, 256], strides = [1, 1]} : vector<1x384xf32> to vector<1x256xf32>
    %130 = vector.extract_strided_slice %128 {offsets = [0, 0], sizes = [1, 256], strides = [1, 1]} : vector<1x384xf32> to vector<1x256xf32>
    %131 = arith.addf %129, %130 : vector<1x256xf32>
    %132 = arith.negf %131 : vector<1x256xf32>
    %133 = math.exp %132 : vector<1x256xf32>
    %cst_53 = arith.constant 1.000000e+00 : f32
    %134 = vector.broadcast %cst_53 : f32 to vector<1x256xf32>
    %135 = arith.addf %134, %133 : vector<1x256xf32>
    %136 = arith.divf %134, %135 : vector<1x256xf32>
    %137 = vector.extract_strided_slice %136 {offsets = [0, 0], sizes = [1, 128], strides = [1, 1]} : vector<1x256xf32> to vector<1x128xf32>
    %138 = vector.extract_strided_slice %136 {offsets = [0, 128], sizes = [1, 128], strides = [1, 1]} : vector<1x256xf32> to vector<1x128xf32>
    %139 = vector.extract_strided_slice %124 {offsets = [0, 256], sizes = [1, 128], strides = [1, 1]} : vector<1x384xf32> to vector<1x128xf32>
    %140 = vector.extract_strided_slice %128 {offsets = [0, 256], sizes = [1, 128], strides = [1, 1]} : vector<1x384xf32> to vector<1x128xf32>
    %141 = arith.mulf %137, %140 : vector<1x128xf32>
    %142 = arith.addf %139, %141 : vector<1x128xf32>
    %143 = math.tanh %142 : vector<1x128xf32>
    %144 = arith.subf %122, %143 : vector<1x128xf32>
    %145 = arith.mulf %138, %144 : vector<1x128xf32>
    %146 = arith.addf %143, %145 : vector<1x128xf32>
    %c5_54 = arith.constant 5 : index
    %c0_55 = arith.constant 0 : index
    %147 = vector.load %arg5[%c5_54, %c0_55] : memref<8x128xf32, #tpu.memory_space<vmem>>, vector<1x128xf32>
    tpu.vector_store %arg5[%c5_54, %c0_55], %146 {strides = array<i32>} : memref<8x128xf32, #tpu.memory_space<vmem>>, vector<1x128xf32>,
    %c6 = arith.constant 6 : index
    %c0_56 = arith.constant 0 : index
    %148 = vector.load %arg1[%c6, %c0_56] : memref<8x384xf32, #tpu.memory_space<vmem>>, vector<1x384xf32>
    %c0_57 = arith.constant 0 : index
    %c0_58 = arith.constant 0 : index
    %149 = vector.load %arg3[%c0_57, %c0_58] : memref<128x384xf32, #tpu.memory_space<vmem>>, vector<128x384xf32>
    %cst_59 = arith.constant dense<0.000000e+00> : vector<1x384xf32>
    %150 = tpu.matmul %146, %149, %cst_59 {dimension_numbers = #tpu.dot_dimension_numbers<[1], [0], [0], [1], [0, 0, 1, 1], [], []>} : vector<1x128xf32>, vector<128x384xf32>, vector<1x384xf32> -> vector<1x384xf32>
    %c0_60 = arith.constant 0 : index
    %c0_61 = arith.constant 0 : index
    %151 = vector.load %arg4[%c0_60, %c0_61] : memref<1x384xf32, #tpu.memory_space<vmem>>, vector<1x384xf32>
    %152 = arith.addf %150, %151 : vector<1x384xf32>
    %153 = vector.extract_strided_slice %148 {offsets = [0, 0], sizes = [1, 256], strides = [1, 1]} : vector<1x384xf32> to vector<1x256xf32>
    %154 = vector.extract_strided_slice %152 {offsets = [0, 0], sizes = [1, 256], strides = [1, 1]} : vector<1x384xf32> to vector<1x256xf32>
    %155 = arith.addf %153, %154 : vector<1x256xf32>
    %156 = arith.negf %155 : vector<1x256xf32>
    %157 = math.exp %156 : vector<1x256xf32>
    %cst_62 = arith.constant 1.000000e+00 : f32
    %158 = vector.broadcast %cst_62 : f32 to vector<1x256xf32>
    %159 = arith.addf %158, %157 : vector<1x256xf32>
    %160 = arith.divf %158, %159 : vector<1x256xf32>
    %161 = vector.extract_strided_slice %160 {offsets = [0, 0], sizes = [1, 128], strides = [1, 1]} : vector<1x256xf32> to vector<1x128xf32>
    %162 = vector.extract_strided_slice %160 {offsets = [0, 128], sizes = [1, 128], strides = [1, 1]} : vector<1x256xf32> to vector<1x128xf32>
    %163 = vector.extract_strided_slice %148 {offsets = [0, 256], sizes = [1, 128], strides = [1, 1]} : vector<1x384xf32> to vector<1x128xf32>
    %164 = vector.extract_strided_slice %152 {offsets = [0, 256], sizes = [1, 128], strides = [1, 1]} : vector<1x384xf32> to vector<1x128xf32>
    %165 = arith.mulf %161, %164 : vector<1x128xf32>
    %166 = arith.addf %163, %165 : vector<1x128xf32>
    %167 = math.tanh %166 : vector<1x128xf32>
    %168 = arith.subf %146, %167 : vector<1x128xf32>
    %169 = arith.mulf %162, %168 : vector<1x128xf32>
    %170 = arith.addf %167, %169 : vector<1x128xf32>
    %c6_63 = arith.constant 6 : index
    %c0_64 = arith.constant 0 : index
    %171 = vector.load %arg5[%c6_63, %c0_64] : memref<8x128xf32, #tpu.memory_space<vmem>>, vector<1x128xf32>
    tpu.vector_store %arg5[%c6_63, %c0_64], %170 {strides = array<i32>} : memref<8x128xf32, #tpu.memory_space<vmem>>, vector<1x128xf32>,
    %c7 = arith.constant 7 : index
    %c0_65 = arith.constant 0 : index
    %172 = vector.load %arg1[%c7, %c0_65] : memref<8x384xf32, #tpu.memory_space<vmem>>, vector<1x384xf32>
    %c0_66 = arith.constant 0 : index
    %c0_67 = arith.constant 0 : index
    %173 = vector.load %arg3[%c0_66, %c0_67] : memref<128x384xf32, #tpu.memory_space<vmem>>, vector<128x384xf32>
    %cst_68 = arith.constant dense<0.000000e+00> : vector<1x384xf32>
    %174 = tpu.matmul %170, %173, %cst_68 {dimension_numbers = #tpu.dot_dimension_numbers<[1], [0], [0], [1], [0, 0, 1, 1], [], []>} : vector<1x128xf32>, vector<128x384xf32>, vector<1x384xf32> -> vector<1x384xf32>
    %c0_69 = arith.constant 0 : index
    %c0_70 = arith.constant 0 : index
    %175 = vector.load %arg4[%c0_69, %c0_70] : memref<1x384xf32, #tpu.memory_space<vmem>>, vector<1x384xf32>
    %176 = arith.addf %174, %175 : vector<1x384xf32>
    %177 = vector.extract_strided_slice %172 {offsets = [0, 0], sizes = [1, 256], strides = [1, 1]} : vector<1x384xf32> to vector<1x256xf32>
    %178 = vector.extract_strided_slice %176 {offsets = [0, 0], sizes = [1, 256], strides = [1, 1]} : vector<1x384xf32> to vector<1x256xf32>
    %179 = arith.addf %177, %178 : vector<1x256xf32>
    %180 = arith.negf %179 : vector<1x256xf32>
    %181 = math.exp %180 : vector<1x256xf32>
    %cst_71 = arith.constant 1.000000e+00 : f32
    %182 = vector.broadcast %cst_71 : f32 to vector<1x256xf32>
    %183 = arith.addf %182, %181 : vector<1x256xf32>
    %184 = arith.divf %182, %183 : vector<1x256xf32>
    %185 = vector.extract_strided_slice %184 {offsets = [0, 0], sizes = [1, 128], strides = [1, 1]} : vector<1x256xf32> to vector<1x128xf32>
    %186 = vector.extract_strided_slice %184 {offsets = [0, 128], sizes = [1, 128], strides = [1, 1]} : vector<1x256xf32> to vector<1x128xf32>
    %187 = vector.extract_strided_slice %172 {offsets = [0, 256], sizes = [1, 128], strides = [1, 1]} : vector<1x384xf32> to vector<1x128xf32>
    %188 = vector.extract_strided_slice %176 {offsets = [0, 256], sizes = [1, 128], strides = [1, 1]} : vector<1x384xf32> to vector<1x128xf32>
    %189 = arith.mulf %185, %188 : vector<1x128xf32>
    %190 = arith.addf %187, %189 : vector<1x128xf32>
    %191 = math.tanh %190 : vector<1x128xf32>
    %192 = arith.subf %170, %191 : vector<1x128xf32>
    %193 = arith.mulf %186, %192 : vector<1x128xf32>
    %194 = arith.addf %191, %193 : vector<1x128xf32>
    %c7_72 = arith.constant 7 : index
    %c0_73 = arith.constant 0 : index
    %195 = vector.load %arg5[%c7_72, %c0_73] : memref<8x128xf32, #tpu.memory_space<vmem>>, vector<1x128xf32>
    tpu.vector_store %arg5[%c7_72, %c0_73], %194 {strides = array<i32>} : memref<8x128xf32, #tpu.memory_space<vmem>>, vector<1x128xf32>,
    %c0_74 = arith.constant 0 : index
    %c0_75 = arith.constant 0 : index
    %196 = vector.load %arg6[%c0_74, %c0_75] : memref<1x128xf32, #tpu.memory_space<vmem>>, vector<1x128xf32>
    tpu.vector_store %arg6[%c0_74, %c0_75], %194 {strides = array<i32>} : memref<1x128xf32, #tpu.memory_space<vmem>>, vector<1x128xf32>,
    return
  }
  func.func @transform_0(%arg0: i32) -> (i32, i32) {
    %c0_i32 = arith.constant 0 : i32
    %c0_i32_0 = arith.constant 0 : i32
    return %arg0, %c0_i32 : i32, i32
  }
  func.func @transform_1(%arg0: i32) -> (i32, i32) {
    %c0_i32 = arith.constant 0 : i32
    %c0_i32_0 = arith.constant 0 : i32
    %c0_i32_1 = arith.constant 0 : i32
    return %c0_i32, %c0_i32_0 : i32, i32
  }
  func.func @transform_2(%arg0: i32) -> (i32, i32) {
    %c0_i32 = arith.constant 0 : i32
    %c0_i32_0 = arith.constant 0 : i32
    %c0_i32_1 = arith.constant 0 : i32
    return %c0_i32, %c0_i32_0 : i32, i32
  }
  func.func @transform_3(%arg0: i32) -> (i32, i32) {
    %c0_i32 = arith.constant 0 : i32
    %c0_i32_0 = arith.constant 0 : i32
    %c0_i32_1 = arith.constant 0 : i32
    return %c0_i32, %c0_i32_0 : i32, i32
  }
  func.func @transform_4(%arg0: i32) -> (i32, i32) {
    %c0_i32 = arith.constant 0 : i32
    %c0_i32_0 = arith.constant 0 : i32
    return %arg0, %c0_i32 : i32, i32
  }
}

module attributes {stable_mosaic.version = 11 : i64} {
  func.func @gru_chunk_kernel(%arg0: i32, %arg1: memref<8x384xf32, #tpu.memory_space<vmem>>, %arg2: memref<1x128xf32, #tpu.memory_space<vmem>>, %arg3: memref<128x384xf32, #tpu.memory_space<vmem>>, %arg4: memref<1x384xf32, #tpu.memory_space<vmem>>, %arg5: memref<8x128xf32, #tpu.memory_space<vmem>>, %arg6: memref<1x128xf32, #tpu.memory_space<vmem>>) attributes {dimension_semantics = [#tpu.dimension_semantics<arbitrary>], iteration_bounds = array<i64: 1>, scalar_prefetch = 0 : i64, scratch_operands = 1 : i64, tpu.core_type = #tpu.core_type<tc>, window_params = [{transform_indices = @transform_0, window_bounds = array<i64: 8, 384>}, {pipeline_mode = #tpu.pipeline_mode<synchronous>, transform_indices = @transform_1, window_bounds = array<i64: 1, 128>}, {pipeline_mode = #tpu.pipeline_mode<synchronous>, transform_indices = @transform_2, window_bounds = array<i64: 128, 384>}, {pipeline_mode = #tpu.pipeline_mode<synchronous>, transform_indices = @transform_3, window_bounds = array<i64: 1, 384>}, {transform_indices = @transform_4, window_bounds = array<i64: 8, 128>}]} {
    %c0_i32 = arith.constant 0 : i32
    %0 = arith.cmpi eq, %arg0, %c0_i32 : i32
    %1 = arith.extui %0 : i1 to i32
    %c0_i32_0 = arith.constant 0 : i32
    %2 = arith.cmpi ne, %1, %c0_i32_0 : i32
    scf.if %2 {
      %c0_76 = arith.constant 0 : index
      %c0_77 = arith.constant 0 : index
      %197 = vector.load %arg2[%c0_76, %c0_77] : memref<1x128xf32, #tpu.memory_space<vmem>>, vector<1x128xf32>
      %c0_78 = arith.constant 0 : index
      %c0_79 = arith.constant 0 : index
      %198 = vector.load %arg6[%c0_78, %c0_79] : memref<1x128xf32, #tpu.memory_space<vmem>>, vector<1x128xf32>
      tpu.vector_store %arg6[%c0_78, %c0_79], %197 {strides = array<i32>} : memref<1x128xf32, #tpu.memory_space<vmem>>, vector<1x128xf32>,
    } else {
    }
    %c0 = arith.constant 0 : index
    %c0_1 = arith.constant 0 : index
    %3 = vector.load %arg6[%c0, %c0_1] : memref<1x128xf32, #tpu.memory_space<vmem>>, vector<1x128xf32>
    %c0_2 = arith.constant 0 : index
    %c0_3 = arith.constant 0 : index
    %4 = vector.load %arg1[%c0_2, %c0_3] : memref<8x384xf32, #tpu.memory_space<vmem>>, vector<1x384xf32>
    %c0_4 = arith.constant 0 : index
    %c0_5 = arith.constant 0 : index
    %5 = vector.load %arg3[%c0_4, %c0_5] : memref<128x384xf32, #tpu.memory_space<vmem>>, vector<128x384xf32>
    %cst = arith.constant dense<0.000000e+00> : vector<1x384xf32>
    %6 = tpu.matmul %3, %5, %cst {dimension_numbers = #tpu.dot_dimension_numbers<[1], [0], [0], [1], [0, 0, 1, 1], [], []>} : vector<1x128xf32>, vector<128x384xf32>, vector<1x384xf32> -> vector<1x384xf32>
    %c0_6 = arith.constant 0 : index
    %c0_7 = arith.constant 0 : index
    %7 = vector.load %arg4[%c0_6, %c0_7] : memref<1x384xf32, #tpu.memory_space<vmem>>, vector<1x384xf32>
    %8 = arith.addf %6, %7 : vector<1x384xf32>
    %9 = vector.extract_strided_slice %4 {offsets = [0, 0], sizes = [1, 256], strides = [1, 1]} : vector<1x384xf32> to vector<1x256xf32>
    %10 = vector.extract_strided_slice %8 {offsets = [0, 0], sizes = [1, 256], strides = [1, 1]} : vector<1x384xf32> to vector<1x256xf32>
    %11 = arith.addf %9, %10 : vector<1x256xf32>
    %12 = arith.negf %11 : vector<1x256xf32>
    %13 = math.exp %12 : vector<1x256xf32>
    %cst_8 = arith.constant 1.000000e+00 : f32
    %14 = vector.broadcast %cst_8 : f32 to vector<1x256xf32>
    %15 = arith.addf %14, %13 : vector<1x256xf32>
    %16 = arith.divf %14, %15 : vector<1x256xf32>
    %17 = vector.extract_strided_slice %16 {offsets = [0, 0], sizes = [1, 128], strides = [1, 1]} : vector<1x256xf32> to vector<1x128xf32>
    %18 = vector.extract_strided_slice %16 {offsets = [0, 128], sizes = [1, 128], strides = [1, 1]} : vector<1x256xf32> to vector<1x128xf32>
    %19 = vector.extract_strided_slice %4 {offsets = [0, 256], sizes = [1, 128], strides = [1, 1]} : vector<1x384xf32> to vector<1x128xf32>
    %20 = vector.extract_strided_slice %8 {offsets = [0, 256], sizes = [1, 128], strides = [1, 1]} : vector<1x384xf32> to vector<1x128xf32>
    %21 = arith.mulf %17, %20 : vector<1x128xf32>
    %22 = arith.addf %19, %21 : vector<1x128xf32>
    %23 = math.tanh %22 : vector<1x128xf32>
    %24 = arith.subf %3, %23 : vector<1x128xf32>
    %25 = arith.mulf %18, %24 : vector<1x128xf32>
    %26 = arith.addf %23, %25 : vector<1x128xf32>
    %c0_9 = arith.constant 0 : index
    %c0_10 = arith.constant 0 : index
    %27 = vector.load %arg5[%c0_9, %c0_10] : memref<8x128xf32, #tpu.memory_space<vmem>>, vector<1x128xf32>
    tpu.vector_store %arg5[%c0_9, %c0_10], %26 {strides = array<i32>} : memref<8x128xf32, #tpu.memory_space<vmem>>, vector<1x128xf32>,
    %c1 = arith.constant 1 : index
    %c0_11 = arith.constant 0 : index
    %28 = vector.load %arg1[%c1, %c0_11] : memref<8x384xf32, #tpu.memory_space<vmem>>, vector<1x384xf32>
    %c0_12 = arith.constant 0 : index
    %c0_13 = arith.constant 0 : index
    %29 = vector.load %arg3[%c0_12, %c0_13] : memref<128x384xf32, #tpu.memory_space<vmem>>, vector<128x384xf32>
    %cst_14 = arith.constant dense<0.000000e+00> : vector<1x384xf32>
    %30 = tpu.matmul %26, %29, %cst_14 {dimension_numbers = #tpu.dot_dimension_numbers<[1], [0], [0], [1], [0, 0, 1, 1], [], []>} : vector<1x128xf32>, vector<128x384xf32>, vector<1x384xf32> -> vector<1x384xf32>
    %c0_15 = arith.constant 0 : index
    %c0_16 = arith.constant 0 : index
    %31 = vector.load %arg4[%c0_15, %c0_16] : memref<1x384xf32, #tpu.memory_space<vmem>>, vector<1x384xf32>
    %32 = arith.addf %30, %31 : vector<1x384xf32>
    %33 = vector.extract_strided_slice %28 {offsets = [0, 0], sizes = [1, 256], strides = [1, 1]} : vector<1x384xf32> to vector<1x256xf32>
    %34 = vector.extract_strided_slice %32 {offsets = [0, 0], sizes = [1, 256], strides = [1, 1]} : vector<1x384xf32> to vector<1x256xf32>
    %35 = arith.addf %33, %34 : vector<1x256xf32>
    %36 = arith.negf %35 : vector<1x256xf32>
    %37 = math.exp %36 : vector<1x256xf32>
    %cst_17 = arith.constant 1.000000e+00 : f32
    %38 = vector.broadcast %cst_17 : f32 to vector<1x256xf32>
    %39 = arith.addf %38, %37 : vector<1x256xf32>
    %40 = arith.divf %38, %39 : vector<1x256xf32>
    %41 = vector.extract_strided_slice %40 {offsets = [0, 0], sizes = [1, 128], strides = [1, 1]} : vector<1x256xf32> to vector<1x128xf32>
    %42 = vector.extract_strided_slice %40 {offsets = [0, 128], sizes = [1, 128], strides = [1, 1]} : vector<1x256xf32> to vector<1x128xf32>
    %43 = vector.extract_strided_slice %28 {offsets = [0, 256], sizes = [1, 128], strides = [1, 1]} : vector<1x384xf32> to vector<1x128xf32>
    %44 = vector.extract_strided_slice %32 {offsets = [0, 256], sizes = [1, 128], strides = [1, 1]} : vector<1x384xf32> to vector<1x128xf32>
    %45 = arith.mulf %41, %44 : vector<1x128xf32>
    %46 = arith.addf %43, %45 : vector<1x128xf32>
    %47 = math.tanh %46 : vector<1x128xf32>
    %48 = arith.subf %26, %47 : vector<1x128xf32>
    %49 = arith.mulf %42, %48 : vector<1x128xf32>
    %50 = arith.addf %47, %49 : vector<1x128xf32>
    %c1_18 = arith.constant 1 : index
    %c0_19 = arith.constant 0 : index
    %51 = vector.load %arg5[%c1_18, %c0_19] : memref<8x128xf32, #tpu.memory_space<vmem>>, vector<1x128xf32>
    tpu.vector_store %arg5[%c1_18, %c0_19], %50 {strides = array<i32>} : memref<8x128xf32, #tpu.memory_space<vmem>>, vector<1x128xf32>,
    %c2 = arith.constant 2 : index
    %c0_20 = arith.constant 0 : index
    %52 = vector.load %arg1[%c2, %c0_20] : memref<8x384xf32, #tpu.memory_space<vmem>>, vector<1x384xf32>
    %c0_21 = arith.constant 0 : index
    %c0_22 = arith.constant 0 : index
    %53 = vector.load %arg3[%c0_21, %c0_22] : memref<128x384xf32, #tpu.memory_space<vmem>>, vector<128x384xf32>
    %cst_23 = arith.constant dense<0.000000e+00> : vector<1x384xf32>
    %54 = tpu.matmul %50, %53, %cst_23 {dimension_numbers = #tpu.dot_dimension_numbers<[1], [0], [0], [1], [0, 0, 1, 1], [], []>} : vector<1x128xf32>, vector<128x384xf32>, vector<1x384xf32> -> vector<1x384xf32>
    %c0_24 = arith.constant 0 : index
    %c0_25 = arith.constant 0 : index
    %55 = vector.load %arg4[%c0_24, %c0_25] : memref<1x384xf32, #tpu.memory_space<vmem>>, vector<1x384xf32>
    %56 = arith.addf %54, %55 : vector<1x384xf32>
    %57 = vector.extract_strided_slice %52 {offsets = [0, 0], sizes = [1, 256], strides = [1, 1]} : vector<1x384xf32> to vector<1x256xf32>
    %58 = vector.extract_strided_slice %56 {offsets = [0, 0], sizes = [1, 256], strides = [1, 1]} : vector<1x384xf32> to vector<1x256xf32>
    %59 = arith.addf %57, %58 : vector<1x256xf32>
    %60 = arith.negf %59 : vector<1x256xf32>
    %61 = math.exp %60 : vector<1x256xf32>
    %cst_26 = arith.constant 1.000000e+00 : f32
    %62 = vector.broadcast %cst_26 : f32 to vector<1x256xf32>
    %63 = arith.addf %62, %61 : vector<1x256xf32>
    %64 = arith.divf %62, %63 : vector<1x256xf32>
    %65 = vector.extract_strided_slice %64 {offsets = [0, 0], sizes = [1, 128], strides = [1, 1]} : vector<1x256xf32> to vector<1x128xf32>
    %66 = vector.extract_strided_slice %64 {offsets = [0, 128], sizes = [1, 128], strides = [1, 1]} : vector<1x256xf32> to vector<1x128xf32>
    %67 = vector.extract_strided_slice %52 {offsets = [0, 256], sizes = [1, 128], strides = [1, 1]} : vector<1x384xf32> to vector<1x128xf32>
    %68 = vector.extract_strided_slice %56 {offsets = [0, 256], sizes = [1, 128], strides = [1, 1]} : vector<1x384xf32> to vector<1x128xf32>
    %69 = arith.mulf %65, %68 : vector<1x128xf32>
    %70 = arith.addf %67, %69 : vector<1x128xf32>
    %71 = math.tanh %70 : vector<1x128xf32>
    %72 = arith.subf %50, %71 : vector<1x128xf32>
    %73 = arith.mulf %66, %72 : vector<1x128xf32>
    %74 = arith.addf %71, %73 : vector<1x128xf32>
    %c2_27 = arith.constant 2 : index
    %c0_28 = arith.constant 0 : index
    %75 = vector.load %arg5[%c2_27, %c0_28] : memref<8x128xf32, #tpu.memory_space<vmem>>, vector<1x128xf32>
    tpu.vector_store %arg5[%c2_27, %c0_28], %74 {strides = array<i32>} : memref<8x128xf32, #tpu.memory_space<vmem>>, vector<1x128xf32>,
    %c3 = arith.constant 3 : index
    %c0_29 = arith.constant 0 : index
    %76 = vector.load %arg1[%c3, %c0_29] : memref<8x384xf32, #tpu.memory_space<vmem>>, vector<1x384xf32>
    %c0_30 = arith.constant 0 : index
    %c0_31 = arith.constant 0 : index
    %77 = vector.load %arg3[%c0_30, %c0_31] : memref<128x384xf32, #tpu.memory_space<vmem>>, vector<128x384xf32>
    %cst_32 = arith.constant dense<0.000000e+00> : vector<1x384xf32>
    %78 = tpu.matmul %74, %77, %cst_32 {dimension_numbers = #tpu.dot_dimension_numbers<[1], [0], [0], [1], [0, 0, 1, 1], [], []>} : vector<1x128xf32>, vector<128x384xf32>, vector<1x384xf32> -> vector<1x384xf32>
    %c0_33 = arith.constant 0 : index
    %c0_34 = arith.constant 0 : index
    %79 = vector.load %arg4[%c0_33, %c0_34] : memref<1x384xf32, #tpu.memory_space<vmem>>, vector<1x384xf32>
    %80 = arith.addf %78, %79 : vector<1x384xf32>
    %81 = vector.extract_strided_slice %76 {offsets = [0, 0], sizes = [1, 256], strides = [1, 1]} : vector<1x384xf32> to vector<1x256xf32>
    %82 = vector.extract_strided_slice %80 {offsets = [0, 0], sizes = [1, 256], strides = [1, 1]} : vector<1x384xf32> to vector<1x256xf32>
    %83 = arith.addf %81, %82 : vector<1x256xf32>
    %84 = arith.negf %83 : vector<1x256xf32>
    %85 = math.exp %84 : vector<1x256xf32>
    %cst_35 = arith.constant 1.000000e+00 : f32
    %86 = vector.broadcast %cst_35 : f32 to vector<1x256xf32>
    %87 = arith.addf %86, %85 : vector<1x256xf32>
    %88 = arith.divf %86, %87 : vector<1x256xf32>
    %89 = vector.extract_strided_slice %88 {offsets = [0, 0], sizes = [1, 128], strides = [1, 1]} : vector<1x256xf32> to vector<1x128xf32>
    %90 = vector.extract_strided_slice %88 {offsets = [0, 128], sizes = [1, 128], strides = [1, 1]} : vector<1x256xf32> to vector<1x128xf32>
    %91 = vector.extract_strided_slice %76 {offsets = [0, 256], sizes = [1, 128], strides = [1, 1]} : vector<1x384xf32> to vector<1x128xf32>
    %92 = vector.extract_strided_slice %80 {offsets = [0, 256], sizes = [1, 128], strides = [1, 1]} : vector<1x384xf32> to vector<1x128xf32>
    %93 = arith.mulf %89, %92 : vector<1x128xf32>
    %94 = arith.addf %91, %93 : vector<1x128xf32>
    %95 = math.tanh %94 : vector<1x128xf32>
    %96 = arith.subf %74, %95 : vector<1x128xf32>
    %97 = arith.mulf %90, %96 : vector<1x128xf32>
    %98 = arith.addf %95, %97 : vector<1x128xf32>
    %c3_36 = arith.constant 3 : index
    %c0_37 = arith.constant 0 : index
    %99 = vector.load %arg5[%c3_36, %c0_37] : memref<8x128xf32, #tpu.memory_space<vmem>>, vector<1x128xf32>
    tpu.vector_store %arg5[%c3_36, %c0_37], %98 {strides = array<i32>} : memref<8x128xf32, #tpu.memory_space<vmem>>, vector<1x128xf32>,
    %c4 = arith.constant 4 : index
    %c0_38 = arith.constant 0 : index
    %100 = vector.load %arg1[%c4, %c0_38] : memref<8x384xf32, #tpu.memory_space<vmem>>, vector<1x384xf32>
    %c0_39 = arith.constant 0 : index
    %c0_40 = arith.constant 0 : index
    %101 = vector.load %arg3[%c0_39, %c0_40] : memref<128x384xf32, #tpu.memory_space<vmem>>, vector<128x384xf32>
    %cst_41 = arith.constant dense<0.000000e+00> : vector<1x384xf32>
    %102 = tpu.matmul %98, %101, %cst_41 {dimension_numbers = #tpu.dot_dimension_numbers<[1], [0], [0], [1], [0, 0, 1, 1], [], []>} : vector<1x128xf32>, vector<128x384xf32>, vector<1x384xf32> -> vector<1x384xf32>
    %c0_42 = arith.constant 0 : index
    %c0_43 = arith.constant 0 : index
    %103 = vector.load %arg4[%c0_42, %c0_43] : memref<1x384xf32, #tpu.memory_space<vmem>>, vector<1x384xf32>
    %104 = arith.addf %102, %103 : vector<1x384xf32>
    %105 = vector.extract_strided_slice %100 {offsets = [0, 0], sizes = [1, 256], strides = [1, 1]} : vector<1x384xf32> to vector<1x256xf32>
    %106 = vector.extract_strided_slice %104 {offsets = [0, 0], sizes = [1, 256], strides = [1, 1]} : vector<1x384xf32> to vector<1x256xf32>
    %107 = arith.addf %105, %106 : vector<1x256xf32>
    %108 = arith.negf %107 : vector<1x256xf32>
    %109 = math.exp %108 : vector<1x256xf32>
    %cst_44 = arith.constant 1.000000e+00 : f32
    %110 = vector.broadcast %cst_44 : f32 to vector<1x256xf32>
    %111 = arith.addf %110, %109 : vector<1x256xf32>
    %112 = arith.divf %110, %111 : vector<1x256xf32>
    %113 = vector.extract_strided_slice %112 {offsets = [0, 0], sizes = [1, 128], strides = [1, 1]} : vector<1x256xf32> to vector<1x128xf32>
    %114 = vector.extract_strided_slice %112 {offsets = [0, 128], sizes = [1, 128], strides = [1, 1]} : vector<1x256xf32> to vector<1x128xf32>
    %115 = vector.extract_strided_slice %100 {offsets = [0, 256], sizes = [1, 128], strides = [1, 1]} : vector<1x384xf32> to vector<1x128xf32>
    %116 = vector.extract_strided_slice %104 {offsets = [0, 256], sizes = [1, 128], strides = [1, 1]} : vector<1x384xf32> to vector<1x128xf32>
    %117 = arith.mulf %113, %116 : vector<1x128xf32>
    %118 = arith.addf %115, %117 : vector<1x128xf32>
    %119 = math.tanh %118 : vector<1x128xf32>
    %120 = arith.subf %98, %119 : vector<1x128xf32>
    %121 = arith.mulf %114, %120 : vector<1x128xf32>
    %122 = arith.addf %119, %121 : vector<1x128xf32>
    %c4_45 = arith.constant 4 : index
    %c0_46 = arith.constant 0 : index
    %123 = vector.load %arg5[%c4_45, %c0_46] : memref<8x128xf32, #tpu.memory_space<vmem>>, vector<1x128xf32>
    tpu.vector_store %arg5[%c4_45, %c0_46], %122 {strides = array<i32>} : memref<8x128xf32, #tpu.memory_space<vmem>>, vector<1x128xf32>,
    %c5 = arith.constant 5 : index
    %c0_47 = arith.constant 0 : index
    %124 = vector.load %arg1[%c5, %c0_47] : memref<8x384xf32, #tpu.memory_space<vmem>>, vector<1x384xf32>
    %c0_48 = arith.constant 0 : index
    %c0_49 = arith.constant 0 : index
    %125 = vector.load %arg3[%c0_48, %c0_49] : memref<128x384xf32, #tpu.memory_space<vmem>>, vector<128x384xf32>
    %cst_50 = arith.constant dense<0.000000e+00> : vector<1x384xf32>
    %126 = tpu.matmul %122, %125, %cst_50 {dimension_numbers = #tpu.dot_dimension_numbers<[1], [0], [0], [1], [0, 0, 1, 1], [], []>} : vector<1x128xf32>, vector<128x384xf32>, vector<1x384xf32> -> vector<1x384xf32>
    %c0_51 = arith.constant 0 : index
    %c0_52 = arith.constant 0 : index
    %127 = vector.load %arg4[%c0_51, %c0_52] : memref<1x384xf32, #tpu.memory_space<vmem>>, vector<1x384xf32>
    %128 = arith.addf %126, %127 : vector<1x384xf32>
    %129 = vector.extract_strided_slice %124 {offsets = [0, 0], sizes = [1, 256], strides = [1, 1]} : vector<1x384xf32> to vector<1x256xf32>
    %130 = vector.extract_strided_slice %128 {offsets = [0, 0], sizes = [1, 256], strides = [1, 1]} : vector<1x384xf32> to vector<1x256xf32>
    %131 = arith.addf %129, %130 : vector<1x256xf32>
    %132 = arith.negf %131 : vector<1x256xf32>
    %133 = math.exp %132 : vector<1x256xf32>
    %cst_53 = arith.constant 1.000000e+00 : f32
    %134 = vector.broadcast %cst_53 : f32 to vector<1x256xf32>
    %135 = arith.addf %134, %133 : vector<1x256xf32>
    %136 = arith.divf %134, %135 : vector<1x256xf32>
    %137 = vector.extract_strided_slice %136 {offsets = [0, 0], sizes = [1, 128], strides = [1, 1]} : vector<1x256xf32> to vector<1x128xf32>
    %138 = vector.extract_strided_slice %136 {offsets = [0, 128], sizes = [1, 128], strides = [1, 1]} : vector<1x256xf32> to vector<1x128xf32>
    %139 = vector.extract_strided_slice %124 {offsets = [0, 256], sizes = [1, 128], strides = [1, 1]} : vector<1x384xf32> to vector<1x128xf32>
    %140 = vector.extract_strided_slice %128 {offsets = [0, 256], sizes = [1, 128], strides = [1, 1]} : vector<1x384xf32> to vector<1x128xf32>
    %141 = arith.mulf %137, %140 : vector<1x128xf32>
    %142 = arith.addf %139, %141 : vector<1x128xf32>
    %143 = math.tanh %142 : vector<1x128xf32>
    %144 = arith.subf %122, %143 : vector<1x128xf32>
    %145 = arith.mulf %138, %144 : vector<1x128xf32>
    %146 = arith.addf %143, %145 : vector<1x128xf32>
    %c5_54 = arith.constant 5 : index
    %c0_55 = arith.constant 0 : index
    %147 = vector.load %arg5[%c5_54, %c0_55] : memref<8x128xf32, #tpu.memory_space<vmem>>, vector<1x128xf32>
    tpu.vector_store %arg5[%c5_54, %c0_55], %146 {strides = array<i32>} : memref<8x128xf32, #tpu.memory_space<vmem>>, vector<1x128xf32>,
    %c6 = arith.constant 6 : index
    %c0_56 = arith.constant 0 : index
    %148 = vector.load %arg1[%c6, %c0_56] : memref<8x384xf32, #tpu.memory_space<vmem>>, vector<1x384xf32>
    %c0_57 = arith.constant 0 : index
    %c0_58 = arith.constant 0 : index
    %149 = vector.load %arg3[%c0_57, %c0_58] : memref<128x384xf32, #tpu.memory_space<vmem>>, vector<128x384xf32>
    %cst_59 = arith.constant dense<0.000000e+00> : vector<1x384xf32>
    %150 = tpu.matmul %146, %149, %cst_59 {dimension_numbers = #tpu.dot_dimension_numbers<[1], [0], [0], [1], [0, 0, 1, 1], [], []>} : vector<1x128xf32>, vector<128x384xf32>, vector<1x384xf32> -> vector<1x384xf32>
    %c0_60 = arith.constant 0 : index
    %c0_61 = arith.constant 0 : index
    %151 = vector.load %arg4[%c0_60, %c0_61] : memref<1x384xf32, #tpu.memory_space<vmem>>, vector<1x384xf32>
    %152 = arith.addf %150, %151 : vector<1x384xf32>
    %153 = vector.extract_strided_slice %148 {offsets = [0, 0], sizes = [1, 256], strides = [1, 1]} : vector<1x384xf32> to vector<1x256xf32>
    %154 = vector.extract_strided_slice %152 {offsets = [0, 0], sizes = [1, 256], strides = [1, 1]} : vector<1x384xf32> to vector<1x256xf32>
    %155 = arith.addf %153, %154 : vector<1x256xf32>
    %156 = arith.negf %155 : vector<1x256xf32>
    %157 = math.exp %156 : vector<1x256xf32>
    %cst_62 = arith.constant 1.000000e+00 : f32
    %158 = vector.broadcast %cst_62 : f32 to vector<1x256xf32>
    %159 = arith.addf %158, %157 : vector<1x256xf32>
    %160 = arith.divf %158, %159 : vector<1x256xf32>
    %161 = vector.extract_strided_slice %160 {offsets = [0, 0], sizes = [1, 128], strides = [1, 1]} : vector<1x256xf32> to vector<1x128xf32>
    %162 = vector.extract_strided_slice %160 {offsets = [0, 128], sizes = [1, 128], strides = [1, 1]} : vector<1x256xf32> to vector<1x128xf32>
    %163 = vector.extract_strided_slice %148 {offsets = [0, 256], sizes = [1, 128], strides = [1, 1]} : vector<1x384xf32> to vector<1x128xf32>
    %164 = vector.extract_strided_slice %152 {offsets = [0, 256], sizes = [1, 128], strides = [1, 1]} : vector<1x384xf32> to vector<1x128xf32>
    %165 = arith.mulf %161, %164 : vector<1x128xf32>
    %166 = arith.addf %163, %165 : vector<1x128xf32>
    %167 = math.tanh %166 : vector<1x128xf32>
    %168 = arith.subf %146, %167 : vector<1x128xf32>
    %169 = arith.mulf %162, %168 : vector<1x128xf32>
    %170 = arith.addf %167, %169 : vector<1x128xf32>
    %c6_63 = arith.constant 6 : index
    %c0_64 = arith.constant 0 : index
    %171 = vector.load %arg5[%c6_63, %c0_64] : memref<8x128xf32, #tpu.memory_space<vmem>>, vector<1x128xf32>
    tpu.vector_store %arg5[%c6_63, %c0_64], %170 {strides = array<i32>} : memref<8x128xf32, #tpu.memory_space<vmem>>, vector<1x128xf32>,
    %c7 = arith.constant 7 : index
    %c0_65 = arith.constant 0 : index
    %172 = vector.load %arg1[%c7, %c0_65] : memref<8x384xf32, #tpu.memory_space<vmem>>, vector<1x384xf32>
    %c0_66 = arith.constant 0 : index
    %c0_67 = arith.constant 0 : index
    %173 = vector.load %arg3[%c0_66, %c0_67] : memref<128x384xf32, #tpu.memory_space<vmem>>, vector<128x384xf32>
    %cst_68 = arith.constant dense<0.000000e+00> : vector<1x384xf32>
    %174 = tpu.matmul %170, %173, %cst_68 {dimension_numbers = #tpu.dot_dimension_numbers<[1], [0], [0], [1], [0, 0, 1, 1], [], []>} : vector<1x128xf32>, vector<128x384xf32>, vector<1x384xf32> -> vector<1x384xf32>
    %c0_69 = arith.constant 0 : index
    %c0_70 = arith.constant 0 : index
    %175 = vector.load %arg4[%c0_69, %c0_70] : memref<1x384xf32, #tpu.memory_space<vmem>>, vector<1x384xf32>
    %176 = arith.addf %174, %175 : vector<1x384xf32>
    %177 = vector.extract_strided_slice %172 {offsets = [0, 0], sizes = [1, 256], strides = [1, 1]} : vector<1x384xf32> to vector<1x256xf32>
    %178 = vector.extract_strided_slice %176 {offsets = [0, 0], sizes = [1, 256], strides = [1, 1]} : vector<1x384xf32> to vector<1x256xf32>
    %179 = arith.addf %177, %178 : vector<1x256xf32>
    %180 = arith.negf %179 : vector<1x256xf32>
    %181 = math.exp %180 : vector<1x256xf32>
    %cst_71 = arith.constant 1.000000e+00 : f32
    %182 = vector.broadcast %cst_71 : f32 to vector<1x256xf32>
    %183 = arith.addf %182, %181 : vector<1x256xf32>
    %184 = arith.divf %182, %183 : vector<1x256xf32>
    %185 = vector.extract_strided_slice %184 {offsets = [0, 0], sizes = [1, 128], strides = [1, 1]} : vector<1x256xf32> to vector<1x128xf32>
    %186 = vector.extract_strided_slice %184 {offsets = [0, 128], sizes = [1, 128], strides = [1, 1]} : vector<1x256xf32> to vector<1x128xf32>
    %187 = vector.extract_strided_slice %172 {offsets = [0, 256], sizes = [1, 128], strides = [1, 1]} : vector<1x384xf32> to vector<1x128xf32>
    %188 = vector.extract_strided_slice %176 {offsets = [0, 256], sizes = [1, 128], strides = [1, 1]} : vector<1x384xf32> to vector<1x128xf32>
    %189 = arith.mulf %185, %188 : vector<1x128xf32>
    %190 = arith.addf %187, %189 : vector<1x128xf32>
    %191 = math.tanh %190 : vector<1x128xf32>
    %192 = arith.subf %170, %191 : vector<1x128xf32>
    %193 = arith.mulf %186, %192 : vector<1x128xf32>
    %194 = arith.addf %191, %193 : vector<1x128xf32>
    %c7_72 = arith.constant 7 : index
    %c0_73 = arith.constant 0 : index
    %195 = vector.load %arg5[%c7_72, %c0_73] : memref<8x128xf32, #tpu.memory_space<vmem>>, vector<1x128xf32>
    tpu.vector_store %arg5[%c7_72, %c0_73], %194 {strides = array<i32>} : memref<8x128xf32, #tpu.memory_space<vmem>>, vector<1x128xf32>,
    %c0_74 = arith.constant 0 : index
    %c0_75 = arith.constant 0 : index
    %196 = vector.load %arg6[%c0_74, %c0_75] : memref<1x128xf32, #tpu.memory_space<vmem>>, vector<1x128xf32>
    tpu.vector_store %arg6[%c0_74, %c0_75], %194 {strides = array<i32>} : memref<1x128xf32, #tpu.memory_space<vmem>>, vector<1x128xf32>,
    return
  }
  func.func @transform_0(%arg0: i32) -> (i32, i32) {
    %c0_i32 = arith.constant 0 : i32
    %c0_i32_0 = arith.constant 0 : i32
    return %arg0, %c0_i32 : i32, i32
  }
  func.func @transform_1(%arg0: i32) -> (i32, i32) {
    %c0_i32 = arith.constant 0 : i32
    %c0_i32_0 = arith.constant 0 : i32
    %c0_i32_1 = arith.constant 0 : i32
    return %c0_i32, %c0_i32_0 : i32, i32
  }
  func.func @transform_2(%arg0: i32) -> (i32, i32) {
    %c0_i32 = arith.constant 0 : i32
    %c0_i32_0 = arith.constant 0 : i32
    %c0_i32_1 = arith.constant 0 : i32
    return %c0_i32, %c0_i32_0 : i32, i32
  }
  func.func @transform_3(%arg0: i32) -> (i32, i32) {
    %c0_i32 = arith.constant 0 : i32
    %c0_i32_0 = arith.constant 0 : i32
    %c0_i32_1 = arith.constant 0 : i32
    return %c0_i32, %c0_i32_0 : i32, i32
  }
  func.func @transform_4(%arg0: i32) -> (i32, i32) {
    %c0_i32 = arith.constant 0 : i32
    %c0_i32_0 = arith.constant 0 : i32
    return %arg0, %c0_i32 : i32, i32
  }
}

</mosaic_0001>

<bundles_post_ra>
// kernel: tpu_custom_call.1
= control target key start
LH: loop header
LB: loop body
LE: loop exit
PB: predicated region body
PF: predicated region fallthrough
CT: control target
= control target key end

     0   :  { %9 = vsyncpa [#allocation4], 0  ;;  %s3605_s0 = inlined_call_operand.hbm [shape: f32[8,384], index: 0, kind: input, shape index: {}]   ;;  %s3606_s1 = inlined_call_operand.vmem [shape: f32[1,128], index: 1, kind: input, shape index: {}]   ;;  %s3607_s2 = inlined_call_operand.hbm [shape: f32[128,384], index: 2, kind: input, shape index: {}]   ;;  %s3608_s3 = inlined_call_operand.vmem [shape: f32[1,384], index: 3, kind: input, shape index: {}]   ;;  %s3609_s4 = inlined_call_operand.hbm [shape: f32[8,128], index: 4, kind: output, shape index: {}]  }
   0x1   :  { %10 = vsyncpa [#allocation7], 0 }
   0x2   :  { %11 = vsyncpa [#allocation5], 0  ;;  %s3036_s15 = smov [#allocation3]   ;;  %s3037_s17 = smov [#allocation6]  }
   0x3   :  { %s18_s16 = sshll.u32 %s3036_s15, 4  ;;  %s29_s18 = sshll.u32 %s3037_s17, 4  ;;  %s19_s16 = int_to_ptr.vmem [resolvable:$true] %s18_s16  ;;  %s3070_s18 = int_to_ptr.vmem [resolvable:$true] %s29_s18 }
   0x4   :  { %s2964_s21 = scalar_lea.hbm %s3605_s0, 384 }
   0x5   :  { %p2965_p0 = scmp.ne.s32.totalorder %s3605_s0, %s2964_s21  ;;  %p2968_p1 = scmp.lt.u32.totalorder %s2964_s21, %s3605_s0 }
   0x7   :  { %p2970_p2 = pnand %p2968_p1, %p2965_p0 }
   0x9   :  { %2973 = shalt.err (!%p2970_p2)
}
   0xa   :  { %s2974_s26 = scalar_lea.vmem %s19_s16, 384  ;;  %p2979_p4 = scmp.lt.s32.totalorder %s19_s16, %s19_s16 }
   0xb   :  { %p2975_p3 = scmp.ne.s32.totalorder %s19_s16, %s2974_s26  ;;  %p2980_p5 = scmp.lt.s32.totalorder %s2974_s26, %s2974_s26 }
   0xd   :  { %p2981_p6 = por %p2980_p5, %p2979_p4 }
   0xf   :  { %p2982_p7 = pnand %p2981_p6, %p2975_p3 }
  0x11   :  { %2985 = shalt.err (!%p2982_p7)
}
  0x12   :  { %21 = dma.hbm_to_vmem [thread:$0]  %s3605_s0, 384, %s19_s16, [#allocation4]  }
  0x13   :  { %s2986_s5 = scalar_lea.hbm %s3607_s2, 6144 }
  0x14   :  { %p2987_p8 = scmp.ne.s32.totalorder %s3607_s2, %s2986_s5  ;;  %p2990_p9 = scmp.lt.u32.totalorder %s2986_s5, %s3607_s2 }
  0x16   :  { %p2992_p10 = pnand %p2990_p9, %p2987_p8 }
  0x18   :  { %2995 = shalt.err (!%p2992_p10)
}
  0x19   :  { %s2996_s10 = scalar_lea.vmem %s3070_s18, 6144  ;;  %p3001_p12 = scmp.lt.s32.totalorder %s3070_s18, %s3070_s18 }
  0x1a   :  { %p2997_p11 = scmp.ne.s32.totalorder %s3070_s18, %s2996_s10  ;;  %p3002_p13 = scmp.lt.s32.totalorder %s2996_s10, %s2996_s10 }
  0x1c   :  { %p3003_p0 = por %p3002_p13, %p3001_p12 }
  0x1e   :  { %p3004_p1 = pnand %p3003_p0, %p2997_p11 }
  0x20   :  { %3007 = shalt.err (!%p3004_p1)
}
  0x21   :  { %s3038_s0 = smov 384   ;;  %s3039_s11 = smov 24  }
  0x22   :  { %35 = dma.hbm_to_vmem [thread:$0]  %s3607_s2, 6144, %s3070_s18, [#allocation7], %s3038_s0, %s3038_s0, %s3039_s11  }
  0x23   :  { %3030 = dma.done.wait [#allocation4], 384  }
  0x24   :  { %3031 = vsyncadd [#allocation4], 4294966912 }
  0x25   :  { %3032 = dma.done.wait [#allocation7], 6144  }
  0x26   :  { %3033 = vsyncadd [#allocation7], 4294961152  ;;  %v3040_v0 = vmov 0.0   ;;  %v3041_v1 = vmov 0.0|0.0   ;;  %vm3042_vm0 = vmmov 0   ;;  %v53_v2 = vld [vmem:[#allocation6 + $0x8] sm:$0xff] }
  0x27   :  { %181 = vmatprep.mubr.f32.mxu0 %v3040_v0  ;;  %2491 = vmatprep.subr.bf16.mxu1 %v3041_v1  ;;  %v56_v3 = vld [vmem:[#allocation6 + $0x20] sm:$0xff]  ;;  %v55_v6 = vld [vmem:[#allocation6 + $0x18] sm:$0xff]  ;;  %v62_v8 = vld [vmem:[#allocation6 + $0x50] sm:$0xff] }
  0x28   :  { %2211 = vmatprep.mubr.msk.f32.mxu1 %vm3042_vm0, %v3040_v0  ;;  %v52_v4 = vld [vmem:[#allocation6] sm:$0xff]  ;;  %v3105_v5 = vpack.c.bf16 %v56_v3, %v53_v2  ;;  %v59_v7 = vld [vmem:[#allocation6 + $0x38] sm:$0xff]  ;;  %v58_v11 = vld [vmem:[#allocation6 + $0x30] sm:$0xff] }
  0x29   :  { %v3107_v9 = vpack.c.bf16 %v55_v6, %v52_v4  ;;  %v3109_v10 = vpack.c.bf16 %v62_v8, %v59_v7  ;;  %v61_v12 = vld [vmem:[#allocation6 + $0x48] sm:$0xff]  ;;  %v68_v14 = vld [vmem:[#allocation6 + $0x80] sm:$0xff]  ;;  %v67_v18 = vld [vmem:[#allocation6 + $0x78] sm:$0xff] }
  0x2a   :  { %v65_v13 = vld [vmem:[#allocation6 + $0x68] sm:$0xff]  ;;  %2460 = vmatprep.subr.bf16.mxu0 %v3105_v5  ;;  %v3113_v15 = vpack.c.bf16 %v61_v12, %v58_v11  ;;  %v64_v17 = vld [vmem:[#allocation6 + $0x60] sm:$0xff]  ;;  %v71_v19 = vld [vmem:[#allocation6 + $0x98] sm:$0xff] }
  0x2b   :  { %2462 = vmatpush1.bf16.msra.mxu0 %v3107_v9  ;;  %v3116_v16 = vpack.c.bf16 %v68_v14, %v65_v13  ;;  %v74_v20 = vld [vmem:[#allocation6 + $0xb0] sm:$0xff]  ;;  %v3119_v21 = vpack.c.bf16 %v67_v18, %v64_v17  ;;  %v73_v24 = vld [vmem:[#allocation6 + $0xa8] sm:$0xff]  ;;  %v80_v26 = vld [vmem:[#allocation6 + $0xe0] sm:$0xff] }
  0x2c   :  { %2464 = vmatprep.subr.bf16.mxu0 %v3109_v10  ;;  %v3122_v22 = vpack.c.bf16 %v74_v20, %v71_v19  ;;  %v70_v23 = vld [vmem:[#allocation6 + $0x90] sm:$0xff]  ;;  %v77_v25 = vld [vmem:[#allocation6 + $0xc8] sm:$0xff]  ;;  %v48_v27 = vld [vmem:[%s3606_s1] sm:$0x1]  ;;  %v102_v19 = vlaneseq }
  0x2d   :  { %49 = vst [vmem:[#allocation2] sm:$0x1] %v48_v27  ;;  %v54_v28 = vld [vmem:[#allocation6 + $0x10] sm:$0xff]  ;;  %v57_v29 = vld [vmem:[#allocation6 + $0x28] sm:$0xff]  ;;  %v60_v30 = vld [vmem:[#allocation6 + $0x40] sm:$0xff]  ;;  %v3128_v31 = vpack.c.bf16 %v73_v24, %v70_v23  ;;  %v3133_v34 = vpack.c.bf16 %v80_v26, %v77_v25 }
  0x2e   :  { %v3130_v32 = vpack.c.bf16 %v57_v29, %v54_v28  ;;  %v63_v33 = vld [vmem:[#allocation6 + $0x58] sm:$0xff]  ;;  %v76_v35 = vld [vmem:[#allocation6 + $0xc0] sm:$0xff]  ;;  %v86_v38 = vld [vmem:[#allocation6 + $0x110] sm:$0xff]  ;;  %v103_v20 = vshrl.u32 %v102_v19, 7  ;;  %v3043_v25 = vmov 1966171168  }
  0x2f   :  { %2466 = vmatpush1.bf16.msra.mxu0 %v3113_v15  ;;  %v79_v36 = vld [vmem:[#allocation6 + $0xd8] sm:$0xff]  ;;  %v3136_v39 = vpack.c.bf16 %v63_v33, %v60_v30  ;;  %v66_v40 = vld [vmem:[#allocation6 + $0x70] sm:$0xff]  ;;  %v69_v41 = vld [vmem:[#allocation6 + $0x88] sm:$0xff]  ;;  %v262_v26 = vunpack.c.l.s4 %v3043_v25 }
  0x30   :  { %2468 = vmatprep.subr.bf16.mxu0 %v3116_v16  ;;  %v83_v37 = vld [vmem:[#allocation6 + $0xf8] sm:$0xff]  ;;  %2493 = vmatpush3.bf16.msra.mxu1 %v3130_v32  ;;  %v3140_v42 = vpack.c.bf16 %v79_v36, %v76_v35  ;;  %v82_v44 = vld [vmem:[#allocation6 + $0xf0] sm:$0xff]  ;;  %v85_v45 = vld [vmem:[#allocation6 + $0x108] sm:$0xff]  ;;  %v3146_v48 = vpack.c.bf16 %v69_v41, %v66_v40  ;;  %v3228_v23 = vsub.s32 0, %v103_v20  ;;  %v3233_v27 = vsub.s32 1, %v103_v20 }
  0x31   :  { %2494 = vmatprep.subr.bf16.mxu1 %v3041_v1  ;;  %v3143_v43 = vpack.c.bf16 %v86_v38, %v83_v37  ;;  %v89_v46 = vld [vmem:[#allocation6 + $0x128] sm:$0xff]  ;;  %v92_v47 = vld [vmem:[#allocation6 + $0x140] sm:$0xff]  ;;  %v75_v50 = vld [vmem:[#allocation6 + $0xb8] sm:$0xff]  ;;  %v3150_v51 = vpack.c.bf16 %v85_v45, %v82_v44  ;;  %v263_v29 = vunpack.c.0.s8 %v262_v26 }
  0x32   :  { %v72_v49 = vld [vmem:[#allocation6 + $0xa0] sm:$0xff]  ;;  %v3153_v52 = vpack.c.bf16 %v92_v47, %v89_v46  ;;  %v91_v54 = vld [vmem:[#allocation6 + $0x138] sm:$0xff]  ;;  %v98_v56 = vld [vmem:[#allocation6 + $0x170] sm:$0xff] }
  0x33   :  { %2470 = vmatpush1.bf16.msra.mxu0 %v3119_v21  ;;  %v88_v53 = vld [vmem:[#allocation6 + $0x120] sm:$0xff]  ;;  %v95_v55 = vld [vmem:[#allocation6 + $0x158] sm:$0xff]  ;;  %v3156_v57 = vpack.c.bf16 %v75_v50, %v72_v49  ;;  %v78_v58 = vld [vmem:[#allocation6 + $0xd0] sm:$0xff]  ;;  %v3237_v37 = vsub.s32 %v263_v29, %v103_v20 }
  0x34   :  { %2472 = vmatprep.subr.bf16.mxu0 %v3122_v22  ;;  %2496 = vmatpush3.bf16.msra.mxu1 %v3136_v39  ;;  %v81_v59 = vld [vmem:[#allocation6 + $0xe8] sm:$0xff]  ;;  %v3160_v60 = vpack.c.bf16 %v91_v54, %v88_v53  ;;  %v3163_v61 = vpack.c.bf16 %v98_v56, %v95_v55  ;;  %v94_v62 = vld [vmem:[#allocation6 + $0x150] sm:$0xff]  ;;  %v84_v3 = vld [vmem:[#allocation6 + $0x100] sm:$0xff]  ;;  %v3241_v55 = vsub.s32 2, %v103_v20 }
  0x35   :  { %2497 = vmatprep.subr.bf16.mxu1 %v3041_v1  ;;  %v97_v63 = vld [vmem:[#allocation6 + $0x168] sm:$0xff]  ;;  %v3166_v2 = vpack.c.bf16 %v81_v59, %v78_v58  ;;  %v87_v4 = vld [vmem:[#allocation6 + $0x118] sm:$0xff]  ;;  %v90_v8 = vld [vmem:[#allocation6 + $0x130] sm:$0xff] }
  0x36   :  { %v3170_v6 = vpack.c.bf16 %v97_v63, %v94_v62  ;;  %v3174_v7 = vpack.c.bf16 %v87_v4, %v84_v3  ;;  %v93_v11 = vld [vmem:[#allocation6 + $0x148] sm:$0xff]  ;;  %v3178_v12 = vld [vmem:[#allocation2] sm:$0x1]  ;;  %v99_v17 = vld [vmem:[#allocation6 + $0x178] sm:$0xff] }
  0x37   :  { %2474 = vmatpush1.bf16.msra.mxu0 %v3128_v31  ;;  %v3182_v13 = vpack.c.bf16 %v93_v11, %v90_v8  ;;  %v96_v14 = vld [vmem:[#allocation6 + $0x160] sm:$0xff]  ;;  %v51_v44 = vld [vmem:[#allocation3] ss:$8 sm:$0x7] }
  0x38   :  { %2476 = vmatprep.subr.bf16.mxu0 %v3133_v34  ;;  %2499 = vmatpush3.bf16.msra.mxu1 %v3146_v48  ;;  %v3190_v18 = vpack.c.bf16 %v99_v17, %v96_v14  ;;  %v100_v24 = vld [vmem:[%s3608_s3] sm:$0x7]  ;;  %v285_v59 = vrot.slane %v51_v44, 2 }
  0x39   :  { %2500 = vmatprep.subr.bf16.mxu1 %v3041_v1  ;;  %v105_v28 = vrot.slane %v100_v24, %v3228_v23  ;;  %v109_v30 = vrot.slane %v100_v24, %v3233_v27  ;;  %v113_v56 = vrot.slane %v100_v24, %v3241_v55 }
  0x3b   :  { %2478 = vmatpush1.bf16.msra.mxu0 %v3140_v42 }
  0x3c   :  { %2480 = vmatprep.subr.bf16.mxu0 %v3143_v43  ;;  %2502 = vmatpush3.bf16.msra.mxu1 %v3156_v57 }
  0x3d   :  { %2503 = vmatprep.subr.bf16.mxu1 %v3041_v1 }
  0x3f   :  { %2482 = vmatpush1.bf16.msra.mxu0 %v3150_v51 }
  0x40   :  { %2484 = vmatprep.subr.bf16.mxu0 %v3153_v52  ;;  %2505 = vmatpush3.bf16.msra.mxu1 %v3166_v2 }
  0x41   :  { %2506 = vmatprep.subr.bf16.mxu1 %v3041_v1 }
  0x43   :  { %2486 = vmatpush1.bf16.msra.mxu0 %v3160_v60 }
  0x44   :  { %2488 = vmatprep.subr.bf16.mxu0 %v3163_v61  ;;  %2508 = vmatpush3.bf16.msra.mxu1 %v3174_v7 }
  0x45   :  { %2509 = vmatprep.subr.bf16.mxu1 %v3041_v1 }
  0x47   :  { %2490 = vmatpush1.bf16.msra.mxu0 %v3170_v6 }
  0x48   :  { %2516 = vmatprep.subr.bf16.mxu0 %v3105_v5  ;;  %2511 = vmatpush3.bf16.msra.mxu1 %v3182_v13 }
  0x49   :  { %2512 = vmatprep.subr.bf16.mxu1 %v3041_v1 }
  0x4a   :  { %182 = vmatmul.mubr.f32.vlgmr.msra.gmra.mrb[0].mxu0 %v3178_v12 }
  0x4b   :  { %2518 = vmatpush1.bf16.msra.mxu0 %v3107_v9  ;;  %427 = vmatprep.mubr.f32.mxu0 %v3040_v0 }
  0x4c   :  { %2520 = vmatprep.subr.bf16.mxu0 %v3109_v10  ;;  %2514 = vmatpush3.bf16.msra.mxu1 %v3190_v18 }
  0x4d   :  { %2547 = vmatprep.subr.bf16.mxu1 %v3041_v1 }
  0x4f   :  { %2522 = vmatpush1.bf16.msra.mxu0 %v3113_v15  ;;  %2212 = vmatmul.mubr.f32.vlgmr.msra.gmra.mrb[0].mxu1 %v3178_v12 }
  0x50   :  { %2524 = vmatprep.subr.bf16.mxu0 %v3116_v16  ;;  %2549 = vmatpush3.bf16.msra.mxu1 %v3130_v32 }
  0x51   :  { %2246 = vmatprep.mubr.msk.f32.mxu1 %vm3042_vm0, %v3040_v0  ;;  %2550 = vmatprep.subr.bf16.mxu1 %v3041_v1 }
  0x53   :  { %2526 = vmatpush1.bf16.msra.mxu0 %v3119_v21 }
  0x54   :  { %2528 = vmatprep.subr.bf16.mxu0 %v3122_v22  ;;  %2552 = vmatpush3.bf16.msra.mxu1 %v3136_v39 }
  0x55   :  { %2553 = vmatprep.subr.bf16.mxu1 %v3041_v1 }
  0x57   :  { %2530 = vmatpush1.bf16.msra.mxu0 %v3128_v31 }
  0x58   :  { %2532 = vmatprep.subr.bf16.mxu0 %v3133_v34  ;;  %2555 = vmatpush3.bf16.msra.mxu1 %v3146_v48 }
  0x59   :  { %2556 = vmatprep.subr.bf16.mxu1 %v3041_v1 }
  0x5b   :  { %2534 = vmatpush1.bf16.msra.mxu0 %v3140_v42 }
  0x5c   :  { %2536 = vmatprep.subr.bf16.mxu0 %v3143_v43  ;;  %2558 = vmatpush3.bf16.msra.mxu1 %v3156_v57 }
  0x5d   :  { %2559 = vmatprep.subr.bf16.mxu1 %v3041_v1 }
  0x5f   :  { %2538 = vmatpush1.bf16.msra.mxu0 %v3150_v51 }
  0x60   :  { %2540 = vmatprep.subr.bf16.mxu0 %v3153_v52  ;;  %2561 = vmatpush3.bf16.msra.mxu1 %v3166_v2 }
  0x61   :  { %2562 = vmatprep.subr.bf16.mxu1 %v3041_v1 }
  0x63   :  { %2542 = vmatpush1.bf16.msra.mxu0 %v3160_v60 }
  0x64   :  { %2544 = vmatprep.subr.bf16.mxu0 %v3163_v61  ;;  %2564 = vmatpush3.bf16.msra.mxu1 %v3174_v7 }
  0x65   :  { %2565 = vmatprep.subr.bf16.mxu1 %v3041_v1 }
  0x67   :  { %2546 = vmatpush1.bf16.msra.mxu0 %v3170_v6 }
  0x68   :  { %2572 = vmatprep.subr.bf16.mxu0 %v3105_v5  ;;  %2567 = vmatpush3.bf16.msra.mxu1 %v3182_v13 }
  0x69   :  { %2568 = vmatprep.subr.bf16.mxu1 %v3041_v1 }
  0x6c   :  { %2570 = vmatpush3.bf16.msra.mxu1 %v3190_v18 }
  0x6d   :  { %2603 = vmatprep.subr.bf16.mxu1 %v3041_v1 }
 0x11d   :  { %v183_v33 = vpop.f32.mrb[0].mxu0 }
 0x11e   :  { %v184_v35 = vadd.f32 %v183_v33, %v105_v28  ;;  %v185_v36 = vpop.f32.mrb[1].mxu0 }
 0x11f   :  { %v186_v38 = vadd.f32 %v185_v36, %v109_v30 }
 0x121   :  { %v260_v40 = vcombine.low %v184_v35, %v186_v38 }
 0x122   :  { %v254_v46 = vpop.f32.mrb[0].mxu1 }
 0x123   :  { %v267_v41 = vrot.slane %v260_v40, %v3237_v37  ;;  %v2213_v49 = vpop.f32.mrb[1].mxu1  ;;  %v255_v58 = vadd.f32 %v254_v46, %v113_v56 }
 0x125   :  { %v274_v45 = vrot.slane %v267_v41, %v3237_v37 }
 0x127   :  { %v276_v47 = vadd.f32 %v274_v45, %v51_v44 }
 0x129   :  { %v2035_v50 = vmul.f32 -1.442695, %v276_v47 }
 0x12b   :  { %2916 = vpow2.f32 %v2035_v50 }
 0x135   :  { %v2917_v53 = vpop.eup %2916 }
 0x136   :  { %v280_v54 = vadd.f32 1.0, %v2917_v53 }
 0x138   :  { %2918 = vrcp.f32 %v280_v54 }
 0x142   :  { %v2919_v62 = vpop.eup %2918 }
 0x143   :  { %v283_v63 = vmul.f32 %v2919_v62, %v255_v58  ;;  %v291_v11 = vrot.slane %v2919_v62, 1 }
 0x145   :  { %v287_v3 = vadd.f32 %v285_v59, %v283_v63 }
 0x147   :  { %2920 = vtanh.f32 %v287_v3 }
 0x151   :  { %v2921_v4 = vpop.eup %2920 }
 0x152   :  { %v289_v8 = vsub.f32 %v3178_v12, %v2921_v4  ;;  %v346_v12 = vld [vmem:[%s3608_s3] sm:$0x7] }
 0x153   :  { %v351_v19 = vrot.slane %v346_v12, %v3228_v23  ;;  %v355_v20 = vrot.slane %v346_v12, %v3233_v27  ;;  %v359_v45 = vrot.slane %v346_v12, %v3241_v55 }
 0x154   :  { %v293_v14 = vmul.f32 %v291_v11, %v289_v8 }
 0x156   :  { %v3245_v17 = vadd.f32 %v2921_v4, %v293_v14 }
 0x158   :  { %295 = vst [vmem:[#allocation8] sm:$0x1] %v3245_v17  ;;  %428 = vmatmul.mubr.f32.vlgmr.msra.gmra.mrb[2].mxu0 %v3245_v17  ;;  %2247 = vmatmul.mubr.f32.vlgmr.msra.gmra.mrb[2].mxu1 %v3245_v17 }
 0x159   :  { %2574 = vmatpush1.bf16.msra.mxu0 %v3107_v9  ;;  %2605 = vmatpush3.bf16.msra.mxu1 %v3130_v32 }
 0x15a   :  { %2576 = vmatprep.subr.bf16.mxu0 %v3109_v10  ;;  %2606 = vmatprep.subr.bf16.mxu1 %v3041_v1 }
 0x15b   :  { %673 = vmatprep.mubr.f32.mxu0 %v3040_v0  ;;  %2281 = vmatprep.mubr.msk.f32.mxu1 %vm3042_vm0, %v3040_v0 }
 0x15d   :  { %2578 = vmatpush1.bf16.msra.mxu0 %v3113_v15  ;;  %2608 = vmatpush3.bf16.msra.mxu1 %v3136_v39 }
 0x15e   :  { %2580 = vmatprep.subr.bf16.mxu0 %v3116_v16  ;;  %2609 = vmatprep.subr.bf16.mxu1 %v3041_v1 }
 0x161   :  { %2582 = vmatpush1.bf16.msra.mxu0 %v3119_v21  ;;  %2611 = vmatpush3.bf16.msra.mxu1 %v3146_v48 }
 0x162   :  { %2584 = vmatprep.subr.bf16.mxu0 %v3122_v22  ;;  %2612 = vmatprep.subr.bf16.mxu1 %v3041_v1 }
 0x165   :  { %2586 = vmatpush1.bf16.msra.mxu0 %v3128_v31  ;;  %2614 = vmatpush3.bf16.msra.mxu1 %v3156_v57 }
 0x166   :  { %2588 = vmatprep.subr.bf16.mxu0 %v3133_v34  ;;  %2615 = vmatprep.subr.bf16.mxu1 %v3041_v1 }
 0x169   :  { %2590 = vmatpush1.bf16.msra.mxu0 %v3140_v42  ;;  %2617 = vmatpush3.bf16.msra.mxu1 %v3166_v2 }
 0x16a   :  { %2592 = vmatprep.subr.bf16.mxu0 %v3143_v43  ;;  %2618 = vmatprep.subr.bf16.mxu1 %v3041_v1 }
 0x16d   :  { %2594 = vmatpush1.bf16.msra.mxu0 %v3150_v51  ;;  %2620 = vmatpush3.bf16.msra.mxu1 %v3174_v7 }
 0x16e   :  { %2596 = vmatprep.subr.bf16.mxu0 %v3153_v52  ;;  %2621 = vmatprep.subr.bf16.mxu1 %v3041_v1 }
 0x171   :  { %2598 = vmatpush1.bf16.msra.mxu0 %v3160_v60  ;;  %2623 = vmatpush3.bf16.msra.mxu1 %v3182_v13 }
 0x172   :  { %2600 = vmatprep.subr.bf16.mxu0 %v3163_v61  ;;  %2624 = vmatprep.subr.bf16.mxu1 %v3041_v1 }
 0x175   :  { %2602 = vmatpush1.bf16.msra.mxu0 %v3170_v6  ;;  %2626 = vmatpush3.bf16.msra.mxu1 %v3190_v18 }
 0x176   :  { %2628 = vmatprep.subr.bf16.mxu0 %v3105_v5  ;;  %2659 = vmatprep.subr.bf16.mxu1 %v3041_v1  ;;  %v297_v5 = vld [vmem:[#allocation3 + $0x1] ss:$8 sm:$0x7] }
 0x177   :  { %v531_v47 = vrot.slane %v297_v5, 2 }
 0x22b   :  { %v429_v24 = vpop.f32.mrb[2].mxu0  ;;  %v500_v25 = vpop.f32.mrb[2].mxu1 }
 0x22c   :  { %v430_v26 = vadd.f32 %v429_v24, %v351_v19  ;;  %v431_v28 = vpop.f32.mrb[3].mxu0  ;;  %v2248_v29 = vpop.f32.mrb[3].mxu1  ;;  %v501_v46 = vadd.f32 %v500_v25, %v359_v45  ;;  %v1037_v19 = vld [vmem:[#allocation6 + $0x8] sm:$0xff]  ;;  %v1039_v25 = vld [vmem:[#allocation6 + $0x18] sm:$0xff]  ;;  %v1058_v45 = vld [vmem:[#allocation6 + $0xb0] sm:$0xff] }
 0x22d   :  { %v432_v30 = vadd.f32 %v431_v28, %v355_v20  ;;  %v1040_v20 = vld [vmem:[#allocation6 + $0x20] sm:$0xff]  ;;  %v1043_v28 = vld [vmem:[#allocation6 + $0x38] sm:$0xff] }
 0x22e   :  { %v3356_v24 = vpack.c.bf16 %v1040_v20, %v1037_v19  ;;  %v1078_v19 = vld [vmem:[#allocation6 + $0x150] sm:$0xff]  ;;  %v1081_v20 = vld [vmem:[#allocation6 + $0x168] sm:$0xff] }
 0x22f   :  { %v506_v33 = vcombine.low %v430_v26, %v432_v30  ;;  %v1042_v30 = vld [vmem:[#allocation6 + $0x30] sm:$0xff] }
 0x231   :  { %v513_v35 = vrot.slane %v506_v33, %v3237_v37 }
 0x233   :  { %v520_v36 = vrot.slane %v513_v35, %v3237_v37  ;;  %v1049_v35 = vld [vmem:[#allocation6 + $0x68] sm:$0xff] }
 0x235   :  { %v522_v38 = vadd.f32 %v520_v36, %v297_v5  ;;  %v1052_v5 = vld [vmem:[#allocation6 + $0x80] sm:$0xff] }
 0x236   :  { %v3368_v36 = vpack.c.bf16 %v1052_v5, %v1049_v35 }
 0x237   :  { %v2036_v40 = vmul.f32 -1.442695, %v522_v38  ;;  %v1048_v38 = vld [vmem:[#allocation6 + $0x60] sm:$0xff] }
 0x239   :  { %2922 = vpow2.f32 %v2036_v40  ;;  %v1051_v40 = vld [vmem:[#allocation6 + $0x78] sm:$0xff] }
 0x243   :  { %v2923_v41 = vpop.eup %2922 }
 0x244   :  { %v526_v44 = vadd.f32 1.0, %v2923_v41  ;;  %v3370_v41 = vpack.c.bf16 %v1051_v40, %v1048_v38 }
 0x246   :  { %2924 = vrcp.f32 %v526_v44  ;;  %v1055_v44 = vld [vmem:[#allocation6 + $0x98] sm:$0xff] }
 0x250   :  { %v2925_v49 = vpop.eup %2924 }
 0x251   :  { %v529_v50 = vmul.f32 %v2925_v49, %v501_v46  ;;  %v537_v58 = vrot.slane %v2925_v49, 1  ;;  %v3374_v46 = vpack.c.bf16 %v1058_v45, %v1055_v44  ;;  %v1057_v49 = vld [vmem:[#allocation6 + $0xa8] sm:$0xff] }
 0x253   :  { %v533_v53 = vadd.f32 %v531_v47, %v529_v50  ;;  %v1054_v47 = vld [vmem:[#allocation6 + $0x90] sm:$0xff]  ;;  %v1056_v50 = vld [vmem:[#allocation6 + $0xa0] sm:$0xff] }
 0x255   :  { %2926 = vtanh.f32 %v533_v53  ;;  %v3376_v53 = vpack.c.bf16 %v1057_v49, %v1054_v47 }
 0x25f   :  { %v2927_v54 = vpop.eup %2926 }
 0x260   :  { %v535_v56 = vsub.f32 %v3245_v17, %v2927_v54 }
 0x262   :  { %v539_v59 = vmul.f32 %v537_v58, %v535_v56  ;;  %v1061_v58 = vld [vmem:[#allocation6 + $0xc8] sm:$0xff] }
 0x264   :  { %v3294_v62 = vadd.f32 %v2927_v54, %v539_v59  ;;  %v1059_v54 = vld [vmem:[#allocation6 + $0xb8] sm:$0xff]  ;;  %v1064_v59 = vld [vmem:[#allocation6 + $0xe0] sm:$0xff] }
 0x265   :  { %v3379_v56 = vpack.c.bf16 %v1059_v54, %v1056_v50  ;;  %v789_v54 = vld [vmem:[#allocation3 + $0x3] ss:$8 sm:$0x7] }
 0x266   :  { %541 = vst [vmem:[#allocation8 + $0x1] sm:$0x1] %v3294_v62  ;;  %674 = vmatmul.mubr.f32.vlgmr.msra.gmra.mrb[4].mxu0 %v3294_v62  ;;  %2282 = vmatmul.mubr.f32.vlgmr.msra.gmra.mrb[4].mxu1 %v3294_v62 }
 0x267   :  { %2630 = vmatpush1.bf16.msra.mxu0 %v3107_v9  ;;  %2661 = vmatpush3.bf16.msra.mxu1 %v3130_v32  ;;  %v592_v9 = vld [vmem:[%s3608_s3] sm:$0x7] }
 0x268   :  { %2632 = vmatprep.subr.bf16.mxu0 %v3109_v10  ;;  %2662 = vmatprep.subr.bf16.mxu1 %v3041_v1  ;;  %v597_v10 = vrot.slane %v592_v9, %v3228_v23 }
 0x269   :  { %919 = vmatprep.mubr.f32.mxu0 %v3040_v0  ;;  %2316 = vmatprep.mubr.msk.f32.mxu1 %vm3042_vm0, %v3040_v0 }
 0x26b   :  { %2634 = vmatpush1.bf16.msra.mxu0 %v3113_v15  ;;  %2664 = vmatpush3.bf16.msra.mxu1 %v3136_v39  ;;  %v601_v15 = vrot.slane %v592_v9, %v3233_v27 }
 0x26c   :  { %2636 = vmatprep.subr.bf16.mxu0 %v3116_v16  ;;  %2665 = vmatprep.subr.bf16.mxu1 %v3041_v1 }
 0x26f   :  { %2638 = vmatpush1.bf16.msra.mxu0 %v3119_v21  ;;  %2667 = vmatpush3.bf16.msra.mxu1 %v3146_v48 }
 0x270   :  { %2640 = vmatprep.subr.bf16.mxu0 %v3122_v22  ;;  %2668 = vmatprep.subr.bf16.mxu1 %v3041_v1 }
 0x273   :  { %2642 = vmatpush1.bf16.msra.mxu0 %v3128_v31  ;;  %2670 = vmatpush3.bf16.msra.mxu1 %v3156_v57 }
 0x274   :  { %2644 = vmatprep.subr.bf16.mxu0 %v3133_v34  ;;  %2671 = vmatprep.subr.bf16.mxu1 %v3041_v1 }
 0x277   :  { %2646 = vmatpush1.bf16.msra.mxu0 %v3140_v42  ;;  %2673 = vmatpush3.bf16.msra.mxu1 %v3166_v2 }
 0x278   :  { %2648 = vmatprep.subr.bf16.mxu0 %v3143_v43  ;;  %2674 = vmatprep.subr.bf16.mxu1 %v3041_v1 }
 0x27b   :  { %2650 = vmatpush1.bf16.msra.mxu0 %v3150_v51  ;;  %2676 = vmatpush3.bf16.msra.mxu1 %v3174_v7  ;;  %v605_v7 = vrot.slane %v592_v9, %v3241_v55  ;;  %v1060_v9 = vld [vmem:[#allocation6 + $0xc0] sm:$0xff] }
 0x27c   :  { %2652 = vmatprep.subr.bf16.mxu0 %v3153_v52  ;;  %2677 = vmatprep.subr.bf16.mxu1 %v3041_v1  ;;  %v543_v52 = vld [vmem:[#allocation3 + $0x2] ss:$8 sm:$0x7] }
 0x27f   :  { %2654 = vmatpush1.bf16.msra.mxu0 %v3160_v60  ;;  %2679 = vmatpush3.bf16.msra.mxu1 %v3182_v13 }
 0x280   :  { %2656 = vmatprep.subr.bf16.mxu0 %v3163_v61  ;;  %2680 = vmatprep.subr.bf16.mxu1 %v3041_v1 }
 0x283   :  { %2658 = vmatpush1.bf16.msra.mxu0 %v3170_v6  ;;  %2682 = vmatpush3.bf16.msra.mxu1 %v3190_v18  ;;  %v777_v18 = vrot.slane %v543_v52, 2 }
 0x284   :  { %2715 = vmatprep.subr.bf16.mxu1 %v3041_v1  ;;  %2684 = vmatprep.subr.bf16.mxu0 %v3356_v24 }
 0x339   :  { %v675_v16 = vpop.f32.mrb[4].mxu0  ;;  %v746_v21 = vpop.f32.mrb[4].mxu1 }
 0x33a   :  { %v676_v22 = vadd.f32 %v675_v16, %v597_v10  ;;  %v677_v31 = vpop.f32.mrb[5].mxu0  ;;  %v2283_v34 = vpop.f32.mrb[5].mxu1  ;;  %v747_v13 = vadd.f32 %v746_v21, %v605_v7  ;;  %v1063_v10 = vld [vmem:[#allocation6 + $0xd8] sm:$0xff]  ;;  %v1065_v21 = vld [vmem:[#allocation6 + $0xe8] sm:$0xff] }
 0x33b   :  { %v678_v42 = vadd.f32 %v677_v31, %v601_v15  ;;  %v1062_v15 = vld [vmem:[#allocation6 + $0xd0] sm:$0xff]  ;;  %v3386_v16 = vpack.c.bf16 %v1063_v10, %v1060_v9 }
 0x33c   :  { %v1070_v31 = vld [vmem:[#allocation6 + $0x110] sm:$0xff]  ;;  %v3389_v34 = vpack.c.bf16 %v1065_v21, %v1062_v15 }
 0x33d   :  { %v752_v43 = vcombine.low %v676_v22, %v678_v42  ;;  %v1067_v22 = vld [vmem:[#allocation6 + $0xf8] sm:$0xff] }
 0x33e   :  { %v3391_v42 = vpack.c.bf16 %v1070_v31, %v1067_v22  ;;  %v1023_v31 = vrot.slane %v789_v54, 2 }
 0x33f   :  { %v759_v51 = vrot.slane %v752_v43, %v3237_v37  ;;  %v1066_v43 = vld [vmem:[#allocation6 + $0xf0] sm:$0xff] }
 0x341   :  { %v766_v57 = vrot.slane %v759_v51, %v3237_v37  ;;  %v1069_v51 = vld [vmem:[#allocation6 + $0x108] sm:$0xff] }
 0x343   :  { %v768_v60 = vadd.f32 %v766_v57, %v543_v52  ;;  %v1068_v52 = vld [vmem:[#allocation6 + $0x100] sm:$0xff]  ;;  %v3394_v57 = vpack.c.bf16 %v1069_v51, %v1066_v43 }
 0x345   :  { %v2037_v61 = vmul.f32 -1.442695, %v768_v60  ;;  %v1071_v60 = vld [vmem:[#allocation6 + $0x118] sm:$0xff] }
 0x347   :  { %2928 = vpow2.f32 %v2037_v61  ;;  %v1073_v61 = vld [vmem:[#allocation6 + $0x128] sm:$0xff] }
 0x351   :  { %v2929_v2 = vpop.eup %2928 }
 0x352   :  { %v772_v6 = vadd.f32 1.0, %v2929_v2  ;;  %v1076_v2 = vld [vmem:[#allocation6 + $0x140] sm:$0xff] }
 0x353   :  { %v3400_v7 = vpack.c.bf16 %v1076_v2, %v1073_v61 }
 0x354   :  { %2930 = vrcp.f32 %v772_v6  ;;  %v3398_v6 = vpack.c.bf16 %v1071_v60, %v1068_v52 }
 0x35e   :  { %v2931_v63 = vpop.eup %2930 }
 0x35f   :  { %v775_v3 = vmul.f32 %v2931_v63, %v747_v13  ;;  %v783_v14 = vrot.slane %v2931_v63, 1  ;;  %v1072_v13 = vld [vmem:[#allocation6 + $0x120] sm:$0xff]  ;;  %v1074_v63 = vld [vmem:[#allocation6 + $0x130] sm:$0xff] }
 0x361   :  { %v779_v4 = vadd.f32 %v777_v18, %v775_v3  ;;  %v1075_v18 = vld [vmem:[#allocation6 + $0x138] sm:$0xff]  ;;  %v1077_v3 = vld [vmem:[#allocation6 + $0x148] sm:$0xff] }
 0x363   :  { %2932 = vtanh.f32 %v779_v4  ;;  %v1079_v4 = vld [vmem:[#allocation6 + $0x158] sm:$0xff] }
 0x36d   :  { %v2933_v8 = vpop.eup %2932 }
 0x36e   :  { %v781_v11 = vsub.f32 %v3294_v62, %v2933_v8  ;;  %v3383_v62 = vpack.c.bf16 %v1064_v59, %v1061_v58 }
 0x370   :  { %v785_v17 = vmul.f32 %v783_v14, %v781_v11  ;;  %v3404_v11 = vpack.c.bf16 %v1075_v18, %v1072_v13  ;;  %v3408_v14 = vpack.c.bf16 %v1077_v3, %v1074_v63  ;;  %v1287_v63 = vld [vmem:[#allocation6 + $0x28] sm:$0xff] }
 0x372   :  { %v3342_v12 = vadd.f32 %v2933_v8, %v785_v17  ;;  %v1082_v8 = vld [vmem:[#allocation6 + $0x170] sm:$0xff] }
 0x373   :  { %v3410_v17 = vpack.c.bf16 %v1082_v8, %v1079_v4  ;;  %v1290_v4 = vld [vmem:[#allocation6 + $0x40] sm:$0xff]  ;;  %v1293_v8 = vld [vmem:[#allocation6 + $0x58] sm:$0xff] }
 0x374   :  { %787 = vst [vmem:[#allocation8 + $0x2] sm:$0x1] %v3342_v12  ;;  %920 = vmatmul.mubr.f32.vlgmr.msra.gmra.mrb[6].mxu0 %v3342_v12  ;;  %2317 = vmatmul.mubr.f32.vlgmr.msra.gmra.mrb[6].mxu1 %v3342_v12 }
 0x375   :  { %2717 = vmatpush3.bf16.msra.mxu1 %v3130_v32  ;;  %1165 = vmatprep.mubr.f32.mxu0 %v3040_v0  ;;  %v1036_v32 = vld [vmem:[#allocation6] sm:$0xff] }
 0x376   :  { %2718 = vmatprep.subr.bf16.mxu1 %v3041_v1  ;;  %2351 = vmatprep.mubr.msk.f32.mxu1 %vm3042_vm0, %v3040_v0  ;;  %v3358_v26 = vpack.c.bf16 %v1039_v25, %v1036_v32  ;;  %v1080_v32 = vld [vmem:[#allocation6 + $0x160] sm:$0xff]  ;;  %v1083_v25 = vld [vmem:[#allocation6 + $0x178] sm:$0xff] }
 0x378   :  { %2686 = vmatpush1.bf16.msra.mxu0 %v3358_v26 }
 0x379   :  { %2720 = vmatpush3.bf16.msra.mxu1 %v3136_v39  ;;  %v1046_v39 = vld [vmem:[#allocation6 + $0x50] sm:$0xff] }
 0x37a   :  { %2721 = vmatprep.subr.bf16.mxu1 %v3041_v1  ;;  %v3362_v29 = vpack.c.bf16 %v1046_v39, %v1043_v28  ;;  %v3414_v28 = vpack.c.bf16 %v1081_v20, %v1078_v19  ;;  %v3418_v39 = vpack.c.bf16 %v1083_v25, %v1080_v32  ;;  %v3462_v19 = vpack.c.bf16 %v1293_v8, %v1290_v4  ;;  %v1296_v20 = vld [vmem:[#allocation6 + $0x70] sm:$0xff]  ;;  %v1299_v32 = vld [vmem:[#allocation6 + $0x88] sm:$0xff] }
 0x37b   :  { %v3466_v25 = vpack.c.bf16 %v1299_v32, %v1296_v20 }
 0x37c   :  { %2688 = vmatprep.subr.bf16.mxu0 %v3362_v29 }
 0x37d   :  { %2723 = vmatpush3.bf16.msra.mxu1 %v3146_v48  ;;  %v1045_v48 = vld [vmem:[#allocation6 + $0x48] sm:$0xff] }
 0x37e   :  { %2724 = vmatprep.subr.bf16.mxu1 %v3041_v1  ;;  %v3364_v33 = vpack.c.bf16 %v1045_v48, %v1042_v30  ;;  %v838_v30 = vld [vmem:[%s3608_s3] sm:$0x7] }
 0x37f   :  { %v843_v48 = vrot.slane %v838_v30, %v3228_v23  ;;  %v847_v35 = vrot.slane %v838_v30, %v3233_v27  ;;  %v851_v21 = vrot.slane %v838_v30, %v3241_v55  ;;  %v1084_v30 = vld [vmem:[%s3608_s3] sm:$0x7] }
 0x380   :  { %2690 = vmatpush1.bf16.msra.mxu0 %v3364_v33 }
 0x381   :  { %2692 = vmatprep.subr.bf16.mxu0 %v3368_v36  ;;  %2726 = vmatpush3.bf16.msra.mxu1 %v3379_v56 }
 0x382   :  { %2727 = vmatprep.subr.bf16.mxu1 %v3041_v1 }
 0x384   :  { %2694 = vmatpush1.bf16.msra.mxu0 %v3370_v41 }
 0x385   :  { %2696 = vmatprep.subr.bf16.mxu0 %v3374_v46  ;;  %2729 = vmatpush3.bf16.msra.mxu1 %v3389_v34 }
 0x386   :  { %2730 = vmatprep.subr.bf16.mxu1 %v3041_v1 }
 0x388   :  { %2698 = vmatpush1.bf16.msra.mxu0 %v3376_v53 }
 0x389   :  { %2700 = vmatprep.subr.bf16.mxu0 %v3383_v62  ;;  %2732 = vmatpush3.bf16.msra.mxu1 %v3398_v6 }
 0x38a   :  { %2733 = vmatprep.subr.bf16.mxu1 %v3041_v1 }
 0x38c   :  { %2702 = vmatpush1.bf16.msra.mxu0 %v3386_v16 }
 0x38d   :  { %2704 = vmatprep.subr.bf16.mxu0 %v3391_v42  ;;  %2735 = vmatpush3.bf16.msra.mxu1 %v3408_v14 }
 0x38e   :  { %2736 = vmatprep.subr.bf16.mxu1 %v3041_v1 }
 0x390   :  { %2706 = vmatpush1.bf16.msra.mxu0 %v3394_v57 }
 0x391   :  { %2708 = vmatprep.subr.bf16.mxu0 %v3400_v7  ;;  %2738 = vmatpush3.bf16.msra.mxu1 %v3418_v39 }
 0x392   :  { %2771 = vmatprep.subr.bf16.mxu1 %v3041_v1 }
 0x394   :  { %2710 = vmatpush1.bf16.msra.mxu0 %v3404_v11 }
 0x395   :  { %2712 = vmatprep.subr.bf16.mxu0 %v3410_v17 }
 0x398   :  { %2714 = vmatpush1.bf16.msra.mxu0 %v3414_v28 }
 0x399   :  { %2740 = vmatprep.subr.bf16.mxu0 %v3356_v24 }
 0x447   :  { %v921_v5 = vpop.f32.mrb[6].mxu0  ;;  %v992_v38 = vpop.f32.mrb[6].mxu1 }
 0x448   :  { %v922_v40 = vadd.f32 %v921_v5, %v843_v48  ;;  %v923_v44 = vpop.f32.mrb[7].mxu0  ;;  %v2318_v45 = vpop.f32.mrb[7].mxu1  ;;  %v993_v22 = vadd.f32 %v992_v38, %v851_v21  ;;  %v1089_v48 = vrot.slane %v1084_v30, %v3228_v23  ;;  %v1097_v21 = vrot.slane %v1084_v30, %v3241_v55 }
 0x449   :  { %v924_v47 = vadd.f32 %v923_v44, %v847_v35  ;;  %v1093_v35 = vrot.slane %v1084_v30, %v3233_v27 }
 0x44b   :  { %v998_v49 = vcombine.low %v922_v40, %v924_v47 }
 0x44d   :  { %v1005_v50 = vrot.slane %v998_v49, %v3237_v37 }
 0x44f   :  { %v1012_v58 = vrot.slane %v1005_v50, %v3237_v37 }
 0x451   :  { %v1014_v59 = vadd.f32 %v1012_v58, %v789_v54  ;;  %v1035_v54 = vld [vmem:[#allocation3 + $0x4] ss:$8 sm:$0x7] }
 0x453   :  { %v2038_v9 = vmul.f32 -1.442695, %v1014_v59 }
 0x455   :  { %2934 = vpow2.f32 %v2038_v9 }
 0x45f   :  { %v2935_v10 = vpop.eup %2934 }
 0x460   :  { %v1018_v15 = vadd.f32 1.0, %v2935_v10 }
 0x462   :  { %2936 = vrcp.f32 %v1018_v15 }
 0x46c   :  { %v2937_v43 = vpop.eup %2936 }
 0x46d   :  { %v1021_v51 = vmul.f32 %v2937_v43, %v993_v22  ;;  %v1029_v2 = vrot.slane %v2937_v43, 1 }
 0x46f   :  { %v1025_v52 = vadd.f32 %v1023_v31, %v1021_v51  ;;  %v1269_v31 = vrot.slane %v1035_v54, 2 }
 0x471   :  { %2938 = vtanh.f32 %v1025_v52 }
 0x47b   :  { %v2939_v60 = vpop.eup %2938 }
 0x47c   :  { %v1027_v61 = vsub.f32 %v3342_v12, %v2939_v60  ;;  %v1284_v12 = vld [vmem:[#allocation6 + $0x10] sm:$0xff] }
 0x47d   :  { %v3458_v3 = vpack.c.bf16 %v1287_v63, %v1284_v12 }
 0x47e   :  { %v1031_v13 = vmul.f32 %v1029_v2, %v1027_v61 }
 0x480   :  { %v3434_v18 = vadd.f32 %v2939_v60, %v1031_v13 }
 0x482   :  { %1033 = vst [vmem:[#allocation8 + $0x3] sm:$0x1] %v3434_v18  ;;  %1166 = vmatmul.mubr.f32.vlgmr.msra.gmra.mrb[8].mxu0 %v3434_v18  ;;  %2352 = vmatmul.mubr.f32.vlgmr.msra.gmra.mrb[8].mxu1 %v3434_v18 }
 0x483   :  { %2742 = vmatpush1.bf16.msra.mxu0 %v3358_v26  ;;  %1411 = vmatprep.mubr.f32.mxu0 %v3040_v0 }
 0x484   :  { %2744 = vmatprep.subr.bf16.mxu0 %v3362_v29  ;;  %2386 = vmatprep.mubr.msk.f32.mxu1 %vm3042_vm0, %v3040_v0 }
 0x485   :  { %2773 = vmatpush3.bf16.msra.mxu1 %v3458_v3 }
 0x486   :  { %2774 = vmatprep.subr.bf16.mxu1 %v3041_v1 }
 0x487   :  { %2746 = vmatpush1.bf16.msra.mxu0 %v3364_v33 }
 0x488   :  { %2748 = vmatprep.subr.bf16.mxu0 %v3368_v36 }
 0x489   :  { %2776 = vmatpush3.bf16.msra.mxu1 %v3462_v19 }
 0x48a   :  { %2777 = vmatprep.subr.bf16.mxu1 %v3041_v1 }
 0x48b   :  { %2750 = vmatpush1.bf16.msra.mxu0 %v3370_v41 }
 0x48c   :  { %2752 = vmatprep.subr.bf16.mxu0 %v3374_v46 }
 0x48d   :  { %2779 = vmatpush3.bf16.msra.mxu1 %v3466_v25 }
 0x48e   :  { %2780 = vmatprep.subr.bf16.mxu1 %v3041_v1 }
 0x48f   :  { %2754 = vmatpush1.bf16.msra.mxu0 %v3376_v53 }
 0x490   :  { %2756 = vmatprep.subr.bf16.mxu0 %v3383_v62 }
 0x491   :  { %2782 = vmatpush3.bf16.msra.mxu1 %v3379_v56 }
 0x492   :  { %2783 = vmatprep.subr.bf16.mxu1 %v3041_v1 }
 0x493   :  { %2758 = vmatpush1.bf16.msra.mxu0 %v3386_v16 }
 0x494   :  { %2760 = vmatprep.subr.bf16.mxu0 %v3391_v42 }
 0x495   :  { %2785 = vmatpush3.bf16.msra.mxu1 %v3389_v34 }
 0x496   :  { %2786 = vmatprep.subr.bf16.mxu1 %v3041_v1 }
 0x497   :  { %2762 = vmatpush1.bf16.msra.mxu0 %v3394_v57 }
 0x498   :  { %2764 = vmatprep.subr.bf16.mxu0 %v3400_v7 }
 0x499   :  { %2788 = vmatpush3.bf16.msra.mxu1 %v3398_v6 }
 0x49a   :  { %2789 = vmatprep.subr.bf16.mxu1 %v3041_v1 }
 0x49b   :  { %2766 = vmatpush1.bf16.msra.mxu0 %v3404_v11 }
 0x49c   :  { %2768 = vmatprep.subr.bf16.mxu0 %v3410_v17 }
 0x49d   :  { %2791 = vmatpush3.bf16.msra.mxu1 %v3408_v14 }
 0x49e   :  { %2792 = vmatprep.subr.bf16.mxu1 %v3041_v1 }
 0x49f   :  { %2770 = vmatpush1.bf16.msra.mxu0 %v3414_v28 }
 0x4a0   :  { %2796 = vmatprep.subr.bf16.mxu0 %v3356_v24 }
 0x4a1   :  { %2794 = vmatpush3.bf16.msra.mxu1 %v3418_v39 }
 0x4a2   :  { %2827 = vmatprep.subr.bf16.mxu1 %v3041_v1 }
 0x555   :  { %v1167_v5 = vpop.f32.mrb[8].mxu0  ;;  %v1238_v38 = vpop.f32.mrb[8].mxu1 }
 0x556   :  { %v1168_v40 = vadd.f32 %v1167_v5, %v1089_v48  ;;  %v1169_v44 = vpop.f32.mrb[9].mxu0  ;;  %v2353_v45 = vpop.f32.mrb[9].mxu1  ;;  %v1239_v22 = vadd.f32 %v1238_v38, %v1097_v21 }
 0x557   :  { %v1170_v47 = vadd.f32 %v1169_v44, %v1093_v35 }
 0x559   :  { %v1244_v49 = vcombine.low %v1168_v40, %v1170_v47 }
 0x55b   :  { %v1251_v50 = vrot.slane %v1244_v49, %v3237_v37 }
 0x55d   :  { %v1258_v58 = vrot.slane %v1251_v50, %v3237_v37 }
 0x55f   :  { %v1260_v59 = vadd.f32 %v1258_v58, %v1035_v54 }
 0x561   :  { %v2039_v9 = vmul.f32 -1.442695, %v1260_v59 }
 0x563   :  { %2940 = vpow2.f32 %v2039_v9 }
 0x56d   :  { %v2941_v10 = vpop.eup %2940 }
 0x56e   :  { %v1264_v15 = vadd.f32 1.0, %v2941_v10 }
 0x570   :  { %2942 = vrcp.f32 %v1264_v15 }
 0x57a   :  { %v2943_v43 = vpop.eup %2942 }
 0x57b   :  { %v1267_v51 = vmul.f32 %v2943_v43, %v1239_v22  ;;  %v1275_v2 = vrot.slane %v2943_v43, 1 }
 0x57d   :  { %v1271_v52 = vadd.f32 %v1269_v31, %v1267_v51 }
 0x57f   :  { %2944 = vtanh.f32 %v1271_v52 }
 0x589   :  { %v2945_v60 = vpop.eup %2944 }
 0x58a   :  { %v1273_v61 = vsub.f32 %v3434_v18, %v2945_v60  ;;  %v1330_v18 = vld [vmem:[%s3608_s3] sm:$0x7] }
 0x58b   :  { %v1335_v63 = vrot.slane %v1330_v18, %v3228_v23  ;;  %v1339_v4 = vrot.slane %v1330_v18, %v3233_v27  ;;  %v1343_v50 = vrot.slane %v1330_v18, %v3241_v55 }
 0x58c   :  { %v1277_v13 = vmul.f32 %v1275_v2, %v1273_v61  ;;  %v1822_v61 = vld [vmem:[%s3608_s3] sm:$0x7] }
 0x58d   :  { %v1827_v2 = vrot.slane %v1822_v61, %v3228_v23 }
 0x58e   :  { %v3489_v12 = vadd.f32 %v2945_v60, %v1277_v13  ;;  %v1831_v13 = vrot.slane %v1822_v61, %v3233_v27 }
 0x590   :  { %1279 = vst [vmem:[#allocation8 + $0x4] sm:$0x1] %v3489_v12  ;;  %1412 = vmatmul.mubr.f32.vlgmr.msra.gmra.mrb[10].mxu0 %v3489_v12  ;;  %2387 = vmatmul.mubr.f32.vlgmr.msra.gmra.mrb[10].mxu1 %v3489_v12 }
 0x591   :  { %2798 = vmatpush1.bf16.msra.mxu0 %v3358_v26  ;;  %2829 = vmatpush3.bf16.msra.mxu1 %v3458_v3 }
 0x592   :  { %2800 = vmatprep.subr.bf16.mxu0 %v3362_v29  ;;  %2830 = vmatprep.subr.bf16.mxu1 %v3041_v1 }
 0x593   :  { %1657 = vmatprep.mubr.f32.mxu0 %v3040_v0  ;;  %2421 = vmatprep.mubr.msk.f32.mxu1 %vm3042_vm0, %v3040_v0 }
 0x595   :  { %2802 = vmatpush1.bf16.msra.mxu0 %v3364_v33  ;;  %2832 = vmatpush3.bf16.msra.mxu1 %v3462_v19 }
 0x596   :  { %2804 = vmatprep.subr.bf16.mxu0 %v3368_v36  ;;  %2833 = vmatprep.subr.bf16.mxu1 %v3041_v1 }
 0x599   :  { %2806 = vmatpush1.bf16.msra.mxu0 %v3370_v41  ;;  %2835 = vmatpush3.bf16.msra.mxu1 %v3466_v25 }
 0x59a   :  { %2808 = vmatprep.subr.bf16.mxu0 %v3374_v46  ;;  %2836 = vmatprep.subr.bf16.mxu1 %v3041_v1 }
 0x59d   :  { %2810 = vmatpush1.bf16.msra.mxu0 %v3376_v53  ;;  %2838 = vmatpush3.bf16.msra.mxu1 %v3379_v56 }
 0x59e   :  { %2812 = vmatprep.subr.bf16.mxu0 %v3383_v62  ;;  %2839 = vmatprep.subr.bf16.mxu1 %v3041_v1 }
 0x5a1   :  { %2814 = vmatpush1.bf16.msra.mxu0 %v3386_v16  ;;  %2841 = vmatpush3.bf16.msra.mxu1 %v3389_v34 }
 0x5a2   :  { %2816 = vmatprep.subr.bf16.mxu0 %v3391_v42  ;;  %2842 = vmatprep.subr.bf16.mxu1 %v3041_v1 }
 0x5a5   :  { %2818 = vmatpush1.bf16.msra.mxu0 %v3394_v57  ;;  %2844 = vmatpush3.bf16.msra.mxu1 %v3398_v6 }
 0x5a6   :  { %2820 = vmatprep.subr.bf16.mxu0 %v3400_v7  ;;  %2845 = vmatprep.subr.bf16.mxu1 %v3041_v1 }
 0x5a9   :  { %2822 = vmatpush1.bf16.msra.mxu0 %v3404_v11  ;;  %2847 = vmatpush3.bf16.msra.mxu1 %v3408_v14 }
 0x5aa   :  { %2824 = vmatprep.subr.bf16.mxu0 %v3410_v17  ;;  %2848 = vmatprep.subr.bf16.mxu1 %v3041_v1 }
 0x5ad   :  { %2826 = vmatpush1.bf16.msra.mxu0 %v3414_v28  ;;  %2850 = vmatpush3.bf16.msra.mxu1 %v3418_v39 }
 0x5ae   :  { %2852 = vmatprep.subr.bf16.mxu0 %v3356_v24  ;;  %2883 = vmatprep.subr.bf16.mxu1 %v3041_v1  ;;  %v1281_v24 = vld [vmem:[#allocation3 + $0x5] ss:$8 sm:$0x7] }
 0x5af   :  { %v1515_v58 = vrot.slane %v1281_v24, 2 }
 0x663   :  { %v1413_v8 = vpop.f32.mrb[10].mxu0  ;;  %v1484_v20 = vpop.f32.mrb[10].mxu1 }
 0x664   :  { %v1414_v32 = vadd.f32 %v1413_v8, %v1335_v63  ;;  %v1415_v30 = vpop.f32.mrb[11].mxu0  ;;  %v2388_v48 = vpop.f32.mrb[11].mxu1  ;;  %v1485_v54 = vadd.f32 %v1484_v20, %v1343_v50 }
 0x665   :  { %v1416_v35 = vadd.f32 %v1415_v30, %v1339_v4  ;;  %v1773_v48 = vld [vmem:[#allocation3 + $0x7] ss:$8 sm:$0x7] }
 0x667   :  { %v1490_v5 = vcombine.low %v1414_v32, %v1416_v35 }
 0x669   :  { %v1497_v38 = vrot.slane %v1490_v5, %v3237_v37 }
 0x66b   :  { %v1504_v40 = vrot.slane %v1497_v38, %v3237_v37 }
 0x66d   :  { %v1506_v44 = vadd.f32 %v1504_v40, %v1281_v24 }
 0x66f   :  { %v2040_v45 = vmul.f32 -1.442695, %v1506_v44  ;;  %v2007_v44 = vrot.slane %v1773_v48, 2 }
 0x671   :  { %2946 = vpow2.f32 %v2040_v45 }
 0x67b   :  { %v2947_v47 = vpop.eup %2946 }
 0x67c   :  { %v1510_v49 = vadd.f32 1.0, %v2947_v47 }
 0x67e   :  { %2948 = vrcp.f32 %v1510_v49 }
 0x688   :  { %v2949_v59 = vpop.eup %2948 }
 0x689   :  { %v1513_v9 = vmul.f32 %v2949_v59, %v1485_v54  ;;  %v1521_v22 = vrot.slane %v2949_v59, 1 }
 0x68b   :  { %v1517_v10 = vadd.f32 %v1515_v58, %v1513_v9 }
 0x68d   :  { %2950 = vtanh.f32 %v1517_v10 }
 0x697   :  { %v2951_v15 = vpop.eup %2950 }
 0x698   :  { %v1519_v21 = vsub.f32 %v3489_v12, %v2951_v15 }
 0x69a   :  { %v1523_v31 = vmul.f32 %v1521_v22, %v1519_v21 }
 0x69c   :  { %v3538_v43 = vadd.f32 %v2951_v15, %v1523_v31 }
 0x69e   :  { %1525 = vst [vmem:[#allocation8 + $0x5] sm:$0x1] %v3538_v43  ;;  %1658 = vmatmul.mubr.f32.vlgmr.msra.gmra.mrb[12].mxu0 %v3538_v43  ;;  %2422 = vmatmul.mubr.f32.vlgmr.msra.gmra.mrb[12].mxu1 %v3538_v43 }
 0x69f   :  { %2854 = vmatpush1.bf16.msra.mxu0 %v3358_v26  ;;  %2885 = vmatpush3.bf16.msra.mxu1 %v3458_v3 }
 0x6a0   :  { %2856 = vmatprep.subr.bf16.mxu0 %v3362_v29  ;;  %2886 = vmatprep.subr.bf16.mxu1 %v3041_v1 }
 0x6a1   :  { %1903 = vmatprep.mubr.f32.mxu0 %v3040_v0  ;;  %2456 = vmatprep.mubr.msk.f32.mxu1 %vm3042_vm0, %v3040_v0  ;;  %v1576_v0 = vld [vmem:[%s3608_s3] sm:$0x7]  ;;  %s3044_s3 = smov [#allocation8]  }
 0x6a2   :  { %v1581_v26 = vrot.slane %v1576_v0, %v3228_v23  ;;  %v1585_v29 = vrot.slane %v1576_v0, %v3233_v27  ;;  %v1835_v23 = vrot.slane %v1822_v61, %v3241_v55  ;;  %s2025_s30 = sshll.u32 %s3044_s3, 4  ;;  %s2026_s30 = int_to_ptr.vmem [resolvable:$true] %s2025_s30 }
 0x6a3   :  { %2858 = vmatpush1.bf16.msra.mxu0 %v3364_v33  ;;  %2888 = vmatpush3.bf16.msra.mxu1 %v3462_v19  ;;  %s3008_s5 = scalar_lea.vmem %s2026_s30, 128  ;;  %p3013_p3 = scmp.lt.s32.totalorder %s2026_s30, %s2026_s30 }
 0x6a4   :  { %2860 = vmatprep.subr.bf16.mxu0 %v3368_v36  ;;  %2889 = vmatprep.subr.bf16.mxu1 %v3041_v1  ;;  %p3009_p2 = scmp.ne.s32.totalorder %s2026_s30, %s3008_s5  ;;  %p3014_p4 = scmp.lt.s32.totalorder %s3008_s5, %s3008_s5 }
 0x6a6   :  { %p3015_p5 = por %p3014_p4, %p3013_p3 }
 0x6a7   :  { %2862 = vmatpush1.bf16.msra.mxu0 %v3370_v41  ;;  %2891 = vmatpush3.bf16.msra.mxu1 %v3466_v25 }
 0x6a8   :  { %2864 = vmatprep.subr.bf16.mxu0 %v3374_v46  ;;  %2892 = vmatprep.subr.bf16.mxu1 %v3041_v1  ;;  %p3016_p6 = pnand %p3015_p5, %p3009_p2 }
 0x6ab   :  { %2866 = vmatpush1.bf16.msra.mxu0 %v3376_v53  ;;  %2894 = vmatpush3.bf16.msra.mxu1 %v3379_v56 }
 0x6ac   :  { %2868 = vmatprep.subr.bf16.mxu0 %v3383_v62  ;;  %2895 = vmatprep.subr.bf16.mxu1 %v3041_v1 }
 0x6af   :  { %2870 = vmatpush1.bf16.msra.mxu0 %v3386_v16  ;;  %2897 = vmatpush3.bf16.msra.mxu1 %v3389_v34  ;;  %v1527_v16 = vld [vmem:[#allocation3 + $0x6] ss:$8 sm:$0x7] }
 0x6b0   :  { %2872 = vmatprep.subr.bf16.mxu0 %v3391_v42  ;;  %2898 = vmatprep.subr.bf16.mxu1 %v3041_v1 }
 0x6b3   :  { %2874 = vmatpush1.bf16.msra.mxu0 %v3394_v57  ;;  %2900 = vmatpush3.bf16.msra.mxu1 %v3398_v6 }
 0x6b4   :  { %2876 = vmatprep.subr.bf16.mxu0 %v3400_v7  ;;  %2901 = vmatprep.subr.bf16.mxu1 %v3041_v1 }
 0x6b7   :  { %2878 = vmatpush1.bf16.msra.mxu0 %v3404_v11  ;;  %2903 = vmatpush3.bf16.msra.mxu1 %v3408_v14  ;;  %v1589_v11 = vrot.slane %v1576_v0, %v3241_v55 }
 0x6b8   :  { %2880 = vmatprep.subr.bf16.mxu0 %v3410_v17  ;;  %2904 = vmatprep.subr.bf16.mxu1 %v3041_v1  ;;  %v1761_v17 = vrot.slane %v1527_v16, 2 }
 0x6bb   :  { %2882 = vmatpush1.bf16.msra.mxu0 %v3414_v28  ;;  %2906 = vmatpush3.bf16.msra.mxu1 %v3418_v39 }
 0x771   :  { %v1659_v33 = vpop.f32.mrb[12].mxu0  ;;  %v1730_v36 = vpop.f32.mrb[12].mxu1 }
 0x772   :  { %v1660_v41 = vadd.f32 %v1659_v33, %v1581_v26  ;;  %v1661_v46 = vpop.f32.mrb[13].mxu0  ;;  %v2423_v53 = vpop.f32.mrb[13].mxu1  ;;  %v1731_v14 = vadd.f32 %v1730_v36, %v1589_v11 }
 0x773   :  { %v1662_v56 = vadd.f32 %v1661_v46, %v1585_v29 }
 0x775   :  { %v1736_v62 = vcombine.low %v1660_v41, %v1662_v56 }
 0x777   :  { %v1743_v1 = vrot.slane %v1736_v62, %v3237_v37 }
 0x779   :  { %v1750_v34 = vrot.slane %v1743_v1, %v3237_v37 }
 0x77b   :  { %v1752_v42 = vadd.f32 %v1750_v34, %v1527_v16 }
 0x77d   :  { %v2041_v57 = vmul.f32 -1.442695, %v1752_v42 }
 0x77f   :  { %2952 = vpow2.f32 %v2041_v57 }
 0x789   :  { %v2953_v6 = vpop.eup %2952 }
 0x78a   :  { %v1756_v7 = vadd.f32 1.0, %v2953_v6 }
 0x78c   :  { %2954 = vrcp.f32 %v1756_v7 }
 0x796   :  { %v2955_v28 = vpop.eup %2954 }
 0x797   :  { %v1759_v39 = vmul.f32 %v2955_v28, %v1731_v14  ;;  %v1767_v51 = vrot.slane %v2955_v28, 1 }
 0x799   :  { %v1763_v3 = vadd.f32 %v1761_v17, %v1759_v39 }
 0x79b   :  { %2956 = vtanh.f32 %v1763_v3 }
 0x7a5   :  { %v2957_v19 = vpop.eup %2956 }
 0x7a6   :  { %v1765_v25 = vsub.f32 %v3538_v43, %v2957_v19 }
 0x7a8   :  { %v1769_v52 = vmul.f32 %v1767_v51, %v1765_v25 }
 0x7aa   :  { %v1770_v60 = vadd.f32 %v2957_v19, %v1769_v52 }
 0x7ac   :  { %1771 = vst [vmem:[#allocation8 + $0x6] sm:$0x1] %v1770_v60  ;;  %1904 = vmatmul.mubr.f32.vlgmr.msra.gmra.mrb[14].mxu0 %v1770_v60  ;;  %2457 = vmatmul.mubr.f32.vlgmr.msra.gmra.mrb[14].mxu1 %v1770_v60 }
 0x87f   :  { %v1905_v12 = vpop.f32.mrb[14].mxu0  ;;  %v1976_v18 = vpop.f32.mrb[14].mxu1 }
 0x880   :  { %v1906_v63 = vadd.f32 %v1905_v12, %v1827_v2  ;;  %v1907_v4 = vpop.f32.mrb[15].mxu0  ;;  %v2458_v8 = vpop.f32.mrb[15].mxu1  ;;  %v1977_v27 = vadd.f32 %v1976_v18, %v1835_v23 }
 0x881   :  { %v1908_v20 = vadd.f32 %v1907_v4, %v1831_v13 }
 0x883   :  { %v1982_v32 = vcombine.low %v1906_v63, %v1908_v20 }
 0x885   :  { %v1989_v30 = vrot.slane %v1982_v32, %v3237_v37 }
 0x887   :  { %v1996_v35 = vrot.slane %v1989_v30, %v3237_v37 }
 0x889   :  { %v1998_v5 = vadd.f32 %v1996_v35, %v1773_v48 }
 0x88b   :  { %v2042_v38 = vmul.f32 -1.442695, %v1998_v5 }
 0x88d   :  { %2958 = vpow2.f32 %v2042_v38 }
 0x897   :  { %v2959_v24 = vpop.eup %2958 }
 0x898   :  { %v2002_v40 = vadd.f32 1.0, %v2959_v24 }
 0x89a   :  { %2960 = vrcp.f32 %v2002_v40 }
 0x8a4   :  { %v2961_v45 = vpop.eup %2960 }
 0x8a5   :  { %v2005_v47 = vmul.f32 %v2961_v45, %v1977_v27  ;;  %v2013_v58 = vrot.slane %v2961_v45, 1 }
 0x8a7   :  { %v2009_v49 = vadd.f32 %v2007_v44, %v2005_v47 }
 0x8a9   :  { %2962 = vtanh.f32 %v2009_v49 }
 0x8b3   :  { %v2963_v50 = vpop.eup %2962 }
 0x8b4   :  { %v2011_v54 = vsub.f32 %v1770_v60, %v2963_v50 }
 0x8b6   :  { %v2015_v37 = vmul.f32 %v2013_v58, %v2011_v54 }
 0x8b8   :  { %v2016_v59 = vadd.f32 %v2963_v50, %v2015_v37 }
 0x8ba   :  { %2018 = vst [vmem:[#allocation2] sm:$0x1] %v2016_v59  ;;  %2017 = vst [vmem:[#allocation8 + $0x7] sm:$0x1] %v2016_v59 }
 0x8bb   :  { %3019 = shalt.err (!%p3016_p6)
}
 0x8bc   :  { %s3020_s8 = scalar_lea.hbm %s3609_s4, 128 }
 0x8bd   :  { %p3021_p7 = scmp.ne.s32.totalorder %s3609_s4, %s3020_s8  ;;  %p3024_p8 = scmp.lt.u32.totalorder %s3020_s8, %s3609_s4 }
 0x8bf   :  { %p3026_p9 = pnand %p3024_p8, %p3021_p7 }
 0x8c1   :  { %3029 = shalt.err (!%p3026_p9)
}
 0x8c2   :  { %2028 = dma.vmem_to_hbm [thread:$0]  %s2026_s30, 128, %s3609_s4, [#allocation5]  }
 0x8c3   :  { %3034 = dma.done.wait [#allocation5], 128  }
 0x8c4   :  { %3035 = vsyncadd [#allocation5], 4294967168 }
 0x8c5   :  { %2032 = vsyncpa [#allocation4], 1 }
 0x8c6   :  { %2033 = vsyncpa [#allocation7], 1 }
 0x8c7   :  { %2034 = vsyncpa [#allocation5], 1 }

// kernel: tpu_custom_call.1
= control target key start
LH: loop header
LB: loop body
LE: loop exit
PB: predicated region body
PF: predicated region fallthrough
CT: control target
= control target key end

     0   :  { %9 = vsyncpa [#allocation4], 0  ;;  %s3605_s0 = inlined_call_operand.hbm [shape: f32[8,384], index: 0, kind: input, shape index: {}]   ;;  %s3606_s1 = inlined_call_operand.vmem [shape: f32[1,128], index: 1, kind: input, shape index: {}]   ;;  %s3607_s2 = inlined_call_operand.hbm [shape: f32[128,384], index: 2, kind: input, shape index: {}]   ;;  %s3608_s3 = inlined_call_operand.vmem [shape: f32[1,384], index: 3, kind: input, shape index: {}]   ;;  %s3609_s4 = inlined_call_operand.hbm [shape: f32[8,128], index: 4, kind: output, shape index: {}]  }
   0x1   :  { %10 = vsyncpa [#allocation7], 0 }
   0x2   :  { %11 = vsyncpa [#allocation5], 0  ;;  %s3036_s15 = smov [#allocation3]   ;;  %s3037_s17 = smov [#allocation6]  }
   0x3   :  { %s18_s16 = sshll.u32 %s3036_s15, 4  ;;  %s29_s18 = sshll.u32 %s3037_s17, 4  ;;  %s19_s16 = int_to_ptr.vmem [resolvable:$true] %s18_s16  ;;  %s3070_s18 = int_to_ptr.vmem [resolvable:$true] %s29_s18 }
   0x4   :  { %s2964_s21 = scalar_lea.hbm %s3605_s0, 384 }
   0x5   :  { %p2965_p0 = scmp.ne.s32.totalorder %s3605_s0, %s2964_s21  ;;  %p2968_p1 = scmp.lt.u32.totalorder %s2964_s21, %s3605_s0 }
   0x7   :  { %p2970_p2 = pnand %p2968_p1, %p2965_p0 }
   0x9   :  { %2973 = shalt.err (!%p2970_p2)
}
   0xa   :  { %s2974_s26 = scalar_lea.vmem %s19_s16, 384  ;;  %p2979_p4 = scmp.lt.s32.totalorder %s19_s16, %s19_s16 }
   0xb   :  { %p2975_p3 = scmp.ne.s32.totalorder %s19_s16, %s2974_s26  ;;  %p2980_p5 = scmp.lt.s32.totalorder %s2974_s26, %s2974_s26 }
   0xd   :  { %p2981_p6 = por %p2980_p5, %p2979_p4 }
   0xf   :  { %p2982_p7 = pnand %p2981_p6, %p2975_p3 }
  0x11   :  { %2985 = shalt.err (!%p2982_p7)
}
  0x12   :  { %21 = dma.hbm_to_vmem [thread:$0]  %s3605_s0, 384, %s19_s16, [#allocation4]  }
  0x13   :  { %s2986_s5 = scalar_lea.hbm %s3607_s2, 6144 }
  0x14   :  { %p2987_p8 = scmp.ne.s32.totalorder %s3607_s2, %s2986_s5  ;;  %p2990_p9 = scmp.lt.u32.totalorder %s2986_s5, %s3607_s2 }
  0x16   :  { %p2992_p10 = pnand %p2990_p9, %p2987_p8 }
  0x18   :  { %2995 = shalt.err (!%p2992_p10)
}
  0x19   :  { %s2996_s10 = scalar_lea.vmem %s3070_s18, 6144  ;;  %p3001_p12 = scmp.lt.s32.totalorder %s3070_s18, %s3070_s18 }
  0x1a   :  { %p2997_p11 = scmp.ne.s32.totalorder %s3070_s18, %s2996_s10  ;;  %p3002_p13 = scmp.lt.s32.totalorder %s2996_s10, %s2996_s10 }
  0x1c   :  { %p3003_p0 = por %p3002_p13, %p3001_p12 }
  0x1e   :  { %p3004_p1 = pnand %p3003_p0, %p2997_p11 }
  0x20   :  { %3007 = shalt.err (!%p3004_p1)
}
  0x21   :  { %s3038_s0 = smov 384   ;;  %s3039_s11 = smov 24  }
  0x22   :  { %35 = dma.hbm_to_vmem [thread:$0]  %s3607_s2, 6144, %s3070_s18, [#allocation7], %s3038_s0, %s3038_s0, %s3039_s11  }
  0x23   :  { %3030 = dma.done.wait [#allocation4], 384  }
  0x24   :  { %3031 = vsyncadd [#allocation4], 4294966912 }
  0x25   :  { %3032 = dma.done.wait [#allocation7], 6144  }
  0x26   :  { %3033 = vsyncadd [#allocation7], 4294961152  ;;  %v3040_v0 = vmov 0.0   ;;  %v3041_v1 = vmov 0.0|0.0   ;;  %vm3042_vm0 = vmmov 0   ;;  %v53_v2 = vld [vmem:[#allocation6 + $0x8] sm:$0xff] }
  0x27   :  { %181 = vmatprep.mubr.f32.mxu0 %v3040_v0  ;;  %2491 = vmatprep.subr.bf16.mxu1 %v3041_v1  ;;  %v56_v3 = vld [vmem:[#allocation6 + $0x20] sm:$0xff]  ;;  %v55_v6 = vld [vmem:[#allocation6 + $0x18] sm:$0xff]  ;;  %v62_v8 = vld [vmem:[#allocation6 + $0x50] sm:$0xff] }
  0x28   :  { %2211 = vmatprep.mubr.msk.f32.mxu1 %vm3042_vm0, %v3040_v0  ;;  %v52_v4 = vld [vmem:[#allocation6] sm:$0xff]  ;;  %v3105_v5 = vpack.c.bf16 %v56_v3, %v53_v2  ;;  %v59_v7 = vld [vmem:[#allocation6 + $0x38] sm:$0xff]  ;;  %v58_v11 = vld [vmem:[#allocation6 + $0x30] sm:$0xff] }
  0x29   :  { %v3107_v9 = vpack.c.bf16 %v55_v6, %v52_v4  ;;  %v3109_v10 = vpack.c.bf16 %v62_v8, %v59_v7  ;;  %v61_v12 = vld [vmem:[#allocation6 + $0x48] sm:$0xff]  ;;  %v68_v14 = vld [vmem:[#allocation6 + $0x80] sm:$0xff]  ;;  %v67_v18 = vld [vmem:[#allocation6 + $0x78] sm:$0xff] }
  0x2a   :  { %v65_v13 = vld [vmem:[#allocation6 + $0x68] sm:$0xff]  ;;  %2460 = vmatprep.subr.bf16.mxu0 %v3105_v5  ;;  %v3113_v15 = vpack.c.bf16 %v61_v12, %v58_v11  ;;  %v64_v17 = vld [vmem:[#allocation6 + $0x60] sm:$0xff]  ;;  %v71_v19 = vld [vmem:[#allocation6 + $0x98] sm:$0xff] }
  0x2b   :  { %2462 = vmatpush1.bf16.msra.mxu0 %v3107_v9  ;;  %v3116_v16 = vpack.c.bf16 %v68_v14, %v65_v13  ;;  %v74_v20 = vld [vmem:[#allocation6 + $0xb0] sm:$0xff]  ;;  %v3119_v21 = vpack.c.bf16 %v67_v18, %v64_v17  ;;  %v73_v24 = vld [vmem:[#allocation6 + $0xa8] sm:$0xff]  ;;  %v80_v26 = vld [vmem:[#allocation6 + $0xe0] sm:$0xff] }
  0x2c   :  { %2464 = vmatprep.subr.bf16.mxu0 %v3109_v10  ;;  %v3122_v22 = vpack.c.bf16 %v74_v20, %v71_v19  ;;  %v70_v23 = vld [vmem:[#allocation6 + $0x90] sm:$0xff]  ;;  %v77_v25 = vld [vmem:[#allocation6 + $0xc8] sm:$0xff]  ;;  %v48_v27 = vld [vmem:[%s3606_s1] sm:$0x1]  ;;  %v102_v19 = vlaneseq }
  0x2d   :  { %49 = vst [vmem:[#allocation2] sm:$0x1] %v48_v27  ;;  %v54_v28 = vld [vmem:[#allocation6 + $0x10] sm:$0xff]  ;;  %v57_v29 = vld [vmem:[#allocation6 + $0x28] sm:$0xff]  ;;  %v60_v30 = vld [vmem:[#allocation6 + $0x40] sm:$0xff]  ;;  %v3128_v31 = vpack.c.bf16 %v73_v24, %v70_v23  ;;  %v3133_v34 = vpack.c.bf16 %v80_v26, %v77_v25 }
  0x2e   :  { %v3130_v32 = vpack.c.bf16 %v57_v29, %v54_v28  ;;  %v63_v33 = vld [vmem:[#allocation6 + $0x58] sm:$0xff]  ;;  %v76_v35 = vld [vmem:[#allocation6 + $0xc0] sm:$0xff]  ;;  %v86_v38 = vld [vmem:[#allocation6 + $0x110] sm:$0xff]  ;;  %v103_v20 = vshrl.u32 %v102_v19, 7  ;;  %v3043_v25 = vmov 1966171168  }
  0x2f   :  { %2466 = vmatpush1.bf16.msra.mxu0 %v3113_v15  ;;  %v79_v36 = vld [vmem:[#allocation6 + $0xd8] sm:$0xff]  ;;  %v3136_v39 = vpack.c.bf16 %v63_v33, %v60_v30  ;;  %v66_v40 = vld [vmem:[#allocation6 + $0x70] sm:$0xff]  ;;  %v69_v41 = vld [vmem:[#allocation6 + $0x88] sm:$0xff]  ;;  %v262_v26 = vunpack.c.l.s4 %v3043_v25 }
  0x30   :  { %2468 = vmatprep.subr.bf16.mxu0 %v3116_v16  ;;  %v83_v37 = vld [vmem:[#allocation6 + $0xf8] sm:$0xff]  ;;  %2493 = vmatpush3.bf16.msra.mxu1 %v3130_v32  ;;  %v3140_v42 = vpack.c.bf16 %v79_v36, %v76_v35  ;;  %v82_v44 = vld [vmem:[#allocation6 + $0xf0] sm:$0xff]  ;;  %v85_v45 = vld [vmem:[#allocation6 + $0x108] sm:$0xff]  ;;  %v3146_v48 = vpack.c.bf16 %v69_v41, %v66_v40  ;;  %v3228_v23 = vsub.s32 0, %v103_v20  ;;  %v3233_v27 = vsub.s32 1, %v103_v20 }
  0x31   :  { %2494 = vmatprep.subr.bf16.mxu1 %v3041_v1  ;;  %v3143_v43 = vpack.c.bf16 %v86_v38, %v83_v37  ;;  %v89_v46 = vld [vmem:[#allocation6 + $0x128] sm:$0xff]  ;;  %v92_v47 = vld [vmem:[#allocation6 + $0x140] sm:$0xff]  ;;  %v75_v50 = vld [vmem:[#allocation6 + $0xb8] sm:$0xff]  ;;  %v3150_v51 = vpack.c.bf16 %v85_v45, %v82_v44  ;;  %v263_v29 = vunpack.c.0.s8 %v262_v26 }
  0x32   :  { %v72_v49 = vld [vmem:[#allocation6 + $0xa0] sm:$0xff]  ;;  %v3153_v52 = vpack.c.bf16 %v92_v47, %v89_v46  ;;  %v91_v54 = vld [vmem:[#allocation6 + $0x138] sm:$0xff]  ;;  %v98_v56 = vld [vmem:[#allocation6 + $0x170] sm:$0xff] }
  0x33   :  { %2470 = vmatpush1.bf16.msra.mxu0 %v3119_v21  ;;  %v88_v53 = vld [vmem:[#allocation6 + $0x120] sm:$0xff]  ;;  %v95_v55 = vld [vmem:[#allocation6 + $0x158] sm:$0xff]  ;;  %v3156_v57 = vpack.c.bf16 %v75_v50, %v72_v49  ;;  %v78_v58 = vld [vmem:[#allocation6 + $0xd0] sm:$0xff]  ;;  %v3237_v37 = vsub.s32 %v263_v29, %v103_v20 }
  0x34   :  { %2472 = vmatprep.subr.bf16.mxu0 %v3122_v22  ;;  %2496 = vmatpush3.bf16.msra.mxu1 %v3136_v39  ;;  %v81_v59 = vld [vmem:[#allocation6 + $0xe8] sm:$0xff]  ;;  %v3160_v60 = vpack.c.bf16 %v91_v54, %v88_v53  ;;  %v3163_v61 = vpack.c.bf16 %v98_v56, %v95_v55  ;;  %v94_v62 = vld [vmem:[#allocation6 + $0x150] sm:$0xff]  ;;  %v84_v3 = vld [vmem:[#allocation6 + $0x100] sm:$0xff]  ;;  %v3241_v55 = vsub.s32 2, %v103_v20 }
  0x35   :  { %2497 = vmatprep.subr.bf16.mxu1 %v3041_v1  ;;  %v97_v63 = vld [vmem:[#allocation6 + $0x168] sm:$0xff]  ;;  %v3166_v2 = vpack.c.bf16 %v81_v59, %v78_v58  ;;  %v87_v4 = vld [vmem:[#allocation6 + $0x118] sm:$0xff]  ;;  %v90_v8 = vld [vmem:[#allocation6 + $0x130] sm:$0xff] }
  0x36   :  { %v3170_v6 = vpack.c.bf16 %v97_v63, %v94_v62  ;;  %v3174_v7 = vpack.c.bf16 %v87_v4, %v84_v3  ;;  %v93_v11 = vld [vmem:[#allocation6 + $0x148] sm:$0xff]  ;;  %v3178_v12 = vld [vmem:[#allocation2] sm:$0x1]  ;;  %v99_v17 = vld [vmem:[#allocation6 + $0x178] sm:$0xff] }
  0x37   :  { %2474 = vmatpush1.bf16.msra.mxu0 %v3128_v31  ;;  %v3182_v13 = vpack.c.bf16 %v93_v11, %v90_v8  ;;  %v96_v14 = vld [vmem:[#allocation6 + $0x160] sm:$0xff]  ;;  %v51_v44 = vld [vmem:[#allocation3] ss:$8 sm:$0x7] }
  0x38   :  { %2476 = vmatprep.subr.bf16.mxu0 %v3133_v34  ;;  %2499 = vmatpush3.bf16.msra.mxu1 %v3146_v48  ;;  %v3190_v18 = vpack.c.bf16 %v99_v17, %v96_v14  ;;  %v100_v24 = vld [vmem:[%s3608_s3] sm:$0x7]  ;;  %v285_v59 = vrot.slane %v51_v44, 2 }
  0x39   :  { %2500 = vmatprep.subr.bf16.mxu1 %v3041_v1  ;;  %v105_v28 = vrot.slane %v100_v24, %v3228_v23  ;;  %v109_v30 = vrot.slane %v100_v24, %v3233_v27  ;;  %v113_v56 = vrot.slane %v100_v24, %v3241_v55 }
  0x3b   :  { %2478 = vmatpush1.bf16.msra.mxu0 %v3140_v42 }
  0x3c   :  { %2480 = vmatprep.subr.bf16.mxu0 %v3143_v43  ;;  %2502 = vmatpush3.bf16.msra.mxu1 %v3156_v57 }
  0x3d   :  { %2503 = vmatprep.subr.bf16.mxu1 %v3041_v1 }
  0x3f   :  { %2482 = vmatpush1.bf16.msra.mxu0 %v3150_v51 }
  0x40   :  { %2484 = vmatprep.subr.bf16.mxu0 %v3153_v52  ;;  %2505 = vmatpush3.bf16.msra.mxu1 %v3166_v2 }
  0x41   :  { %2506 = vmatprep.subr.bf16.mxu1 %v3041_v1 }
  0x43   :  { %2486 = vmatpush1.bf16.msra.mxu0 %v3160_v60 }
  0x44   :  { %2488 = vmatprep.subr.bf16.mxu0 %v3163_v61  ;;  %2508 = vmatpush3.bf16.msra.mxu1 %v3174_v7 }
  0x45   :  { %2509 = vmatprep.subr.bf16.mxu1 %v3041_v1 }
  0x47   :  { %2490 = vmatpush1.bf16.msra.mxu0 %v3170_v6 }
  0x48   :  { %2516 = vmatprep.subr.bf16.mxu0 %v3105_v5  ;;  %2511 = vmatpush3.bf16.msra.mxu1 %v3182_v13 }
  0x49   :  { %2512 = vmatprep.subr.bf16.mxu1 %v3041_v1 }
  0x4a   :  { %182 = vmatmul.mubr.f32.vlgmr.msra.gmra.mrb[0].mxu0 %v3178_v12 }
  0x4b   :  { %2518 = vmatpush1.bf16.msra.mxu0 %v3107_v9  ;;  %427 = vmatprep.mubr.f32.mxu0 %v3040_v0 }
  0x4c   :  { %2520 = vmatprep.subr.bf16.mxu0 %v3109_v10  ;;  %2514 = vmatpush3.bf16.msra.mxu1 %v3190_v18 }
  0x4d   :  { %2547 = vmatprep.subr.bf16.mxu1 %v3041_v1 }
  0x4f   :  { %2522 = vmatpush1.bf16.msra.mxu0 %v3113_v15  ;;  %2212 = vmatmul.mubr.f32.vlgmr.msra.gmra.mrb[0].mxu1 %v3178_v12 }
  0x50   :  { %2524 = vmatprep.subr.bf16.mxu0 %v3116_v16  ;;  %2549 = vmatpush3.bf16.msra.mxu1 %v3130_v32 }
  0x51   :  { %2246 = vmatprep.mubr.msk.f32.mxu1 %vm3042_vm0, %v3040_v0  ;;  %2550 = vmatprep.subr.bf16.mxu1 %v3041_v1 }
  0x53   :  { %2526 = vmatpush1.bf16.msra.mxu0 %v3119_v21 }
  0x54   :  { %2528 = vmatprep.subr.bf16.mxu0 %v3122_v22  ;;  %2552 = vmatpush3.bf16.msra.mxu1 %v3136_v39 }
  0x55   :  { %2553 = vmatprep.subr.bf16.mxu1 %v3041_v1 }
  0x57   :  { %2530 = vmatpush1.bf16.msra.mxu0 %v3128_v31 }
  0x58   :  { %2532 = vmatprep.subr.bf16.mxu0 %v3133_v34  ;;  %2555 = vmatpush3.bf16.msra.mxu1 %v3146_v48 }
  0x59   :  { %2556 = vmatprep.subr.bf16.mxu1 %v3041_v1 }
  0x5b   :  { %2534 = vmatpush1.bf16.msra.mxu0 %v3140_v42 }
  0x5c   :  { %2536 = vmatprep.subr.bf16.mxu0 %v3143_v43  ;;  %2558 = vmatpush3.bf16.msra.mxu1 %v3156_v57 }
  0x5d   :  { %2559 = vmatprep.subr.bf16.mxu1 %v3041_v1 }
  0x5f   :  { %2538 = vmatpush1.bf16.msra.mxu0 %v3150_v51 }
  0x60   :  { %2540 = vmatprep.subr.bf16.mxu0 %v3153_v52  ;;  %2561 = vmatpush3.bf16.msra.mxu1 %v3166_v2 }
  0x61   :  { %2562 = vmatprep.subr.bf16.mxu1 %v3041_v1 }
  0x63   :  { %2542 = vmatpush1.bf16.msra.mxu0 %v3160_v60 }
  0x64   :  { %2544 = vmatprep.subr.bf16.mxu0 %v3163_v61  ;;  %2564 = vmatpush3.bf16.msra.mxu1 %v3174_v7 }
  0x65   :  { %2565 = vmatprep.subr.bf16.mxu1 %v3041_v1 }
  0x67   :  { %2546 = vmatpush1.bf16.msra.mxu0 %v3170_v6 }
  0x68   :  { %2572 = vmatprep.subr.bf16.mxu0 %v3105_v5  ;;  %2567 = vmatpush3.bf16.msra.mxu1 %v3182_v13 }
  0x69   :  { %2568 = vmatprep.subr.bf16.mxu1 %v3041_v1 }
  0x6c   :  { %2570 = vmatpush3.bf16.msra.mxu1 %v3190_v18 }
  0x6d   :  { %2603 = vmatprep.subr.bf16.mxu1 %v3041_v1 }
 0x11d   :  { %v183_v33 = vpop.f32.mrb[0].mxu0 }
 0x11e   :  { %v184_v35 = vadd.f32 %v183_v33, %v105_v28  ;;  %v185_v36 = vpop.f32.mrb[1].mxu0 }
 0x11f   :  { %v186_v38 = vadd.f32 %v185_v36, %v109_v30 }
 0x121   :  { %v260_v40 = vcombine.low %v184_v35, %v186_v38 }
 0x122   :  { %v254_v46 = vpop.f32.mrb[0].mxu1 }
 0x123   :  { %v267_v41 = vrot.slane %v260_v40, %v3237_v37  ;;  %v2213_v49 = vpop.f32.mrb[1].mxu1  ;;  %v255_v58 = vadd.f32 %v254_v46, %v113_v56 }
 0x125   :  { %v274_v45 = vrot.slane %v267_v41, %v3237_v37 }
 0x127   :  { %v276_v47 = vadd.f32 %v274_v45, %v51_v44 }
 0x129   :  { %v2035_v50 = vmul.f32 -1.442695, %v276_v47 }
 0x12b   :  { %2916 = vpow2.f32 %v2035_v50 }
 0x135   :  { %v2917_v53 = vpop.eup %2916 }
 0x136   :  { %v280_v54 = vadd.f32 1.0, %v2917_v53 }
 0x138   :  { %2918 = vrcp.f32 %v280_v54 }
 0x142   :  { %v2919_v62 = vpop.eup %2918 }
 0x143   :  { %v283_v63 = vmul.f32 %v2919_v62, %v255_v58  ;;  %v291_v11 = vrot.slane %v2919_v62, 1 }
 0x145   :  { %v287_v3 = vadd.f32 %v285_v59, %v283_v63 }
 0x147   :  { %2920 = vtanh.f32 %v287_v3 }
 0x151   :  { %v2921_v4 = vpop.eup %2920 }
 0x152   :  { %v289_v8 = vsub.f32 %v3178_v12, %v2921_v4  ;;  %v346_v12 = vld [vmem:[%s3608_s3] sm:$0x7] }
 0x153   :  { %v351_v19 = vrot.slane %v346_v12, %v3228_v23  ;;  %v355_v20 = vrot.slane %v346_v12, %v3233_v27  ;;  %v359_v45 = vrot.slane %v346_v12, %v3241_v55 }
 0x154   :  { %v293_v14 = vmul.f32 %v291_v11, %v289_v8 }
 0x156   :  { %v3245_v17 = vadd.f32 %v2921_v4, %v293_v14 }
 0x158   :  { %295 = vst [vmem:[#allocation8] sm:$0x1] %v3245_v17  ;;  %428 = vmatmul.mubr.f32.vlgmr.msra.gmra.mrb[2].mxu0 %v3245_v17  ;;  %2247 = vmatmul.mubr.f32.vlgmr.msra.gmra.mrb[2].mxu1 %v3245_v17 }
 0x159   :  { %2574 = vmatpush1.bf16.msra.mxu0 %v3107_v9  ;;  %2605 = vmatpush3.bf16.msra.mxu1 %v3130_v32 }
 0x15a   :  { %2576 = vmatprep.subr.bf16.mxu0 %v3109_v10  ;;  %2606 = vmatprep.subr.bf16.mxu1 %v3041_v1 }
 0x15b   :  { %673 = vmatprep.mubr.f32.mxu0 %v3040_v0  ;;  %2281 = vmatprep.mubr.msk.f32.mxu1 %vm3042_vm0, %v3040_v0 }
 0x15d   :  { %2578 = vmatpush1.bf16.msra.mxu0 %v3113_v15  ;;  %2608 = vmatpush3.bf16.msra.mxu1 %v3136_v39 }
 0x15e   :  { %2580 = vmatprep.subr.bf16.mxu0 %v3116_v16  ;;  %2609 = vmatprep.subr.bf16.mxu1 %v3041_v1 }
 0x161   :  { %2582 = vmatpush1.bf16.msra.mxu0 %v3119_v21  ;;  %2611 = vmatpush3.bf16.msra.mxu1 %v3146_v48 }
 0x162   :  { %2584 = vmatprep.subr.bf16.mxu0 %v3122_v22  ;;  %2612 = vmatprep.subr.bf16.mxu1 %v3041_v1 }
 0x165   :  { %2586 = vmatpush1.bf16.msra.mxu0 %v3128_v31  ;;  %2614 = vmatpush3.bf16.msra.mxu1 %v3156_v57 }
 0x166   :  { %2588 = vmatprep.subr.bf16.mxu0 %v3133_v34  ;;  %2615 = vmatprep.subr.bf16.mxu1 %v3041_v1 }
 0x169   :  { %2590 = vmatpush1.bf16.msra.mxu0 %v3140_v42  ;;  %2617 = vmatpush3.bf16.msra.mxu1 %v3166_v2 }
 0x16a   :  { %2592 = vmatprep.subr.bf16.mxu0 %v3143_v43  ;;  %2618 = vmatprep.subr.bf16.mxu1 %v3041_v1 }
 0x16d   :  { %2594 = vmatpush1.bf16.msra.mxu0 %v3150_v51  ;;  %2620 = vmatpush3.bf16.msra.mxu1 %v3174_v7 }
 0x16e   :  { %2596 = vmatprep.subr.bf16.mxu0 %v3153_v52  ;;  %2621 = vmatprep.subr.bf16.mxu1 %v3041_v1 }
 0x171   :  { %2598 = vmatpush1.bf16.msra.mxu0 %v3160_v60  ;;  %2623 = vmatpush3.bf16.msra.mxu1 %v3182_v13 }
 0x172   :  { %2600 = vmatprep.subr.bf16.mxu0 %v3163_v61  ;;  %2624 = vmatprep.subr.bf16.mxu1 %v3041_v1 }
 0x175   :  { %2602 = vmatpush1.bf16.msra.mxu0 %v3170_v6  ;;  %2626 = vmatpush3.bf16.msra.mxu1 %v3190_v18 }
 0x176   :  { %2628 = vmatprep.subr.bf16.mxu0 %v3105_v5  ;;  %2659 = vmatprep.subr.bf16.mxu1 %v3041_v1  ;;  %v297_v5 = vld [vmem:[#allocation3 + $0x1] ss:$8 sm:$0x7] }
 0x177   :  { %v531_v47 = vrot.slane %v297_v5, 2 }
 0x22b   :  { %v429_v24 = vpop.f32.mrb[2].mxu0  ;;  %v500_v25 = vpop.f32.mrb[2].mxu1 }
 0x22c   :  { %v430_v26 = vadd.f32 %v429_v24, %v351_v19  ;;  %v431_v28 = vpop.f32.mrb[3].mxu0  ;;  %v2248_v29 = vpop.f32.mrb[3].mxu1  ;;  %v501_v46 = vadd.f32 %v500_v25, %v359_v45  ;;  %v1037_v19 = vld [vmem:[#allocation6 + $0x8] sm:$0xff]  ;;  %v1039_v25 = vld [vmem:[#allocation6 + $0x18] sm:$0xff]  ;;  %v1058_v45 = vld [vmem:[#allocation6 + $0xb0] sm:$0xff] }
 0x22d   :  { %v432_v30 = vadd.f32 %v431_v28, %v355_v20  ;;  %v1040_v20 = vld [vmem:[#allocation6 + $0x20] sm:$0xff]  ;;  %v1043_v28 = vld [vmem:[#allocation6 + $0x38] sm:$0xff] }
 0x22e   :  { %v3356_v24 = vpack.c.bf16 %v1040_v20, %v1037_v19  ;;  %v1078_v19 = vld [vmem:[#allocation6 + $0x150] sm:$0xff]  ;;  %v1081_v20 = vld [vmem:[#allocation6 + $0x168] sm:$0xff] }
 0x22f   :  { %v506_v33 = vcombine.low %v430_v26, %v432_v30  ;;  %v1042_v30 = vld [vmem:[#allocation6 + $0x30] sm:$0xff] }
 0x231   :  { %v513_v35 = vrot.slane %v506_v33, %v3237_v37 }
 0x233   :  { %v520_v36 = vrot.slane %v513_v35, %v3237_v37  ;;  %v1049_v35 = vld [vmem:[#allocation6 + $0x68] sm:$0xff] }
 0x235   :  { %v522_v38 = vadd.f32 %v520_v36, %v297_v5  ;;  %v1052_v5 = vld [vmem:[#allocation6 + $0x80] sm:$0xff] }
 0x236   :  { %v3368_v36 = vpack.c.bf16 %v1052_v5, %v1049_v35 }
 0x237   :  { %v2036_v40 = vmul.f32 -1.442695, %v522_v38  ;;  %v1048_v38 = vld [vmem:[#allocation6 + $0x60] sm:$0xff] }
 0x239   :  { %2922 = vpow2.f32 %v2036_v40  ;;  %v1051_v40 = vld [vmem:[#allocation6 + $0x78] sm:$0xff] }
 0x243   :  { %v2923_v41 = vpop.eup %2922 }
 0x244   :  { %v526_v44 = vadd.f32 1.0, %v2923_v41  ;;  %v3370_v41 = vpack.c.bf16 %v1051_v40, %v1048_v38 }
 0x246   :  { %2924 = vrcp.f32 %v526_v44  ;;  %v1055_v44 = vld [vmem:[#allocation6 + $0x98] sm:$0xff] }
 0x250   :  { %v2925_v49 = vpop.eup %2924 }
 0x251   :  { %v529_v50 = vmul.f32 %v2925_v49, %v501_v46  ;;  %v537_v58 = vrot.slane %v2925_v49, 1  ;;  %v3374_v46 = vpack.c.bf16 %v1058_v45, %v1055_v44  ;;  %v1057_v49 = vld [vmem:[#allocation6 + $0xa8] sm:$0xff] }
 0x253   :  { %v533_v53 = vadd.f32 %v531_v47, %v529_v50  ;;  %v1054_v47 = vld [vmem:[#allocation6 + $0x90] sm:$0xff]  ;;  %v1056_v50 = vld [vmem:[#allocation6 + $0xa0] sm:$0xff] }
 0x255   :  { %2926 = vtanh.f32 %v533_v53  ;;  %v3376_v53 = vpack.c.bf16 %v1057_v49, %v1054_v47 }
 0x25f   :  { %v2927_v54 = vpop.eup %2926 }
 0x260   :  { %v535_v56 = vsub.f32 %v3245_v17, %v2927_v54 }
 0x262   :  { %v539_v59 = vmul.f32 %v537_v58, %v535_v56  ;;  %v1061_v58 = vld [vmem:[#allocation6 + $0xc8] sm:$0xff] }
 0x264   :  { %v3294_v62 = vadd.f32 %v2927_v54, %v539_v59  ;;  %v1059_v54 = vld [vmem:[#allocation6 + $0xb8] sm:$0xff]  ;;  %v1064_v59 = vld [vmem:[#allocation6 + $0xe0] sm:$0xff] }
 0x265   :  { %v3379_v56 = vpack.c.bf16 %v1059_v54, %v1056_v50  ;;  %v789_v54 = vld [vmem:[#allocation3 + $0x3] ss:$8 sm:$0x7] }
 0x266   :  { %541 = vst [vmem:[#allocation8 + $0x1] sm:$0x1] %v3294_v62  ;;  %674 = vmatmul.mubr.f32.vlgmr.msra.gmra.mrb[4].mxu0 %v3294_v62  ;;  %2282 = vmatmul.mubr.f32.vlgmr.msra.gmra.mrb[4].mxu1 %v3294_v62 }
 0x267   :  { %2630 = vmatpush1.bf16.msra.mxu0 %v3107_v9  ;;  %2661 = vmatpush3.bf16.msra.mxu1 %v3130_v32  ;;  %v592_v9 = vld [vmem:[%s3608_s3] sm:$0x7] }
 0x268   :  { %2632 = vmatprep.subr.bf16.mxu0 %v3109_v10  ;;  %2662 = vmatprep.subr.bf16.mxu1 %v3041_v1  ;;  %v597_v10 = vrot.slane %v592_v9, %v3228_v23 }
 0x269   :  { %919 = vmatprep.mubr.f32.mxu0 %v3040_v0  ;;  %2316 = vmatprep.mubr.msk.f32.mxu1 %vm3042_vm0, %v3040_v0 }
 0x26b   :  { %2634 = vmatpush1.bf16.msra.mxu0 %v3113_v15  ;;  %2664 = vmatpush3.bf16.msra.mxu1 %v3136_v39  ;;  %v601_v15 = vrot.slane %v592_v9, %v3233_v27 }
 0x26c   :  { %2636 = vmatprep.subr.bf16.mxu0 %v3116_v16  ;;  %2665 = vmatprep.subr.bf16.mxu1 %v3041_v1 }
 0x26f   :  { %2638 = vmatpush1.bf16.msra.mxu0 %v3119_v21  ;;  %2667 = vmatpush3.bf16.msra.mxu1 %v3146_v48 }
 0x270   :  { %2640 = vmatprep.subr.bf16.mxu0 %v3122_v22  ;;  %2668 = vmatprep.subr.bf16.mxu1 %v3041_v1 }
 0x273   :  { %2642 = vmatpush1.bf16.msra.mxu0 %v3128_v31  ;;  %2670 = vmatpush3.bf16.msra.mxu1 %v3156_v57 }
 0x274   :  { %2644 = vmatprep.subr.bf16.mxu0 %v3133_v34  ;;  %2671 = vmatprep.subr.bf16.mxu1 %v3041_v1 }
 0x277   :  { %2646 = vmatpush1.bf16.msra.mxu0 %v3140_v42  ;;  %2673 = vmatpush3.bf16.msra.mxu1 %v3166_v2 }
 0x278   :  { %2648 = vmatprep.subr.bf16.mxu0 %v3143_v43  ;;  %2674 = vmatprep.subr.bf16.mxu1 %v3041_v1 }
 0x27b   :  { %2650 = vmatpush1.bf16.msra.mxu0 %v3150_v51  ;;  %2676 = vmatpush3.bf16.msra.mxu1 %v3174_v7  ;;  %v605_v7 = vrot.slane %v592_v9, %v3241_v55  ;;  %v1060_v9 = vld [vmem:[#allocation6 + $0xc0] sm:$0xff] }
 0x27c   :  { %2652 = vmatprep.subr.bf16.mxu0 %v3153_v52  ;;  %2677 = vmatprep.subr.bf16.mxu1 %v3041_v1  ;;  %v543_v52 = vld [vmem:[#allocation3 + $0x2] ss:$8 sm:$0x7] }
 0x27f   :  { %2654 = vmatpush1.bf16.msra.mxu0 %v3160_v60  ;;  %2679 = vmatpush3.bf16.msra.mxu1 %v3182_v13 }
 0x280   :  { %2656 = vmatprep.subr.bf16.mxu0 %v3163_v61  ;;  %2680 = vmatprep.subr.bf16.mxu1 %v3041_v1 }
 0x283   :  { %2658 = vmatpush1.bf16.msra.mxu0 %v3170_v6  ;;  %2682 = vmatpush3.bf16.msra.mxu1 %v3190_v18  ;;  %v777_v18 = vrot.slane %v543_v52, 2 }
 0x284   :  { %2715 = vmatprep.subr.bf16.mxu1 %v3041_v1  ;;  %2684 = vmatprep.subr.bf16.mxu0 %v3356_v24 }
 0x339   :  { %v675_v16 = vpop.f32.mrb[4].mxu0  ;;  %v746_v21 = vpop.f32.mrb[4].mxu1 }
 0x33a   :  { %v676_v22 = vadd.f32 %v675_v16, %v597_v10  ;;  %v677_v31 = vpop.f32.mrb[5].mxu0  ;;  %v2283_v34 = vpop.f32.mrb[5].mxu1  ;;  %v747_v13 = vadd.f32 %v746_v21, %v605_v7  ;;  %v1063_v10 = vld [vmem:[#allocation6 + $0xd8] sm:$0xff]  ;;  %v1065_v21 = vld [vmem:[#allocation6 + $0xe8] sm:$0xff] }
 0x33b   :  { %v678_v42 = vadd.f32 %v677_v31, %v601_v15  ;;  %v1062_v15 = vld [vmem:[#allocation6 + $0xd0] sm:$0xff]  ;;  %v3386_v16 = vpack.c.bf16 %v1063_v10, %v1060_v9 }
 0x33c   :  { %v1070_v31 = vld [vmem:[#allocation6 + $0x110] sm:$0xff]  ;;  %v3389_v34 = vpack.c.bf16 %v1065_v21, %v1062_v15 }
 0x33d   :  { %v752_v43 = vcombine.low %v676_v22, %v678_v42  ;;  %v1067_v22 = vld [vmem:[#allocation6 + $0xf8] sm:$0xff] }
 0x33e   :  { %v3391_v42 = vpack.c.bf16 %v1070_v31, %v1067_v22  ;;  %v1023_v31 = vrot.slane %v789_v54, 2 }
 0x33f   :  { %v759_v51 = vrot.slane %v752_v43, %v3237_v37  ;;  %v1066_v43 = vld [vmem:[#allocation6 + $0xf0] sm:$0xff] }
 0x341   :  { %v766_v57 = vrot.slane %v759_v51, %v3237_v37  ;;  %v1069_v51 = vld [vmem:[#allocation6 + $0x108] sm:$0xff] }
 0x343   :  { %v768_v60 = vadd.f32 %v766_v57, %v543_v52  ;;  %v1068_v52 = vld [vmem:[#allocation6 + $0x100] sm:$0xff]  ;;  %v3394_v57 = vpack.c.bf16 %v1069_v51, %v1066_v43 }
 0x345   :  { %v2037_v61 = vmul.f32 -1.442695, %v768_v60  ;;  %v1071_v60 = vld [vmem:[#allocation6 + $0x118] sm:$0xff] }
 0x347   :  { %2928 = vpow2.f32 %v2037_v61  ;;  %v1073_v61 = vld [vmem:[#allocation6 + $0x128] sm:$0xff] }
 0x351   :  { %v2929_v2 = vpop.eup %2928 }
 0x352   :  { %v772_v6 = vadd.f32 1.0, %v2929_v2  ;;  %v1076_v2 = vld [vmem:[#allocation6 + $0x140] sm:$0xff] }
 0x353   :  { %v3400_v7 = vpack.c.bf16 %v1076_v2, %v1073_v61 }
 0x354   :  { %2930 = vrcp.f32 %v772_v6  ;;  %v3398_v6 = vpack.c.bf16 %v1071_v60, %v1068_v52 }
 0x35e   :  { %v2931_v63 = vpop.eup %2930 }
 0x35f   :  { %v775_v3 = vmul.f32 %v2931_v63, %v747_v13  ;;  %v783_v14 = vrot.slane %v2931_v63, 1  ;;  %v1072_v13 = vld [vmem:[#allocation6 + $0x120] sm:$0xff]  ;;  %v1074_v63 = vld [vmem:[#allocation6 + $0x130] sm:$0xff] }
 0x361   :  { %v779_v4 = vadd.f32 %v777_v18, %v775_v3  ;;  %v1075_v18 = vld [vmem:[#allocation6 + $0x138] sm:$0xff]  ;;  %v1077_v3 = vld [vmem:[#allocation6 + $0x148] sm:$0xff] }
 0x363   :  { %2932 = vtanh.f32 %v779_v4  ;;  %v1079_v4 = vld [vmem:[#allocation6 + $0x158] sm:$0xff] }
 0x36d   :  { %v2933_v8 = vpop.eup %2932 }
 0x36e   :  { %v781_v11 = vsub.f32 %v3294_v62, %v2933_v8  ;;  %v3383_v62 = vpack.c.bf16 %v1064_v59, %v1061_v58 }
 0x370   :  { %v785_v17 = vmul.f32 %v783_v14, %v781_v11  ;;  %v3404_v11 = vpack.c.bf16 %v1075_v18, %v1072_v13  ;;  %v3408_v14 = vpack.c.bf16 %v1077_v3, %v1074_v63  ;;  %v1287_v63 = vld [vmem:[#allocation6 + $0x28] sm:$0xff] }
 0x372   :  { %v3342_v12 = vadd.f32 %v2933_v8, %v785_v17  ;;  %v1082_v8 = vld [vmem:[#allocation6 + $0x170] sm:$0xff] }
 0x373   :  { %v3410_v17 = vpack.c.bf16 %v1082_v8, %v1079_v4  ;;  %v1290_v4 = vld [vmem:[#allocation6 + $0x40] sm:$0xff]  ;;  %v1293_v8 = vld [vmem:[#allocation6 + $0x58] sm:$0xff] }
 0x374   :  { %787 = vst [vmem:[#allocation8 + $0x2] sm:$0x1] %v3342_v12  ;;  %920 = vmatmul.mubr.f32.vlgmr.msra.gmra.mrb[6].mxu0 %v3342_v12  ;;  %2317 = vmatmul.mubr.f32.vlgmr.msra.gmra.mrb[6].mxu1 %v3342_v12 }
 0x375   :  { %2717 = vmatpush3.bf16.msra.mxu1 %v3130_v32  ;;  %1165 = vmatprep.mubr.f32.mxu0 %v3040_v0  ;;  %v1036_v32 = vld [vmem:[#allocation6] sm:$0xff] }
 0x376   :  { %2718 = vmatprep.subr.bf16.mxu1 %v3041_v1  ;;  %2351 = vmatprep.mubr.msk.f32.mxu1 %vm3042_vm0, %v3040_v0  ;;  %v3358_v26 = vpack.c.bf16 %v1039_v25, %v1036_v32  ;;  %v1080_v32 = vld [vmem:[#allocation6 + $0x160] sm:$0xff]  ;;  %v1083_v25 = vld [vmem:[#allocation6 + $0x178] sm:$0xff] }
 0x378   :  { %2686 = vmatpush1.bf16.msra.mxu0 %v3358_v26 }
 0x379   :  { %2720 = vmatpush3.bf16.msra.mxu1 %v3136_v39  ;;  %v1046_v39 = vld [vmem:[#allocation6 + $0x50] sm:$0xff] }
 0x37a   :  { %2721 = vmatprep.subr.bf16.mxu1 %v3041_v1  ;;  %v3362_v29 = vpack.c.bf16 %v1046_v39, %v1043_v28  ;;  %v3414_v28 = vpack.c.bf16 %v1081_v20, %v1078_v19  ;;  %v3418_v39 = vpack.c.bf16 %v1083_v25, %v1080_v32  ;;  %v3462_v19 = vpack.c.bf16 %v1293_v8, %v1290_v4  ;;  %v1296_v20 = vld [vmem:[#allocation6 + $0x70] sm:$0xff]  ;;  %v1299_v32 = vld [vmem:[#allocation6 + $0x88] sm:$0xff] }
 0x37b   :  { %v3466_v25 = vpack.c.bf16 %v1299_v32, %v1296_v20 }
 0x37c   :  { %2688 = vmatprep.subr.bf16.mxu0 %v3362_v29 }
 0x37d   :  { %2723 = vmatpush3.bf16.msra.mxu1 %v3146_v48  ;;  %v1045_v48 = vld [vmem:[#allocation6 + $0x48] sm:$0xff] }
 0x37e   :  { %2724 = vmatprep.subr.bf16.mxu1 %v3041_v1  ;;  %v3364_v33 = vpack.c.bf16 %v1045_v48, %v1042_v30  ;;  %v838_v30 = vld [vmem:[%s3608_s3] sm:$0x7] }
 0x37f   :  { %v843_v48 = vrot.slane %v838_v30, %v3228_v23  ;;  %v847_v35 = vrot.slane %v838_v30, %v3233_v27  ;;  %v851_v21 = vrot.slane %v838_v30, %v3241_v55  ;;  %v1084_v30 = vld [vmem:[%s3608_s3] sm:$0x7] }
 0x380   :  { %2690 = vmatpush1.bf16.msra.mxu0 %v3364_v33 }
 0x381   :  { %2692 = vmatprep.subr.bf16.mxu0 %v3368_v36  ;;  %2726 = vmatpush3.bf16.msra.mxu1 %v3379_v56 }
 0x382   :  { %2727 = vmatprep.subr.bf16.mxu1 %v3041_v1 }
 0x384   :  { %2694 = vmatpush1.bf16.msra.mxu0 %v3370_v41 }
 0x385   :  { %2696 = vmatprep.subr.bf16.mxu0 %v3374_v46  ;;  %2729 = vmatpush3.bf16.msra.mxu1 %v3389_v34 }
 0x386   :  { %2730 = vmatprep.subr.bf16.mxu1 %v3041_v1 }
 0x388   :  { %2698 = vmatpush1.bf16.msra.mxu0 %v3376_v53 }
 0x389   :  { %2700 = vmatprep.subr.bf16.mxu0 %v3383_v62  ;;  %2732 = vmatpush3.bf16.msra.mxu1 %v3398_v6 }
 0x38a   :  { %2733 = vmatprep.subr.bf16.mxu1 %v3041_v1 }
 0x38c   :  { %2702 = vmatpush1.bf16.msra.mxu0 %v3386_v16 }
 0x38d   :  { %2704 = vmatprep.subr.bf16.mxu0 %v3391_v42  ;;  %2735 = vmatpush3.bf16.msra.mxu1 %v3408_v14 }
 0x38e   :  { %2736 = vmatprep.subr.bf16.mxu1 %v3041_v1 }
 0x390   :  { %2706 = vmatpush1.bf16.msra.mxu0 %v3394_v57 }
 0x391   :  { %2708 = vmatprep.subr.bf16.mxu0 %v3400_v7  ;;  %2738 = vmatpush3.bf16.msra.mxu1 %v3418_v39 }
 0x392   :  { %2771 = vmatprep.subr.bf16.mxu1 %v3041_v1 }
 0x394   :  { %2710 = vmatpush1.bf16.msra.mxu0 %v3404_v11 }
 0x395   :  { %2712 = vmatprep.subr.bf16.mxu0 %v3410_v17 }
 0x398   :  { %2714 = vmatpush1.bf16.msra.mxu0 %v3414_v28 }
 0x399   :  { %2740 = vmatprep.subr.bf16.mxu0 %v3356_v24 }
 0x447   :  { %v921_v5 = vpop.f32.mrb[6].mxu0  ;;  %v992_v38 = vpop.f32.mrb[6].mxu1 }
 0x448   :  { %v922_v40 = vadd.f32 %v921_v5, %v843_v48  ;;  %v923_v44 = vpop.f32.mrb[7].mxu0  ;;  %v2318_v45 = vpop.f32.mrb[7].mxu1  ;;  %v993_v22 = vadd.f32 %v992_v38, %v851_v21  ;;  %v1089_v48 = vrot.slane %v1084_v30, %v3228_v23  ;;  %v1097_v21 = vrot.slane %v1084_v30, %v3241_v55 }
 0x449   :  { %v924_v47 = vadd.f32 %v923_v44, %v847_v35  ;;  %v1093_v35 = vrot.slane %v1084_v30, %v3233_v27 }
 0x44b   :  { %v998_v49 = vcombine.low %v922_v40, %v924_v47 }
 0x44d   :  { %v1005_v50 = vrot.slane %v998_v49, %v3237_v37 }
 0x44f   :  { %v1012_v58 = vrot.slane %v1005_v50, %v3237_v37 }
 0x451   :  { %v1014_v59 = vadd.f32 %v1012_v58, %v789_v54  ;;  %v1035_v54 = vld [vmem:[#allocation3 + $0x4] ss:$8 sm:$0x7] }
 0x453   :  { %v2038_v9 = vmul.f32 -1.442695, %v1014_v59 }
 0x455   :  { %2934 = vpow2.f32 %v2038_v9 }
 0x45f   :  { %v2935_v10 = vpop.eup %2934 }
 0x460   :  { %v1018_v15 = vadd.f32 1.0, %v2935_v10 }
 0x462   :  { %2936 = vrcp.f32 %v1018_v15 }
 0x46c   :  { %v2937_v43 = vpop.eup %2936 }
 0x46d   :  { %v1021_v51 = vmul.f32 %v2937_v43, %v993_v22  ;;  %v1029_v2 = vrot.slane %v2937_v43, 1 }
 0x46f   :  { %v1025_v52 = vadd.f32 %v1023_v31, %v1021_v51  ;;  %v1269_v31 = vrot.slane %v1035_v54, 2 }
 0x471   :  { %2938 = vtanh.f32 %v1025_v52 }
 0x47b   :  { %v2939_v60 = vpop.eup %2938 }
 0x47c   :  { %v1027_v61 = vsub.f32 %v3342_v12, %v2939_v60  ;;  %v1284_v12 = vld [vmem:[#allocation6 + $0x10] sm:$0xff] }
 0x47d   :  { %v3458_v3 = vpack.c.bf16 %v1287_v63, %v1284_v12 }
 0x47e   :  { %v1031_v13 = vmul.f32 %v1029_v2, %v1027_v61 }
 0x480   :  { %v3434_v18 = vadd.f32 %v2939_v60, %v1031_v13 }
 0x482   :  { %1033 = vst [vmem:[#allocation8 + $0x3] sm:$0x1] %v3434_v18  ;;  %1166 = vmatmul.mubr.f32.vlgmr.msra.gmra.mrb[8].mxu0 %v3434_v18  ;;  %2352 = vmatmul.mubr.f32.vlgmr.msra.gmra.mrb[8].mxu1 %v3434_v18 }
 0x483   :  { %2742 = vmatpush1.bf16.msra.mxu0 %v3358_v26  ;;  %1411 = vmatprep.mubr.f32.mxu0 %v3040_v0 }
 0x484   :  { %2744 = vmatprep.subr.bf16.mxu0 %v3362_v29  ;;  %2386 = vmatprep.mubr.msk.f32.mxu1 %vm3042_vm0, %v3040_v0 }
 0x485   :  { %2773 = vmatpush3.bf16.msra.mxu1 %v3458_v3 }
 0x486   :  { %2774 = vmatprep.subr.bf16.mxu1 %v3041_v1 }
 0x487   :  { %2746 = vmatpush1.bf16.msra.mxu0 %v3364_v33 }
 0x488   :  { %2748 = vmatprep.subr.bf16.mxu0 %v3368_v36 }
 0x489   :  { %2776 = vmatpush3.bf16.msra.mxu1 %v3462_v19 }
 0x48a   :  { %2777 = vmatprep.subr.bf16.mxu1 %v3041_v1 }
 0x48b   :  { %2750 = vmatpush1.bf16.msra.mxu0 %v3370_v41 }
 0x48c   :  { %2752 = vmatprep.subr.bf16.mxu0 %v3374_v46 }
 0x48d   :  { %2779 = vmatpush3.bf16.msra.mxu1 %v3466_v25 }
 0x48e   :  { %2780 = vmatprep.subr.bf16.mxu1 %v3041_v1 }
 0x48f   :  { %2754 = vmatpush1.bf16.msra.mxu0 %v3376_v53 }
 0x490   :  { %2756 = vmatprep.subr.bf16.mxu0 %v3383_v62 }
 0x491   :  { %2782 = vmatpush3.bf16.msra.mxu1 %v3379_v56 }
 0x492   :  { %2783 = vmatprep.subr.bf16.mxu1 %v3041_v1 }
 0x493   :  { %2758 = vmatpush1.bf16.msra.mxu0 %v3386_v16 }
 0x494   :  { %2760 = vmatprep.subr.bf16.mxu0 %v3391_v42 }
 0x495   :  { %2785 = vmatpush3.bf16.msra.mxu1 %v3389_v34 }
 0x496   :  { %2786 = vmatprep.subr.bf16.mxu1 %v3041_v1 }
 0x497   :  { %2762 = vmatpush1.bf16.msra.mxu0 %v3394_v57 }
 0x498   :  { %2764 = vmatprep.subr.bf16.mxu0 %v3400_v7 }
 0x499   :  { %2788 = vmatpush3.bf16.msra.mxu1 %v3398_v6 }
 0x49a   :  { %2789 = vmatprep.subr.bf16.mxu1 %v3041_v1 }
 0x49b   :  { %2766 = vmatpush1.bf16.msra.mxu0 %v3404_v11 }
 0x49c   :  { %2768 = vmatprep.subr.bf16.mxu0 %v3410_v17 }
 0x49d   :  { %2791 = vmatpush3.bf16.msra.mxu1 %v3408_v14 }
 0x49e   :  { %2792 = vmatprep.subr.bf16.mxu1 %v3041_v1 }
 0x49f   :  { %2770 = vmatpush1.bf16.msra.mxu0 %v3414_v28 }
 0x4a0   :  { %2796 = vmatprep.subr.bf16.mxu0 %v3356_v24 }
 0x4a1   :  { %2794 = vmatpush3.bf16.msra.mxu1 %v3418_v39 }
 0x4a2   :  { %2827 = vmatprep.subr.bf16.mxu1 %v3041_v1 }
 0x555   :  { %v1167_v5 = vpop.f32.mrb[8].mxu0  ;;  %v1238_v38 = vpop.f32.mrb[8].mxu1 }
 0x556   :  { %v1168_v40 = vadd.f32 %v1167_v5, %v1089_v48  ;;  %v1169_v44 = vpop.f32.mrb[9].mxu0  ;;  %v2353_v45 = vpop.f32.mrb[9].mxu1  ;;  %v1239_v22 = vadd.f32 %v1238_v38, %v1097_v21 }
 0x557   :  { %v1170_v47 = vadd.f32 %v1169_v44, %v1093_v35 }
 0x559   :  { %v1244_v49 = vcombine.low %v1168_v40, %v1170_v47 }
 0x55b   :  { %v1251_v50 = vrot.slane %v1244_v49, %v3237_v37 }
 0x55d   :  { %v1258_v58 = vrot.slane %v1251_v50, %v3237_v37 }
 0x55f   :  { %v1260_v59 = vadd.f32 %v1258_v58, %v1035_v54 }
 0x561   :  { %v2039_v9 = vmul.f32 -1.442695, %v1260_v59 }
 0x563   :  { %2940 = vpow2.f32 %v2039_v9 }
 0x56d   :  { %v2941_v10 = vpop.eup %2940 }
 0x56e   :  { %v1264_v15 = vadd.f32 1.0, %v2941_v10 }
 0x570   :  { %2942 = vrcp.f32 %v1264_v15 }
 0x57a   :  { %v2943_v43 = vpop.eup %2942 }
 0x57b   :  { %v1267_v51 = vmul.f32 %v2943_v43, %v1239_v22  ;;  %v1275_v2 = vrot.slane %v2943_v43, 1 }
 0x57d   :  { %v1271_v52 = vadd.f32 %v1269_v31, %v1267_v51 }
 0x57f   :  { %2944 = vtanh.f32 %v1271_v52 }
 0x589   :  { %v2945_v60 = vpop.eup %2944 }
 0x58a   :  { %v1273_v61 = vsub.f32 %v3434_v18, %v2945_v60  ;;  %v1330_v18 = vld [vmem:[%s3608_s3] sm:$0x7] }
 0x58b   :  { %v1335_v63 = vrot.slane %v1330_v18, %v3228_v23  ;;  %v1339_v4 = vrot.slane %v1330_v18, %v3233_v27  ;;  %v1343_v50 = vrot.slane %v1330_v18, %v3241_v55 }
 0x58c   :  { %v1277_v13 = vmul.f32 %v1275_v2, %v1273_v61  ;;  %v1822_v61 = vld [vmem:[%s3608_s3] sm:$0x7] }
 0x58d   :  { %v1827_v2 = vrot.slane %v1822_v61, %v3228_v23 }
 0x58e   :  { %v3489_v12 = vadd.f32 %v2945_v60, %v1277_v13  ;;  %v1831_v13 = vrot.slane %v1822_v61, %v3233_v27 }
 0x590   :  { %1279 = vst [vmem:[#allocation8 + $0x4] sm:$0x1] %v3489_v12  ;;  %1412 = vmatmul.mubr.f32.vlgmr.msra.gmra.mrb[10].mxu0 %v3489_v12  ;;  %2387 = vmatmul.mubr.f32.vlgmr.msra.gmra.mrb[10].mxu1 %v3489_v12 }
 0x591   :  { %2798 = vmatpush1.bf16.msra.mxu0 %v3358_v26  ;;  %2829 = vmatpush3.bf16.msra.mxu1 %v3458_v3 }
 0x592   :  { %2800 = vmatprep.subr.bf16.mxu0 %v3362_v29  ;;  %2830 = vmatprep.subr.bf16.mxu1 %v3041_v1 }
 0x593   :  { %1657 = vmatprep.mubr.f32.mxu0 %v3040_v0  ;;  %2421 = vmatprep.mubr.msk.f32.mxu1 %vm3042_vm0, %v3040_v0 }
 0x595   :  { %2802 = vmatpush1.bf16.msra.mxu0 %v3364_v33  ;;  %2832 = vmatpush3.bf16.msra.mxu1 %v3462_v19 }
 0x596   :  { %2804 = vmatprep.subr.bf16.mxu0 %v3368_v36  ;;  %2833 = vmatprep.subr.bf16.mxu1 %v3041_v1 }
 0x599   :  { %2806 = vmatpush1.bf16.msra.mxu0 %v3370_v41  ;;  %2835 = vmatpush3.bf16.msra.mxu1 %v3466_v25 }
 0x59a   :  { %2808 = vmatprep.subr.bf16.mxu0 %v3374_v46  ;;  %2836 = vmatprep.subr.bf16.mxu1 %v3041_v1 }
 0x59d   :  { %2810 = vmatpush1.bf16.msra.mxu0 %v3376_v53  ;;  %2838 = vmatpush3.bf16.msra.mxu1 %v3379_v56 }
 0x59e   :  { %2812 = vmatprep.subr.bf16.mxu0 %v3383_v62  ;;  %2839 = vmatprep.subr.bf16.mxu1 %v3041_v1 }
 0x5a1   :  { %2814 = vmatpush1.bf16.msra.mxu0 %v3386_v16  ;;  %2841 = vmatpush3.bf16.msra.mxu1 %v3389_v34 }
 0x5a2   :  { %2816 = vmatprep.subr.bf16.mxu0 %v3391_v42  ;;  %2842 = vmatprep.subr.bf16.mxu1 %v3041_v1 }
 0x5a5   :  { %2818 = vmatpush1.bf16.msra.mxu0 %v3394_v57  ;;  %2844 = vmatpush3.bf16.msra.mxu1 %v3398_v6 }
 0x5a6   :  { %2820 = vmatprep.subr.bf16.mxu0 %v3400_v7  ;;  %2845 = vmatprep.subr.bf16.mxu1 %v3041_v1 }
 0x5a9   :  { %2822 = vmatpush1.bf16.msra.mxu0 %v3404_v11  ;;  %2847 = vmatpush3.bf16.msra.mxu1 %v3408_v14 }
 0x5aa   :  { %2824 = vmatprep.subr.bf16.mxu0 %v3410_v17  ;;  %2848 = vmatprep.subr.bf16.mxu1 %v3041_v1 }
 0x5ad   :  { %2826 = vmatpush1.bf16.msra.mxu0 %v3414_v28  ;;  %2850 = vmatpush3.bf16.msra.mxu1 %v3418_v39 }
 0x5ae   :  { %2852 = vmatprep.subr.bf16.mxu0 %v3356_v24  ;;  %2883 = vmatprep.subr.bf16.mxu1 %v3041_v1  ;;  %v1281_v24 = vld [vmem:[#allocation3 + $0x5] ss:$8 sm:$0x7] }
 0x5af   :  { %v1515_v58 = vrot.slane %v1281_v24, 2 }
 0x663   :  { %v1413_v8 = vpop.f32.mrb[10].mxu0  ;;  %v1484_v20 = vpop.f32.mrb[10].mxu1 }
 0x664   :  { %v1414_v32 = vadd.f32 %v1413_v8, %v1335_v63  ;;  %v1415_v30 = vpop.f32.mrb[11].mxu0  ;;  %v2388_v48 = vpop.f32.mrb[11].mxu1  ;;  %v1485_v54 = vadd.f32 %v1484_v20, %v1343_v50 }
 0x665   :  { %v1416_v35 = vadd.f32 %v1415_v30, %v1339_v4  ;;  %v1773_v48 = vld [vmem:[#allocation3 + $0x7] ss:$8 sm:$0x7] }
 0x667   :  { %v1490_v5 = vcombine.low %v1414_v32, %v1416_v35 }
 0x669   :  { %v1497_v38 = vrot.slane %v1490_v5, %v3237_v37 }
 0x66b   :  { %v1504_v40 = vrot.slane %v1497_v38, %v3237_v37 }
 0x66d   :  { %v1506_v44 = vadd.f32 %v1504_v40, %v1281_v24 }
 0x66f   :  { %v2040_v45 = vmul.f32 -1.442695, %v1506_v44  ;;  %v2007_v44 = vrot.slane %v1773_v48, 2 }
 0x671   :  { %2946 = vpow2.f32 %v2040_v45 }
 0x67b   :  { %v2947_v47 = vpop.eup %2946 }
 0x67c   :  { %v1510_v49 = vadd.f32 1.0, %v2947_v47 }
 0x67e   :  { %2948 = vrcp.f32 %v1510_v49 }
 0x688   :  { %v2949_v59 = vpop.eup %2948 }
 0x689   :  { %v1513_v9 = vmul.f32 %v2949_v59, %v1485_v54  ;;  %v1521_v22 = vrot.slane %v2949_v59, 1 }
 0x68b   :  { %v1517_v10 = vadd.f32 %v1515_v58, %v1513_v9 }
 0x68d   :  { %2950 = vtanh.f32 %v1517_v10 }
 0x697   :  { %v2951_v15 = vpop.eup %2950 }
 0x698   :  { %v1519_v21 = vsub.f32 %v3489_v12, %v2951_v15 }
 0x69a   :  { %v1523_v31 = vmul.f32 %v1521_v22, %v1519_v21 }
 0x69c   :  { %v3538_v43 = vadd.f32 %v2951_v15, %v1523_v31 }
 0x69e   :  { %1525 = vst [vmem:[#allocation8 + $0x5] sm:$0x1] %v3538_v43  ;;  %1658 = vmatmul.mubr.f32.vlgmr.msra.gmra.mrb[12].mxu0 %v3538_v43  ;;  %2422 = vmatmul.mubr.f32.vlgmr.msra.gmra.mrb[12].mxu1 %v3538_v43 }
 0x69f   :  { %2854 = vmatpush1.bf16.msra.mxu0 %v3358_v26  ;;  %2885 = vmatpush3.bf16.msra.mxu1 %v3458_v3 }
 0x6a0   :  { %2856 = vmatprep.subr.bf16.mxu0 %v3362_v29  ;;  %2886 = vmatprep.subr.bf16.mxu1 %v3041_v1 }
 0x6a1   :  { %1903 = vmatprep.mubr.f32.mxu0 %v3040_v0  ;;  %2456 = vmatprep.mubr.msk.f32.mxu1 %vm3042_vm0, %v3040_v0  ;;  %v1576_v0 = vld [vmem:[%s3608_s3] sm:$0x7]  ;;  %s3044_s3 = smov [#allocation8]  }
 0x6a2   :  { %v1581_v26 = vrot.slane %v1576_v0, %v3228_v23  ;;  %v1585_v29 = vrot.slane %v1576_v0, %v3233_v27  ;;  %v1835_v23 = vrot.slane %v1822_v61, %v3241_v55  ;;  %s2025_s30 = sshll.u32 %s3044_s3, 4  ;;  %s2026_s30 = int_to_ptr.vmem [resolvable:$true] %s2025_s30 }
 0x6a3   :  { %2858 = vmatpush1.bf16.msra.mxu0 %v3364_v33  ;;  %2888 = vmatpush3.bf16.msra.mxu1 %v3462_v19  ;;  %s3008_s5 = scalar_lea.vmem %s2026_s30, 128  ;;  %p3013_p3 = scmp.lt.s32.totalorder %s2026_s30, %s2026_s30 }
 0x6a4   :  { %2860 = vmatprep.subr.bf16.mxu0 %v3368_v36  ;;  %2889 = vmatprep.subr.bf16.mxu1 %v3041_v1  ;;  %p3009_p2 = scmp.ne.s32.totalorder %s2026_s30, %s3008_s5  ;;  %p3014_p4 = scmp.lt.s32.totalorder %s3008_s5, %s3008_s5 }
 0x6a6   :  { %p3015_p5 = por %p3014_p4, %p3013_p3 }
 0x6a7   :  { %2862 = vmatpush1.bf16.msra.mxu0 %v3370_v41  ;;  %2891 = vmatpush3.bf16.msra.mxu1 %v3466_v25 }
 0x6a8   :  { %2864 = vmatprep.subr.bf16.mxu0 %v3374_v46  ;;  %2892 = vmatprep.subr.bf16.mxu1 %v3041_v1  ;;  %p3016_p6 = pnand %p3015_p5, %p3009_p2 }
 0x6ab   :  { %2866 = vmatpush1.bf16.msra.mxu0 %v3376_v53  ;;  %2894 = vmatpush3.bf16.msra.mxu1 %v3379_v56 }
 0x6ac   :  { %2868 = vmatprep.subr.bf16.mxu0 %v3383_v62  ;;  %2895 = vmatprep.subr.bf16.mxu1 %v3041_v1 }
 0x6af   :  { %2870 = vmatpush1.bf16.msra.mxu0 %v3386_v16  ;;  %2897 = vmatpush3.bf16.msra.mxu1 %v3389_v34  ;;  %v1527_v16 = vld [vmem:[#allocation3 + $0x6] ss:$8 sm:$0x7] }
 0x6b0   :  { %2872 = vmatprep.subr.bf16.mxu0 %v3391_v42  ;;  %2898 = vmatprep.subr.bf16.mxu1 %v3041_v1 }
 0x6b3   :  { %2874 = vmatpush1.bf16.msra.mxu0 %v3394_v57  ;;  %2900 = vmatpush3.bf16.msra.mxu1 %v3398_v6 }
 0x6b4   :  { %2876 = vmatprep.subr.bf16.mxu0 %v3400_v7  ;;  %2901 = vmatprep.subr.bf16.mxu1 %v3041_v1 }
 0x6b7   :  { %2878 = vmatpush1.bf16.msra.mxu0 %v3404_v11  ;;  %2903 = vmatpush3.bf16.msra.mxu1 %v3408_v14  ;;  %v1589_v11 = vrot.slane %v1576_v0, %v3241_v55 }
 0x6b8   :  { %2880 = vmatprep.subr.bf16.mxu0 %v3410_v17  ;;  %2904 = vmatprep.subr.bf16.mxu1 %v3041_v1  ;;  %v1761_v17 = vrot.slane %v1527_v16, 2 }
 0x6bb   :  { %2882 = vmatpush1.bf16.msra.mxu0 %v3414_v28  ;;  %2906 = vmatpush3.bf16.msra.mxu1 %v3418_v39 }
 0x771   :  { %v1659_v33 = vpop.f32.mrb[12].mxu0  ;;  %v1730_v36 = vpop.f32.mrb[12].mxu1 }
 0x772   :  { %v1660_v41 = vadd.f32 %v1659_v33, %v1581_v26  ;;  %v1661_v46 = vpop.f32.mrb[13].mxu0  ;;  %v2423_v53 = vpop.f32.mrb[13].mxu1  ;;  %v1731_v14 = vadd.f32 %v1730_v36, %v1589_v11 }
 0x773   :  { %v1662_v56 = vadd.f32 %v1661_v46, %v1585_v29 }
 0x775   :  { %v1736_v62 = vcombine.low %v1660_v41, %v1662_v56 }
 0x777   :  { %v1743_v1 = vrot.slane %v1736_v62, %v3237_v37 }
 0x779   :  { %v1750_v34 = vrot.slane %v1743_v1, %v3237_v37 }
 0x77b   :  { %v1752_v42 = vadd.f32 %v1750_v34, %v1527_v16 }
 0x77d   :  { %v2041_v57 = vmul.f32 -1.442695, %v1752_v42 }
 0x77f   :  { %2952 = vpow2.f32 %v2041_v57 }
 0x789   :  { %v2953_v6 = vpop.eup %2952 }
 0x78a   :  { %v1756_v7 = vadd.f32 1.0, %v2953_v6 }
 0x78c   :  { %2954 = vrcp.f32 %v1756_v7 }
 0x796   :  { %v2955_v28 = vpop.eup %2954 }
 0x797   :  { %v1759_v39 = vmul.f32 %v2955_v28, %v1731_v14  ;;  %v1767_v51 = vrot.slane %v2955_v28, 1 }
 0x799   :  { %v1763_v3 = vadd.f32 %v1761_v17, %v1759_v39 }
 0x79b   :  { %2956 = vtanh.f32 %v1763_v3 }
 0x7a5   :  { %v2957_v19 = vpop.eup %2956 }
 0x7a6   :  { %v1765_v25 = vsub.f32 %v3538_v43, %v2957_v19 }
 0x7a8   :  { %v1769_v52 = vmul.f32 %v1767_v51, %v1765_v25 }
 0x7aa   :  { %v1770_v60 = vadd.f32 %v2957_v19, %v1769_v52 }
 0x7ac   :  { %1771 = vst [vmem:[#allocation8 + $0x6] sm:$0x1] %v1770_v60  ;;  %1904 = vmatmul.mubr.f32.vlgmr.msra.gmra.mrb[14].mxu0 %v1770_v60  ;;  %2457 = vmatmul.mubr.f32.vlgmr.msra.gmra.mrb[14].mxu1 %v1770_v60 }
 0x87f   :  { %v1905_v12 = vpop.f32.mrb[14].mxu0  ;;  %v1976_v18 = vpop.f32.mrb[14].mxu1 }
 0x880   :  { %v1906_v63 = vadd.f32 %v1905_v12, %v1827_v2  ;;  %v1907_v4 = vpop.f32.mrb[15].mxu0  ;;  %v2458_v8 = vpop.f32.mrb[15].mxu1  ;;  %v1977_v27 = vadd.f32 %v1976_v18, %v1835_v23 }
 0x881   :  { %v1908_v20 = vadd.f32 %v1907_v4, %v1831_v13 }
 0x883   :  { %v1982_v32 = vcombine.low %v1906_v63, %v1908_v20 }
 0x885   :  { %v1989_v30 = vrot.slane %v1982_v32, %v3237_v37 }
 0x887   :  { %v1996_v35 = vrot.slane %v1989_v30, %v3237_v37 }
 0x889   :  { %v1998_v5 = vadd.f32 %v1996_v35, %v1773_v48 }
 0x88b   :  { %v2042_v38 = vmul.f32 -1.442695, %v1998_v5 }
 0x88d   :  { %2958 = vpow2.f32 %v2042_v38 }
 0x897   :  { %v2959_v24 = vpop.eup %2958 }
 0x898   :  { %v2002_v40 = vadd.f32 1.0, %v2959_v24 }
 0x89a   :  { %2960 = vrcp.f32 %v2002_v40 }
 0x8a4   :  { %v2961_v45 = vpop.eup %2960 }
 0x8a5   :  { %v2005_v47 = vmul.f32 %v2961_v45, %v1977_v27  ;;  %v2013_v58 = vrot.slane %v2961_v45, 1 }
 0x8a7   :  { %v2009_v49 = vadd.f32 %v2007_v44, %v2005_v47 }
 0x8a9   :  { %2962 = vtanh.f32 %v2009_v49 }
 0x8b3   :  { %v2963_v50 = vpop.eup %2962 }
 0x8b4   :  { %v2011_v54 = vsub.f32 %v1770_v60, %v2963_v50 }
 0x8b6   :  { %v2015_v37 = vmul.f32 %v2013_v58, %v2011_v54 }
 0x8b8   :  { %v2016_v59 = vadd.f32 %v2963_v50, %v2015_v37 }
 0x8ba   :  { %2018 = vst [vmem:[#allocation2] sm:$0x1] %v2016_v59  ;;  %2017 = vst [vmem:[#allocation8 + $0x7] sm:$0x1] %v2016_v59 }
 0x8bb   :  { %3019 = shalt.err (!%p3016_p6)
}
 0x8bc   :  { %s3020_s8 = scalar_lea.hbm %s3609_s4, 128 }
 0x8bd   :  { %p3021_p7 = scmp.ne.s32.totalorder %s3609_s4, %s3020_s8  ;;  %p3024_p8 = scmp.lt.u32.totalorder %s3020_s8, %s3609_s4 }
 0x8bf   :  { %p3026_p9 = pnand %p3024_p8, %p3021_p7 }
 0x8c1   :  { %3029 = shalt.err (!%p3026_p9)
}
 0x8c2   :  { %2028 = dma.vmem_to_hbm [thread:$0]  %s2026_s30, 128, %s3609_s4, [#allocation5]  }
 0x8c3   :  { %3034 = dma.done.wait [#allocation5], 128  }
 0x8c4   :  { %3035 = vsyncadd [#allocation5], 4294967168 }
 0x8c5   :  { %2032 = vsyncpa [#allocation4], 1 }
 0x8c6   :  { %2033 = vsyncpa [#allocation7], 1 }
 0x8c7   :  { %2034 = vsyncpa [#allocation5], 1 }

</bundles_post_ra>
